<compile_context>
chip_gen: v7x
topology: tpu7x:2x2x1
jax: 0.10.0
libtpu: 0.0.40
codegen_flags: <defaults>
</compile_context>

<pallas_src>
import math
import functools

import jax
import jax.numpy as jnp
from jax.experimental import pallas as pl
from jax.experimental.pallas import tpu as pltpu


_MAB_KEYS = ("wq", "bq", "wk", "bk", "wv", "bv", "wo", "bo")


# --------------------------------------------------------------------------------------
# Fused Pallas kernel: whole SetTransformer forward for one batch block.
# --------------------------------------------------------------------------------------
def _set_transformer_kernel(x_ref, *rest, num_heads):
    out_ref = rest[-1]
    param_refs = rest[:-1]
    it = iter(param_refs)

    def mabp():
        # Consumes 8 refs in _MAB_KEYS order (dict comprehension preserves key order).
        return {k: next(it) for k in _MAB_KEYS}

    I0_ref = next(it); e0m0 = mabp(); e0m1 = mabp()        # enc ISAB 0
    I1_ref = next(it); e1m0 = mabp(); e1m1 = mabp()        # enc ISAB 1
    S_ref = next(it); pma = mabp()                          # dec PMA
    sab = mabp()                                            # dec SAB
    wfc_ref = next(it); bfc_ref = next(it)                  # dec final Linear

    bb, n_set, d_in = x_ref.shape
    num_inds = I0_ref.shape[0]
    num_out, d_hid = S_ref.shape
    dh = d_hid // num_heads

    # Fold batch into rows for every dense op.
    X = x_ref[...].reshape(bb * n_set, d_in)

    def project(M, w_ref, b_ref):
        return jnp.dot(M, w_ref[...], preferred_element_type=jnp.float32) + b_ref[...]

    def attend(Qp, Kp, Vp):
        # Qp: (nq, Dv), Kp/Vp: (nk, Dv).  Kp is already scaled by 1/sqrt(dim_V).
        outs = []
        for h in range(num_heads):                           # static unrolled head loop
            sl = slice(h * dh, (h + 1) * dh)
            Qh, Kh, Vh = Qp[:, sl], Kp[:, sl], Vp[:, sl]
            s = jnp.dot(Qh, Kh.T, preferred_element_type=jnp.float32)     # (nq, nk)
            s = s - jnp.max(s, axis=-1, keepdims=True)
            e = jnp.exp(s)
            a = e * pl.reciprocal(jnp.sum(e, axis=-1, keepdims=True), approx=True)
            outs.append(Qh + jnp.dot(a, Vh, preferred_element_type=jnp.float32))
        return jnp.concatenate(outs, axis=-1)                # (nq, Dv)

    def mab(Q_all, K_all, p, nq, nk, q_shared):
        # Q_all: (nq, Dq) if q_shared (I / PMA seeds, identical across batch)
        #        else (bb*nq, Dq).   K_all: (bb*nk, Dk).
        Qp_all = project(Q_all, p["wq"], p["bq"])
        Kp_all = project(K_all, p["wk"], p["bk"])            # pre-scaled weights
        Vp_all = project(K_all, p["wv"], p["bv"])
        outs = []
        for b in range(bb):                                   # static unrolled batch loop
            Qp = Qp_all if q_shared else Qp_all[b * nq:(b + 1) * nq]
            outs.append(attend(Qp,
                               Kp_all[b * nk:(b + 1) * nk],
                               Vp_all[b * nk:(b + 1) * nk]))
        O = outs[0] if bb == 1 else jnp.concatenate(outs, axis=0)   # (bb*nq, Dv)
        H = project(O, p["wo"], p["bo"])
        return O + jnp.maximum(H, 0.0)

    def isab(Xf, I_ref, m0, m1):
        Hc = mab(I_ref[...], Xf, m0, num_inds, n_set, q_shared=True)   # (bb*num_inds, D)
        return mab(Xf, Hc, m1, n_set, num_inds, q_shared=False)        # (bb*n_set, D)

    Xf = isab(X, I0_ref, e0m0, e0m1)
    Xf = isab(Xf, I1_ref, e1m0, e1m1)
    Xf = mab(S_ref[...], Xf, pma, num_out, n_set, q_shared=True)       # PMA
    Xf = mab(Xf, Xf, sab, num_out, num_out, q_shared=False)            # SAB
    Y = project(Xf, wfc_ref, bfc_ref)                                  # final Linear
    out_ref[...] = Y.reshape(bb, num_out, d_hid).astype(out_ref.dtype)


# --------------------------------------------------------------------------------------
# Parameter flattening (fixed order consumed by the kernel) with attention scale folded
# into fc_k (keeps the Qh residual exact).
# --------------------------------------------------------------------------------------
def _flatten_params(params, scale):
    def mab_list(m):
        out = []
        for k in _MAB_KEYS:
            v = m[k]
            if k in ("wk", "bk"):
                v = v * scale
            out.append(v)
        return out

    flat = [params["enc0"]["I"]]
    flat += mab_list(params["enc0"]["mab0"]) + mab_list(params["enc0"]["mab1"])
    flat += [params["enc1"]["I"]]
    flat += mab_list(params["enc1"]["mab0"]) + mab_list(params["enc1"]["mab1"])
    flat += [params["dec_pma"]["S"]] + mab_list(params["dec_pma"]["mab"])
    flat += mab_list(params["dec_sab"])
    flat += [params["dec_fc"]["w"], params["dec_fc"]["b"]]
    return flat


# --------------------------------------------------------------------------------------
# Wrapper: one pallas_call over batch blocks.
# --------------------------------------------------------------------------------------
def set_transformer_forward(X, params, num_heads, block_b=None):
    B, N, Din = X.shape
    D = params["dec_fc"]["w"].shape[1]
    num_outputs = params["dec_pma"]["S"].shape[0]

    if block_b is None:
        # Largest divisor of B (capped at 8) that still leaves >=2 grid steps so both
        # v7x TensorCores get work; falls back to 1 for tiny B.
        block_b = 1
        for c in range(min(B, 8), 0, -1):
            if B % c == 0 and B // c >= 2:
                block_b = c
                break
    assert B % block_b == 0

    scale = 1.0 / math.sqrt(D)                      # Set Transformer scales by full dim_V
    flat = _flatten_params(params, scale)

    in_specs = [pl.BlockSpec((block_b, N, Din), lambda b: (b, 0, 0))]
    for a in flat:                                   # replicated param blocks (VMEM-resident)
        in_specs.append(pl.BlockSpec(a.shape, lambda b: (0, 0)))

    kernel = functools.partial(_set_transformer_kernel, num_heads=num_heads)
    return pl.pallas_call(
        kernel,
        out_shape=jax.ShapeDtypeStruct((B, num_outputs, D), jnp.float32),
        grid=(B // block_b,),
        in_specs=in_specs,
        out_specs=pl.BlockSpec((block_b, num_outputs, D), lambda b: (b, 0, 0)),
        compiler_params=pltpu.CompilerParams(dimension_semantics=("parallel",)),
    )(X, *flat)


# --------------------------------------------------------------------------------------
# Parameter init (deterministic, PyTorch-shaped, weights pre-transposed to (in, out))
# --------------------------------------------------------------------------------------
def init_linear(key, din, dout):
    k1, k2 = jax.random.split(key)
    lim = 1.0 / math.sqrt(din)
    w = jax.random.uniform(k1, (din, dout), jnp.float32, -lim, lim)
    b = jax.random.uniform(k2, (1, dout), jnp.float32, -lim, lim)
    return {"w": w, "b": b}


def init_mab(key, dq, dk, dv):
    ks = jax.random.split(key, 4)
    q = init_linear(ks[0], dq, dv)
    k = init_linear(ks[1], dk, dv)
    v = init_linear(ks[2], dk, dv)
    o = init_linear(ks[3], dv, dv)
    return {"wq": q["w"], "bq": q["b"], "wk": k["w"], "bk": k["b"],
            "wv": v["w"], "bv": v["b"], "wo": o["w"], "bo": o["b"]}


def xavier(key, shape):
    fan = shape[-2] + shape[-1]
    lim = math.sqrt(6.0 / fan)
    return jax.random.uniform(key, shape, jnp.float32, -lim, lim)


def init_isab(key, din, dout, num_inds):
    k0, k1, k2 = jax.random.split(key, 3)
    return {"I": xavier(k0, (num_inds, dout)),
            "mab0": init_mab(k1, dout, din, dout),
            "mab1": init_mab(k2, din, dout, dout)}


def init_pma(key, dim, num_seeds):
    k0, k1 = jax.random.split(key)
    return {"S": xavier(k0, (num_seeds, dim)),
            "mab": init_mab(k1, dim, dim, dim)}


def init_set_transformer(key, dim_input, dim_hidden, num_heads, num_inds, num_outputs):
    ks = jax.random.split(key, 5)
    return {
        "enc0": init_isab(ks[0], dim_input, dim_hidden, num_inds),
        "enc1": init_isab(ks[1], dim_hidden, dim_hidden, num_inds),
        "dec_pma": init_pma(ks[2], dim_hidden, num_outputs),
        "dec_sab": init_mab(ks[3], dim_hidden, dim_hidden, dim_hidden),
        "dec_fc": init_linear(ks[4], dim_hidden, dim_hidden),
    }


# --------------------------------------------------------------------------------------
# Pure-JAX reference (mirrors PyTorch MAB exactly) for a sanity check
# --------------------------------------------------------------------------------------
def mab_ref(Q, K, p, num_heads):
    Dv = p["wq"].shape[1]
    Qp = Q @ p["wq"] + p["bq"]
    Kp = K @ p["wk"] + p["bk"]
    Vp = K @ p["wv"] + p["bv"]
    dh = Dv // num_heads
    outs = []
    for h in range(num_heads):
        sl = slice(h * dh, (h + 1) * dh)
        Qh, Kh, Vh = Qp[..., sl], Kp[..., sl], Vp[..., sl]
        S = jnp.einsum("bqd,bkd->bqk", Qh, Kh) / math.sqrt(Dv)
        A = jax.nn.softmax(S, axis=-1)
        outs.append(Qh + jnp.einsum("bqk,bkd->bqd", A, Vh))
    O = jnp.concatenate(outs, axis=-1)
    return O + jax.nn.relu(O @ p["wo"] + p["bo"])


def set_transformer_ref(X, params, num_heads):
    def isab_r(X, p):
        B = X.shape[0]
        I = jnp.broadcast_to(p["I"][None], (B,) + p["I"].shape)
        H = mab_ref(I, X, p["mab0"], num_heads)
        return mab_ref(X, H, p["mab1"], num_heads)

    X = isab_r(X, params["enc0"])
    X = isab_r(X, params["enc1"])
    B = X.shape[0]
    S = jnp.broadcast_to(params["dec_pma"]["S"][None], (B,) + params["dec_pma"]["S"].shape)
    X = mab_ref(S, X, params["dec_pma"]["mab"], num_heads)
    X = mab_ref(X, X, params["dec_sab"], num_heads)
    return X @ params["dec_fc"]["w"] + params["dec_fc"]["b"]


# --------------------------------------------------------------------------------------
if __name__ == "__main__":
    # Small deterministic configuration.
    B, N = 2, 16                  # batch, set size
    dim_input, dim_hidden = 4, 32
    num_heads, num_inds, num_outputs = 4, 16, 8

    key = jax.random.PRNGKey(0)
    kx, kp = jax.random.split(key)
    X = jax.random.normal(kx, (B, N, dim_input), jnp.float32)
    params = init_set_transformer(kp, dim_input, dim_hidden, num_heads, num_inds, num_outputs)

    fwd = jax.jit(functools.partial(set_transformer_forward, num_heads=num_heads))
    out = jax.block_until_ready(fwd(X, params))
    assert out.shape == (B, num_outputs, dim_hidden), out.shape

    ref = jax.block_until_ready(set_transformer_ref(X, params, num_heads))
    err = float(jnp.max(jnp.abs(out - ref)))
    assert jnp.allclose(out, ref, rtol=2e-2, atol=2e-2), err

    print("KERNEL_OK")
</pallas_src>

<mosaic_0001>
module attributes {stable_mosaic.version = 11 : i64} {
  func.func @_set_transformer_kernel(%arg0: i32, %arg1: memref<1x16x4xf32, #tpu.memory_space<vmem>>, %arg2: memref<16x32xf32, #tpu.memory_space<vmem>>, %arg3: memref<32x32xf32, #tpu.memory_space<vmem>>, %arg4: memref<1x32xf32, #tpu.memory_space<vmem>>, %arg5: memref<4x32xf32, #tpu.memory_space<vmem>>, %arg6: memref<1x32xf32, #tpu.memory_space<vmem>>, %arg7: memref<4x32xf32, #tpu.memory_space<vmem>>, %arg8: memref<1x32xf32, #tpu.memory_space<vmem>>, %arg9: memref<32x32xf32, #tpu.memory_space<vmem>>, %arg10: memref<1x32xf32, #tpu.memory_space<vmem>>, %arg11: memref<4x32xf32, #tpu.memory_space<vmem>>, %arg12: memref<1x32xf32, #tpu.memory_space<vmem>>, %arg13: memref<32x32xf32, #tpu.memory_space<vmem>>, %arg14: memref<1x32xf32, #tpu.memory_space<vmem>>, %arg15: memref<32x32xf32, #tpu.memory_space<vmem>>, %arg16: memref<1x32xf32, #tpu.memory_space<vmem>>, %arg17: memref<32x32xf32, #tpu.memory_space<vmem>>, %arg18: memref<1x32xf32, #tpu.memory_space<vmem>>, %arg19: memref<16x32xf32, #tpu.memory_space<vmem>>, %arg20: memref<32x32xf32, #tpu.memory_space<vmem>>, %arg21: memref<1x32xf32, #tpu.memory_space<vmem>>, %arg22: memref<32x32xf32, #tpu.memory_space<vmem>>, %arg23: memref<1x32xf32, #tpu.memory_space<vmem>>, %arg24: memref<32x32xf32, #tpu.memory_space<vmem>>, %arg25: memref<1x32xf32, #tpu.memory_space<vmem>>, %arg26: memref<32x32xf32, #tpu.memory_space<vmem>>, %arg27: memref<1x32xf32, #tpu.memory_space<vmem>>, %arg28: memref<32x32xf32, #tpu.memory_space<vmem>>, %arg29: memref<1x32xf32, #tpu.memory_space<vmem>>, %arg30: memref<32x32xf32, #tpu.memory_space<vmem>>, %arg31: memref<1x32xf32, #tpu.memory_space<vmem>>, %arg32: memref<32x32xf32, #tpu.memory_space<vmem>>, %arg33: memref<1x32xf32, #tpu.memory_space<vmem>>, %arg34: memref<32x32xf32, #tpu.memory_space<vmem>>, %arg35: memref<1x32xf32, #tpu.memory_space<vmem>>, %arg36: memref<8x32xf32, #tpu.memory_space<vmem>>, %arg37: memref<32x32xf32, #tpu.memory_space<vmem>>, %arg38: memref<1x32xf32, #tpu.memory_space<vmem>>, %arg39: memref<32x32xf32, #tpu.memory_space<vmem>>, %arg40: memref<1x32xf32, #tpu.memory_space<vmem>>, %arg41: memref<32x32xf32, #tpu.memory_space<vmem>>, %arg42: memref<1x32xf32, #tpu.memory_space<vmem>>, %arg43: memref<32x32xf32, #tpu.memory_space<vmem>>, %arg44: memref<1x32xf32, #tpu.memory_space<vmem>>, %arg45: memref<32x32xf32, #tpu.memory_space<vmem>>, %arg46: memref<1x32xf32, #tpu.memory_space<vmem>>, %arg47: memref<32x32xf32, #tpu.memory_space<vmem>>, %arg48: memref<1x32xf32, #tpu.memory_space<vmem>>, %arg49: memref<32x32xf32, #tpu.memory_space<vmem>>, %arg50: memref<1x32xf32, #tpu.memory_space<vmem>>, %arg51: memref<32x32xf32, #tpu.memory_space<vmem>>, %arg52: memref<1x32xf32, #tpu.memory_space<vmem>>, %arg53: memref<32x32xf32, #tpu.memory_space<vmem>>, %arg54: memref<1x32xf32, #tpu.memory_space<vmem>>, %arg55: memref<1x8x32xf32, #tpu.memory_space<vmem>>) attributes {dimension_semantics = [#tpu.dimension_semantics<parallel>], iteration_bounds = array<i64: 2>, scalar_prefetch = 0 : i64, scratch_operands = 0 : i64, tpu.core_type = #tpu.core_type<tc>, window_params = [{transform_indices = @transform_0, window_bounds = array<i64: 1, 16, 4>}, {pipeline_mode = #tpu.pipeline_mode<synchronous>, transform_indices = @transform_1, window_bounds = array<i64: 16, 32>}, {pipeline_mode = #tpu.pipeline_mode<synchronous>, transform_indices = @transform_2, window_bounds = array<i64: 32, 32>}, {pipeline_mode = #tpu.pipeline_mode<synchronous>, transform_indices = @transform_3, window_bounds = array<i64: 1, 32>}, {pipeline_mode = #tpu.pipeline_mode<synchronous>, transform_indices = @transform_4, window_bounds = array<i64: 4, 32>}, {pipeline_mode = #tpu.pipeline_mode<synchronous>, transform_indices = @transform_5, window_bounds = array<i64: 1, 32>}, {pipeline_mode = #tpu.pipeline_mode<synchronous>, transform_indices = @transform_6, window_bounds = array<i64: 4, 32>}, {pipeline_mode = #tpu.pipeline_mode<synchronous>, transform_indices = @transform_7, window_bounds = array<i64: 1, 32>}, {pipeline_mode = #tpu.pipeline_mode<synchronous>, transform_indices = @transform_8, window_bounds = array<i64: 32, 32>}, {pipeline_mode = #tpu.pipeline_mode<synchronous>, transform_indices = @transform_9, window_bounds = array<i64: 1, 32>}, {pipeline_mode = #tpu.pipeline_mode<synchronous>, transform_indices = @transform_10, window_bounds = array<i64: 4, 32>}, {pipeline_mode = #tpu.pipeline_mode<synchronous>, transform_indices = @transform_11, window_bounds = array<i64: 1, 32>}, {pipeline_mode = #tpu.pipeline_mode<synchronous>, transform_indices = @transform_12, window_bounds = array<i64: 32, 32>}, {pipeline_mode = #tpu.pipeline_mode<synchronous>, transform_indices = @transform_13, window_bounds = array<i64: 1, 32>}, {pipeline_mode = #tpu.pipeline_mode<synchronous>, transform_indices = @transform_14, window_bounds = array<i64: 32, 32>}, {pipeline_mode = #tpu.pipeline_mode<synchronous>, transform_indices = @transform_15, window_bounds = array<i64: 1, 32>}, {pipeline_mode = #tpu.pipeline_mode<synchronous>, transform_indices = @transform_16, window_bounds = array<i64: 32, 32>}, {pipeline_mode = #tpu.pipeline_mode<synchronous>, transform_indices = @transform_17, window_bounds = array<i64: 1, 32>}, {pipeline_mode = #tpu.pipeline_mode<synchronous>, transform_indices = @transform_18, window_bounds = array<i64: 16, 32>}, {pipeline_mode = #tpu.pipeline_mode<synchronous>, transform_indices = @transform_19, window_bounds = array<i64: 32, 32>}, {pipeline_mode = #tpu.pipeline_mode<synchronous>, transform_indices = @transform_20, window_bounds = array<i64: 1, 32>}, {pipeline_mode = #tpu.pipeline_mode<synchronous>, transform_indices = @transform_21, window_bounds = array<i64: 32, 32>}, {pipeline_mode = #tpu.pipeline_mode<synchronous>, transform_indices = @transform_22, window_bounds = array<i64: 1, 32>}, {pipeline_mode = #tpu.pipeline_mode<synchronous>, transform_indices = @transform_23, window_bounds = array<i64: 32, 32>}, {pipeline_mode = #tpu.pipeline_mode<synchronous>, transform_indices = @transform_24, window_bounds = array<i64: 1, 32>}, {pipeline_mode = #tpu.pipeline_mode<synchronous>, transform_indices = @transform_25, window_bounds = array<i64: 32, 32>}, {pipeline_mode = #tpu.pipeline_mode<synchronous>, transform_indices = @transform_26, window_bounds = array<i64: 1, 32>}, {pipeline_mode = #tpu.pipeline_mode<synchronous>, transform_indices = @transform_27, window_bounds = array<i64: 32, 32>}, {pipeline_mode = #tpu.pipeline_mode<synchronous>, transform_indices = @transform_28, window_bounds = array<i64: 1, 32>}, {pipeline_mode = #tpu.pipeline_mode<synchronous>, transform_indices = @transform_29, window_bounds = array<i64: 32, 32>}, {pipeline_mode = #tpu.pipeline_mode<synchronous>, transform_indices = @transform_30, window_bounds = array<i64: 1, 32>}, {pipeline_mode = #tpu.pipeline_mode<synchronous>, transform_indices = @transform_31, window_bounds = array<i64: 32, 32>}, {pipeline_mode = #tpu.pipeline_mode<synchronous>, transform_indices = @transform_32, window_bounds = array<i64: 1, 32>}, {pipeline_mode = #tpu.pipeline_mode<synchronous>, transform_indices = @transform_33, window_bounds = array<i64: 32, 32>}, {pipeline_mode = #tpu.pipeline_mode<synchronous>, transform_indices = @transform_34, window_bounds = array<i64: 1, 32>}, {pipeline_mode = #tpu.pipeline_mode<synchronous>, transform_indices = @transform_35, window_bounds = array<i64: 8, 32>}, {pipeline_mode = #tpu.pipeline_mode<synchronous>, transform_indices = @transform_36, window_bounds = array<i64: 32, 32>}, {pipeline_mode = #tpu.pipeline_mode<synchronous>, transform_indices = @transform_37, window_bounds = array<i64: 1, 32>}, {pipeline_mode = #tpu.pipeline_mode<synchronous>, transform_indices = @transform_38, window_bounds = array<i64: 32, 32>}, {pipeline_mode = #tpu.pipeline_mode<synchronous>, transform_indices = @transform_39, window_bounds = array<i64: 1, 32>}, {pipeline_mode = #tpu.pipeline_mode<synchronous>, transform_indices = @transform_40, window_bounds = array<i64: 32, 32>}, {pipeline_mode = #tpu.pipeline_mode<synchronous>, transform_indices = @transform_41, window_bounds = array<i64: 1, 32>}, {pipeline_mode = #tpu.pipeline_mode<synchronous>, transform_indices = @transform_42, window_bounds = array<i64: 32, 32>}, {pipeline_mode = #tpu.pipeline_mode<synchronous>, transform_indices = @transform_43, window_bounds = array<i64: 1, 32>}, {pipeline_mode = #tpu.pipeline_mode<synchronous>, transform_indices = @transform_44, window_bounds = array<i64: 32, 32>}, {pipeline_mode = #tpu.pipeline_mode<synchronous>, transform_indices = @transform_45, window_bounds = array<i64: 1, 32>}, {pipeline_mode = #tpu.pipeline_mode<synchronous>, transform_indices = @transform_46, window_bounds = array<i64: 32, 32>}, {pipeline_mode = #tpu.pipeline_mode<synchronous>, transform_indices = @transform_47, window_bounds = array<i64: 1, 32>}, {pipeline_mode = #tpu.pipeline_mode<synchronous>, transform_indices = @transform_48, window_bounds = array<i64: 32, 32>}, {pipeline_mode = #tpu.pipeline_mode<synchronous>, transform_indices = @transform_49, window_bounds = array<i64: 1, 32>}, {pipeline_mode = #tpu.pipeline_mode<synchronous>, transform_indices = @transform_50, window_bounds = array<i64: 32, 32>}, {pipeline_mode = #tpu.pipeline_mode<synchronous>, transform_indices = @transform_51, window_bounds = array<i64: 1, 32>}, {pipeline_mode = #tpu.pipeline_mode<synchronous>, transform_indices = @transform_52, window_bounds = array<i64: 32, 32>}, {pipeline_mode = #tpu.pipeline_mode<synchronous>, transform_indices = @transform_53, window_bounds = array<i64: 1, 32>}, {transform_indices = @transform_54, window_bounds = array<i64: 1, 8, 32>}]} {
    %c0 = arith.constant 0 : index
    %c0_0 = arith.constant 0 : index
    %c0_1 = arith.constant 0 : index
    %0 = vector.load %arg1[%c0, %c0_0, %c0_1] : memref<1x16x4xf32, #tpu.memory_space<vmem>>, vector<1x16x4xf32>
    %1 = vector.shape_cast %0 : vector<1x16x4xf32> to vector<16x4xf32>
    %c0_2 = arith.constant 0 : index
    %c0_3 = arith.constant 0 : index
    %2 = vector.load %arg2[%c0_2, %c0_3] : memref<16x32xf32, #tpu.memory_space<vmem>>, vector<16x32xf32>
    %c0_4 = arith.constant 0 : index
    %c0_5 = arith.constant 0 : index
    %3 = vector.load %arg3[%c0_4, %c0_5] : memref<32x32xf32, #tpu.memory_space<vmem>>, vector<32x32xf32>
    %cst = arith.constant dense<0.000000e+00> : vector<16x32xf32>
    %4 = tpu.matmul %2, %3, %cst {dimension_numbers = #tpu.dot_dimension_numbers<[1], [0], [0], [1], [0, 0, 1, 1], [], []>} : vector<16x32xf32>, vector<32x32xf32>, vector<16x32xf32> -> vector<16x32xf32>
    %c0_6 = arith.constant 0 : index
    %c0_7 = arith.constant 0 : index
    %5 = vector.load %arg4[%c0_6, %c0_7] : memref<1x32xf32, #tpu.memory_space<vmem>>, vector<1x32xf32>
    %6 = vector.broadcast %5 : vector<1x32xf32> to vector<16x32xf32>
    %7 = arith.addf %4, %6 : vector<16x32xf32>
    %c0_8 = arith.constant 0 : index
    %c0_9 = arith.constant 0 : index
    %8 = vector.load %arg5[%c0_8, %c0_9] : memref<4x32xf32, #tpu.memory_space<vmem>>, vector<4x32xf32>
    %cst_10 = arith.constant dense<0.000000e+00> : vector<16x32xf32>
    %9 = tpu.matmul %1, %8, %cst_10 {dimension_numbers = #tpu.dot_dimension_numbers<[1], [0], [0], [1], [0, 0, 1, 1], [], []>} : vector<16x4xf32>, vector<4x32xf32>, vector<16x32xf32> -> vector<16x32xf32>
    %c0_11 = arith.constant 0 : index
    %c0_12 = arith.constant 0 : index
    %10 = vector.load %arg6[%c0_11, %c0_12] : memref<1x32xf32, #tpu.memory_space<vmem>>, vector<1x32xf32>
    %11 = vector.broadcast %10 : vector<1x32xf32> to vector<16x32xf32>
    %12 = arith.addf %9, %11 : vector<16x32xf32>
    %c0_13 = arith.constant 0 : index
    %c0_14 = arith.constant 0 : index
    %13 = vector.load %arg7[%c0_13, %c0_14] : memref<4x32xf32, #tpu.memory_space<vmem>>, vector<4x32xf32>
    %cst_15 = arith.constant dense<0.000000e+00> : vector<16x32xf32>
    %14 = tpu.matmul %1, %13, %cst_15 {dimension_numbers = #tpu.dot_dimension_numbers<[1], [0], [0], [1], [0, 0, 1, 1], [], []>} : vector<16x4xf32>, vector<4x32xf32>, vector<16x32xf32> -> vector<16x32xf32>
    %c0_16 = arith.constant 0 : index
    %c0_17 = arith.constant 0 : index
    %15 = vector.load %arg8[%c0_16, %c0_17] : memref<1x32xf32, #tpu.memory_space<vmem>>, vector<1x32xf32>
    %16 = vector.broadcast %15 : vector<1x32xf32> to vector<16x32xf32>
    %17 = arith.addf %14, %16 : vector<16x32xf32>
    %18 = vector.extract_strided_slice %7 {offsets = [0, 0], sizes = [16, 8], strides = [1, 1]} : vector<16x32xf32> to vector<16x8xf32>
    %19 = vector.extract_strided_slice %12 {offsets = [0, 0], sizes = [16, 8], strides = [1, 1]} : vector<16x32xf32> to vector<16x8xf32>
    %20 = vector.extract_strided_slice %17 {offsets = [0, 0], sizes = [16, 8], strides = [1, 1]} : vector<16x32xf32> to vector<16x8xf32>
    %21 = tpu.transpose %19, [1, 0] : vector<16x8xf32> -> vector<8x16xf32>
    %cst_18 = arith.constant dense<0.000000e+00> : vector<16x16xf32>
    %22 = tpu.matmul %18, %21, %cst_18 {dimension_numbers = #tpu.dot_dimension_numbers<[1], [0], [0], [1], [0, 0, 1, 1], [], []>} : vector<16x8xf32>, vector<8x16xf32>, vector<16x16xf32> -> vector<16x16xf32>
    %cst_19 = arith.constant dense<0xFF800000> : vector<16xf32>
    %23 = vector.multi_reduction <maximumf>, %22, %cst_19 [1] : vector<16x16xf32> to vector<16xf32>
    %24 = vector.shape_cast %23 : vector<16xf32> to vector<16x1xf32>
    %25 = vector.broadcast %24 : vector<16x1xf32> to vector<16x16xf32>
    %26 = arith.subf %22, %25 : vector<16x16xf32>
    %27 = math.exp %26 : vector<16x16xf32>
    %cst_20 = arith.constant dense<0.000000e+00> : vector<16xf32>
    %28 = vector.multi_reduction <add>, %27, %cst_20 [1] : vector<16x16xf32> to vector<16xf32>
    %29 = vector.shape_cast %28 : vector<16xf32> to vector<16x1xf32>
    %30 = tpu.reciprocal %29 {approx = true} : vector<16x1xf32> -> vector<16x1xf32>
    %31 = vector.broadcast %30 : vector<16x1xf32> to vector<16x16xf32>
    %32 = arith.mulf %27, %31 : vector<16x16xf32>
    %cst_21 = arith.constant dense<0.000000e+00> : vector<16x8xf32>
    %33 = tpu.matmul %32, %20, %cst_21 {dimension_numbers = #tpu.dot_dimension_numbers<[1], [0], [0], [1], [0, 0, 1, 1], [], []>} : vector<16x16xf32>, vector<16x8xf32>, vector<16x8xf32> -> vector<16x8xf32>
    %34 = arith.addf %18, %33 : vector<16x8xf32>
    %35 = vector.extract_strided_slice %7 {offsets = [0, 8], sizes = [16, 8], strides = [1, 1]} : vector<16x32xf32> to vector<16x8xf32>
    %36 = vector.extract_strided_slice %12 {offsets = [0, 8], sizes = [16, 8], strides = [1, 1]} : vector<16x32xf32> to vector<16x8xf32>
    %37 = vector.extract_strided_slice %17 {offsets = [0, 8], sizes = [16, 8], strides = [1, 1]} : vector<16x32xf32> to vector<16x8xf32>
    %38 = tpu.transpose %36, [1, 0] : vector<16x8xf32> -> vector<8x16xf32>
    %cst_22 = arith.constant dense<0.000000e+00> : vector<16x16xf32>
    %39 = tpu.matmul %35, %38, %cst_22 {dimension_numbers = #tpu.dot_dimension_numbers<[1], [0], [0], [1], [0, 0, 1, 1], [], []>} : vector<16x8xf32>, vector<8x16xf32>, vector<16x16xf32> -> vector<16x16xf32>
    %cst_23 = arith.constant dense<0xFF800000> : vector<16xf32>
    %40 = vector.multi_reduction <maximumf>, %39, %cst_23 [1] : vector<16x16xf32> to vector<16xf32>
    %41 = vector.shape_cast %40 : vector<16xf32> to vector<16x1xf32>
    %42 = vector.broadcast %41 : vector<16x1xf32> to vector<16x16xf32>
    %43 = arith.subf %39, %42 : vector<16x16xf32>
    %44 = math.exp %43 : vector<16x16xf32>
    %cst_24 = arith.constant dense<0.000000e+00> : vector<16xf32>
    %45 = vector.multi_reduction <add>, %44, %cst_24 [1] : vector<16x16xf32> to vector<16xf32>
    %46 = vector.shape_cast %45 : vector<16xf32> to vector<16x1xf32>
    %47 = tpu.reciprocal %46 {approx = true} : vector<16x1xf32> -> vector<16x1xf32>
    %48 = vector.broadcast %47 : vector<16x1xf32> to vector<16x16xf32>
    %49 = arith.mulf %44, %48 : vector<16x16xf32>
    %cst_25 = arith.constant dense<0.000000e+00> : vector<16x8xf32>
    %50 = tpu.matmul %49, %37, %cst_25 {dimension_numbers = #tpu.dot_dimension_numbers<[1], [0], [0], [1], [0, 0, 1, 1], [], []>} : vector<16x16xf32>, vector<16x8xf32>, vector<16x8xf32> -> vector<16x8xf32>
    %51 = arith.addf %35, %50 : vector<16x8xf32>
    %52 = vector.extract_strided_slice %7 {offsets = [0, 16], sizes = [16, 8], strides = [1, 1]} : vector<16x32xf32> to vector<16x8xf32>
    %53 = vector.extract_strided_slice %12 {offsets = [0, 16], sizes = [16, 8], strides = [1, 1]} : vector<16x32xf32> to vector<16x8xf32>
    %54 = vector.extract_strided_slice %17 {offsets = [0, 16], sizes = [16, 8], strides = [1, 1]} : vector<16x32xf32> to vector<16x8xf32>
    %55 = tpu.transpose %53, [1, 0] : vector<16x8xf32> -> vector<8x16xf32>
    %cst_26 = arith.constant dense<0.000000e+00> : vector<16x16xf32>
    %56 = tpu.matmul %52, %55, %cst_26 {dimension_numbers = #tpu.dot_dimension_numbers<[1], [0], [0], [1], [0, 0, 1, 1], [], []>} : vector<16x8xf32>, vector<8x16xf32>, vector<16x16xf32> -> vector<16x16xf32>
    %cst_27 = arith.constant dense<0xFF800000> : vector<16xf32>
    %57 = vector.multi_reduction <maximumf>, %56, %cst_27 [1] : vector<16x16xf32> to vector<16xf32>
    %58 = vector.shape_cast %57 : vector<16xf32> to vector<16x1xf32>
    %59 = vector.broadcast %58 : vector<16x1xf32> to vector<16x16xf32>
    %60 = arith.subf %56, %59 : vector<16x16xf32>
    %61 = math.exp %60 : vector<16x16xf32>
    %cst_28 = arith.constant dense<0.000000e+00> : vector<16xf32>
    %62 = vector.multi_reduction <add>, %61, %cst_28 [1] : vector<16x16xf32> to vector<16xf32>
    %63 = vector.shape_cast %62 : vector<16xf32> to vector<16x1xf32>
    %64 = tpu.reciprocal %63 {approx = true} : vector<16x1xf32> -> vector<16x1xf32>
    %65 = vector.broadcast %64 : vector<16x1xf32> to vector<16x16xf32>
    %66 = arith.mulf %61, %65 : vector<16x16xf32>
    %cst_29 = arith.constant dense<0.000000e+00> : vector<16x8xf32>
    %67 = tpu.matmul %66, %54, %cst_29 {dimension_numbers = #tpu.dot_dimension_numbers<[1], [0], [0], [1], [0, 0, 1, 1], [], []>} : vector<16x16xf32>, vector<16x8xf32>, vector<16x8xf32> -> vector<16x8xf32>
    %68 = arith.addf %52, %67 : vector<16x8xf32>
    %69 = vector.extract_strided_slice %7 {offsets = [0, 24], sizes = [16, 8], strides = [1, 1]} : vector<16x32xf32> to vector<16x8xf32>
    %70 = vector.extract_strided_slice %12 {offsets = [0, 24], sizes = [16, 8], strides = [1, 1]} : vector<16x32xf32> to vector<16x8xf32>
    %71 = vector.extract_strided_slice %17 {offsets = [0, 24], sizes = [16, 8], strides = [1, 1]} : vector<16x32xf32> to vector<16x8xf32>
    %72 = tpu.transpose %70, [1, 0] : vector<16x8xf32> -> vector<8x16xf32>
    %cst_30 = arith.constant dense<0.000000e+00> : vector<16x16xf32>
    %73 = tpu.matmul %69, %72, %cst_30 {dimension_numbers = #tpu.dot_dimension_numbers<[1], [0], [0], [1], [0, 0, 1, 1], [], []>} : vector<16x8xf32>, vector<8x16xf32>, vector<16x16xf32> -> vector<16x16xf32>
    %cst_31 = arith.constant dense<0xFF800000> : vector<16xf32>
    %74 = vector.multi_reduction <maximumf>, %73, %cst_31 [1] : vector<16x16xf32> to vector<16xf32>
    %75 = vector.shape_cast %74 : vector<16xf32> to vector<16x1xf32>
    %76 = vector.broadcast %75 : vector<16x1xf32> to vector<16x16xf32>
    %77 = arith.subf %73, %76 : vector<16x16xf32>
    %78 = math.exp %77 : vector<16x16xf32>
    %cst_32 = arith.constant dense<0.000000e+00> : vector<16xf32>
    %79 = vector.multi_reduction <add>, %78, %cst_32 [1] : vector<16x16xf32> to vector<16xf32>
    %80 = vector.shape_cast %79 : vector<16xf32> to vector<16x1xf32>
    %81 = tpu.reciprocal %80 {approx = true} : vector<16x1xf32> -> vector<16x1xf32>
    %82 = vector.broadcast %81 : vector<16x1xf32> to vector<16x16xf32>
    %83 = arith.mulf %78, %82 : vector<16x16xf32>
    %cst_33 = arith.constant dense<0.000000e+00> : vector<16x8xf32>
    %84 = tpu.matmul %83, %71, %cst_33 {dimension_numbers = #tpu.dot_dimension_numbers<[1], [0], [0], [1], [0, 0, 1, 1], [], []>} : vector<16x16xf32>, vector<16x8xf32>, vector<16x8xf32> -> vector<16x8xf32>
    %85 = arith.addf %69, %84 : vector<16x8xf32>
    %86 = tpu.concatenate %34, %51, %68, %85 in 1 : vector<16x8xf32>, vector<16x8xf32>, vector<16x8xf32>, vector<16x8xf32> -> vector<16x32xf32>
    %c0_34 = arith.constant 0 : index
    %c0_35 = arith.constant 0 : index
    %87 = vector.load %arg9[%c0_34, %c0_35] : memref<32x32xf32, #tpu.memory_space<vmem>>, vector<32x32xf32>
    %cst_36 = arith.constant dense<0.000000e+00> : vector<16x32xf32>
    %88 = tpu.matmul %86, %87, %cst_36 {dimension_numbers = #tpu.dot_dimension_numbers<[1], [0], [0], [1], [0, 0, 1, 1], [], []>} : vector<16x32xf32>, vector<32x32xf32>, vector<16x32xf32> -> vector<16x32xf32>
    %c0_37 = arith.constant 0 : index
    %c0_38 = arith.constant 0 : index
    %89 = vector.load %arg10[%c0_37, %c0_38] : memref<1x32xf32, #tpu.memory_space<vmem>>, vector<1x32xf32>
    %90 = vector.broadcast %89 : vector<1x32xf32> to vector<16x32xf32>
    %91 = arith.addf %88, %90 : vector<16x32xf32>
    %cst_39 = arith.constant 0.000000e+00 : f32
    %92 = vector.broadcast %cst_39 : f32 to vector<16x32xf32>
    %93 = arith.maximumf %91, %92 : vector<16x32xf32>
    %94 = arith.addf %86, %93 : vector<16x32xf32>
    %c0_40 = arith.constant 0 : index
    %c0_41 = arith.constant 0 : index
    %95 = vector.load %arg11[%c0_40, %c0_41] : memref<4x32xf32, #tpu.memory_space<vmem>>, vector<4x32xf32>
    %cst_42 = arith.constant dense<0.000000e+00> : vector<16x32xf32>
    %96 = tpu.matmul %1, %95, %cst_42 {dimension_numbers = #tpu.dot_dimension_numbers<[1], [0], [0], [1], [0, 0, 1, 1], [], []>} : vector<16x4xf32>, vector<4x32xf32>, vector<16x32xf32> -> vector<16x32xf32>
    %c0_43 = arith.constant 0 : index
    %c0_44 = arith.constant 0 : index
    %97 = vector.load %arg12[%c0_43, %c0_44] : memref<1x32xf32, #tpu.memory_space<vmem>>, vector<1x32xf32>
    %98 = vector.broadcast %97 : vector<1x32xf32> to vector<16x32xf32>
    %99 = arith.addf %96, %98 : vector<16x32xf32>
    %c0_45 = arith.constant 0 : index
    %c0_46 = arith.constant 0 : index
    %100 = vector.load %arg13[%c0_45, %c0_46] : memref<32x32xf32, #tpu.memory_space<vmem>>, vector<32x32xf32>
    %cst_47 = arith.constant dense<0.000000e+00> : vector<16x32xf32>
    %101 = tpu.matmul %94, %100, %cst_47 {dimension_numbers = #tpu.dot_dimension_numbers<[1], [0], [0], [1], [0, 0, 1, 1], [], []>} : vector<16x32xf32>, vector<32x32xf32>, vector<16x32xf32> -> vector<16x32xf32>
    %c0_48 = arith.constant 0 : index
    %c0_49 = arith.constant 0 : index
    %102 = vector.load %arg14[%c0_48, %c0_49] : memref<1x32xf32, #tpu.memory_space<vmem>>, vector<1x32xf32>
    %103 = vector.broadcast %102 : vector<1x32xf32> to vector<16x32xf32>
    %104 = arith.addf %101, %103 : vector<16x32xf32>
    %c0_50 = arith.constant 0 : index
    %c0_51 = arith.constant 0 : index
    %105 = vector.load %arg15[%c0_50, %c0_51] : memref<32x32xf32, #tpu.memory_space<vmem>>, vector<32x32xf32>
    %cst_52 = arith.constant dense<0.000000e+00> : vector<16x32xf32>
    %106 = tpu.matmul %94, %105, %cst_52 {dimension_numbers = #tpu.dot_dimension_numbers<[1], [0], [0], [1], [0, 0, 1, 1], [], []>} : vector<16x32xf32>, vector<32x32xf32>, vector<16x32xf32> -> vector<16x32xf32>
    %c0_53 = arith.constant 0 : index
    %c0_54 = arith.constant 0 : index
    %107 = vector.load %arg16[%c0_53, %c0_54] : memref<1x32xf32, #tpu.memory_space<vmem>>, vector<1x32xf32>
    %108 = vector.broadcast %107 : vector<1x32xf32> to vector<16x32xf32>
    %109 = arith.addf %106, %108 : vector<16x32xf32>
    %110 = vector.extract_strided_slice %99 {offsets = [0, 0], sizes = [16, 8], strides = [1, 1]} : vector<16x32xf32> to vector<16x8xf32>
    %111 = vector.extract_strided_slice %104 {offsets = [0, 0], sizes = [16, 8], strides = [1, 1]} : vector<16x32xf32> to vector<16x8xf32>
    %112 = vector.extract_strided_slice %109 {offsets = [0, 0], sizes = [16, 8], strides = [1, 1]} : vector<16x32xf32> to vector<16x8xf32>
    %113 = tpu.transpose %111, [1, 0] : vector<16x8xf32> -> vector<8x16xf32>
    %cst_55 = arith.constant dense<0.000000e+00> : vector<16x16xf32>
    %114 = tpu.matmul %110, %113, %cst_55 {dimension_numbers = #tpu.dot_dimension_numbers<[1], [0], [0], [1], [0, 0, 1, 1], [], []>} : vector<16x8xf32>, vector<8x16xf32>, vector<16x16xf32> -> vector<16x16xf32>
    %cst_56 = arith.constant dense<0xFF800000> : vector<16xf32>
    %115 = vector.multi_reduction <maximumf>, %114, %cst_56 [1] : vector<16x16xf32> to vector<16xf32>
    %116 = vector.shape_cast %115 : vector<16xf32> to vector<16x1xf32>
    %117 = vector.broadcast %116 : vector<16x1xf32> to vector<16x16xf32>
    %118 = arith.subf %114, %117 : vector<16x16xf32>
    %119 = math.exp %118 : vector<16x16xf32>
    %cst_57 = arith.constant dense<0.000000e+00> : vector<16xf32>
    %120 = vector.multi_reduction <add>, %119, %cst_57 [1] : vector<16x16xf32> to vector<16xf32>
    %121 = vector.shape_cast %120 : vector<16xf32> to vector<16x1xf32>
    %122 = tpu.reciprocal %121 {approx = true} : vector<16x1xf32> -> vector<16x1xf32>
    %123 = vector.broadcast %122 : vector<16x1xf32> to vector<16x16xf32>
    %124 = arith.mulf %119, %123 : vector<16x16xf32>
    %cst_58 = arith.constant dense<0.000000e+00> : vector<16x8xf32>
    %125 = tpu.matmul %124, %112, %cst_58 {dimension_numbers = #tpu.dot_dimension_numbers<[1], [0], [0], [1], [0, 0, 1, 1], [], []>} : vector<16x16xf32>, vector<16x8xf32>, vector<16x8xf32> -> vector<16x8xf32>
    %126 = arith.addf %110, %125 : vector<16x8xf32>
    %127 = vector.extract_strided_slice %99 {offsets = [0, 8], sizes = [16, 8], strides = [1, 1]} : vector<16x32xf32> to vector<16x8xf32>
    %128 = vector.extract_strided_slice %104 {offsets = [0, 8], sizes = [16, 8], strides = [1, 1]} : vector<16x32xf32> to vector<16x8xf32>
    %129 = vector.extract_strided_slice %109 {offsets = [0, 8], sizes = [16, 8], strides = [1, 1]} : vector<16x32xf32> to vector<16x8xf32>
    %130 = tpu.transpose %128, [1, 0] : vector<16x8xf32> -> vector<8x16xf32>
    %cst_59 = arith.constant dense<0.000000e+00> : vector<16x16xf32>
    %131 = tpu.matmul %127, %130, %cst_59 {dimension_numbers = #tpu.dot_dimension_numbers<[1], [0], [0], [1], [0, 0, 1, 1], [], []>} : vector<16x8xf32>, vector<8x16xf32>, vector<16x16xf32> -> vector<16x16xf32>
    %cst_60 = arith.constant dense<0xFF800000> : vector<16xf32>
    %132 = vector.multi_reduction <maximumf>, %131, %cst_60 [1] : vector<16x16xf32> to vector<16xf32>
    %133 = vector.shape_cast %132 : vector<16xf32> to vector<16x1xf32>
    %134 = vector.broadcast %133 : vector<16x1xf32> to vector<16x16xf32>
    %135 = arith.subf %131, %134 : vector<16x16xf32>
    %136 = math.exp %135 : vector<16x16xf32>
    %cst_61 = arith.constant dense<0.000000e+00> : vector<16xf32>
    %137 = vector.multi_reduction <add>, %136, %cst_61 [1] : vector<16x16xf32> to vector<16xf32>
    %138 = vector.shape_cast %137 : vector<16xf32> to vector<16x1xf32>
    %139 = tpu.reciprocal %138 {approx = true} : vector<16x1xf32> -> vector<16x1xf32>
    %140 = vector.broadcast %139 : vector<16x1xf32> to vector<16x16xf32>
    %141 = arith.mulf %136, %140 : vector<16x16xf32>
    %cst_62 = arith.constant dense<0.000000e+00> : vector<16x8xf32>
    %142 = tpu.matmul %141, %129, %cst_62 {dimension_numbers = #tpu.dot_dimension_numbers<[1], [0], [0], [1], [0, 0, 1, 1], [], []>} : vector<16x16xf32>, vector<16x8xf32>, vector<16x8xf32> -> vector<16x8xf32>
    %143 = arith.addf %127, %142 : vector<16x8xf32>
    %144 = vector.extract_strided_slice %99 {offsets = [0, 16], sizes = [16, 8], strides = [1, 1]} : vector<16x32xf32> to vector<16x8xf32>
    %145 = vector.extract_strided_slice %104 {offsets = [0, 16], sizes = [16, 8], strides = [1, 1]} : vector<16x32xf32> to vector<16x8xf32>
    %146 = vector.extract_strided_slice %109 {offsets = [0, 16], sizes = [16, 8], strides = [1, 1]} : vector<16x32xf32> to vector<16x8xf32>
    %147 = tpu.transpose %145, [1, 0] : vector<16x8xf32> -> vector<8x16xf32>
    %cst_63 = arith.constant dense<0.000000e+00> : vector<16x16xf32>
    %148 = tpu.matmul %144, %147, %cst_63 {dimension_numbers = #tpu.dot_dimension_numbers<[1], [0], [0], [1], [0, 0, 1, 1], [], []>} : vector<16x8xf32>, vector<8x16xf32>, vector<16x16xf32> -> vector<16x16xf32>
    %cst_64 = arith.constant dense<0xFF800000> : vector<16xf32>
    %149 = vector.multi_reduction <maximumf>, %148, %cst_64 [1] : vector<16x16xf32> to vector<16xf32>
    %150 = vector.shape_cast %149 : vector<16xf32> to vector<16x1xf32>
    %151 = vector.broadcast %150 : vector<16x1xf32> to vector<16x16xf32>
    %152 = arith.subf %148, %151 : vector<16x16xf32>
    %153 = math.exp %152 : vector<16x16xf32>
    %cst_65 = arith.constant dense<0.000000e+00> : vector<16xf32>
    %154 = vector.multi_reduction <add>, %153, %cst_65 [1] : vector<16x16xf32> to vector<16xf32>
    %155 = vector.shape_cast %154 : vector<16xf32> to vector<16x1xf32>
    %156 = tpu.reciprocal %155 {approx = true} : vector<16x1xf32> -> vector<16x1xf32>
    %157 = vector.broadcast %156 : vector<16x1xf32> to vector<16x16xf32>
    %158 = arith.mulf %153, %157 : vector<16x16xf32>
    %cst_66 = arith.constant dense<0.000000e+00> : vector<16x8xf32>
    %159 = tpu.matmul %158, %146, %cst_66 {dimension_numbers = #tpu.dot_dimension_numbers<[1], [0], [0], [1], [0, 0, 1, 1], [], []>} : vector<16x16xf32>, vector<16x8xf32>, vector<16x8xf32> -> vector<16x8xf32>
    %160 = arith.addf %144, %159 : vector<16x8xf32>
    %161 = vector.extract_strided_slice %99 {offsets = [0, 24], sizes = [16, 8], strides = [1, 1]} : vector<16x32xf32> to vector<16x8xf32>
    %162 = vector.extract_strided_slice %104 {offsets = [0, 24], sizes = [16, 8], strides = [1, 1]} : vector<16x32xf32> to vector<16x8xf32>
    %163 = vector.extract_strided_slice %109 {offsets = [0, 24], sizes = [16, 8], strides = [1, 1]} : vector<16x32xf32> to vector<16x8xf32>
    %164 = tpu.transpose %162, [1, 0] : vector<16x8xf32> -> vector<8x16xf32>
    %cst_67 = arith.constant dense<0.000000e+00> : vector<16x16xf32>
    %165 = tpu.matmul %161, %164, %cst_67 {dimension_numbers = #tpu.dot_dimension_numbers<[1], [0], [0], [1], [0, 0, 1, 1], [], []>} : vector<16x8xf32>, vector<8x16xf32>, vector<16x16xf32> -> vector<16x16xf32>
    %cst_68 = arith.constant dense<0xFF800000> : vector<16xf32>
    %166 = vector.multi_reduction <maximumf>, %165, %cst_68 [1] : vector<16x16xf32> to vector<16xf32>
    %167 = vector.shape_cast %166 : vector<16xf32> to vector<16x1xf32>
    %168 = vector.broadcast %167 : vector<16x1xf32> to vector<16x16xf32>
    %169 = arith.subf %165, %168 : vector<16x16xf32>
    %170 = math.exp %169 : vector<16x16xf32>
    %cst_69 = arith.constant dense<0.000000e+00> : vector<16xf32>
    %171 = vector.multi_reduction <add>, %170, %cst_69 [1] : vector<16x16xf32> to vector<16xf32>
    %172 = vector.shape_cast %171 : vector<16xf32> to vector<16x1xf32>
    %173 = tpu.reciprocal %172 {approx = true} : vector<16x1xf32> -> vector<16x1xf32>
    %174 = vector.broadcast %173 : vector<16x1xf32> to vector<16x16xf32>
    %175 = arith.mulf %170, %174 : vector<16x16xf32>
    %cst_70 = arith.constant dense<0.000000e+00> : vector<16x8xf32>
    %176 = tpu.matmul %175, %163, %cst_70 {dimension_numbers = #tpu.dot_dimension_numbers<[1], [0], [0], [1], [0, 0, 1, 1], [], []>} : vector<16x16xf32>, vector<16x8xf32>, vector<16x8xf32> -> vector<16x8xf32>
    %177 = arith.addf %161, %176 : vector<16x8xf32>
    %178 = tpu.concatenate %126, %143, %160, %177 in 1 : vector<16x8xf32>, vector<16x8xf32>, vector<16x8xf32>, vector<16x8xf32> -> vector<16x32xf32>
    %c0_71 = arith.constant 0 : index
    %c0_72 = arith.constant 0 : index
    %179 = vector.load %arg17[%c0_71, %c0_72] : memref<32x32xf32, #tpu.memory_space<vmem>>, vector<32x32xf32>
    %cst_73 = arith.constant dense<0.000000e+00> : vector<16x32xf32>
    %180 = tpu.matmul %178, %179, %cst_73 {dimension_numbers = #tpu.dot_dimension_numbers<[1], [0], [0], [1], [0, 0, 1, 1], [], []>} : vector<16x32xf32>, vector<32x32xf32>, vector<16x32xf32> -> vector<16x32xf32>
    %c0_74 = arith.constant 0 : index
    %c0_75 = arith.constant 0 : index
    %181 = vector.load %arg18[%c0_74, %c0_75] : memref<1x32xf32, #tpu.memory_space<vmem>>, vector<1x32xf32>
    %182 = vector.broadcast %181 : vector<1x32xf32> to vector<16x32xf32>
    %183 = arith.addf %180, %182 : vector<16x32xf32>
    %cst_76 = arith.constant 0.000000e+00 : f32
    %184 = vector.broadcast %cst_76 : f32 to vector<16x32xf32>
    %185 = arith.maximumf %183, %184 : vector<16x32xf32>
    %186 = arith.addf %178, %185 : vector<16x32xf32>
    %c0_77 = arith.constant 0 : index
    %c0_78 = arith.constant 0 : index
    %187 = vector.load %arg19[%c0_77, %c0_78] : memref<16x32xf32, #tpu.memory_space<vmem>>, vector<16x32xf32>
    %c0_79 = arith.constant 0 : index
    %c0_80 = arith.constant 0 : index
    %188 = vector.load %arg20[%c0_79, %c0_80] : memref<32x32xf32, #tpu.memory_space<vmem>>, vector<32x32xf32>
    %cst_81 = arith.constant dense<0.000000e+00> : vector<16x32xf32>
    %189 = tpu.matmul %187, %188, %cst_81 {dimension_numbers = #tpu.dot_dimension_numbers<[1], [0], [0], [1], [0, 0, 1, 1], [], []>} : vector<16x32xf32>, vector<32x32xf32>, vector<16x32xf32> -> vector<16x32xf32>
    %c0_82 = arith.constant 0 : index
    %c0_83 = arith.constant 0 : index
    %190 = vector.load %arg21[%c0_82, %c0_83] : memref<1x32xf32, #tpu.memory_space<vmem>>, vector<1x32xf32>
    %191 = vector.broadcast %190 : vector<1x32xf32> to vector<16x32xf32>
    %192 = arith.addf %189, %191 : vector<16x32xf32>
    %c0_84 = arith.constant 0 : index
    %c0_85 = arith.constant 0 : index
    %193 = vector.load %arg22[%c0_84, %c0_85] : memref<32x32xf32, #tpu.memory_space<vmem>>, vector<32x32xf32>
    %cst_86 = arith.constant dense<0.000000e+00> : vector<16x32xf32>
    %194 = tpu.matmul %186, %193, %cst_86 {dimension_numbers = #tpu.dot_dimension_numbers<[1], [0], [0], [1], [0, 0, 1, 1], [], []>} : vector<16x32xf32>, vector<32x32xf32>, vector<16x32xf32> -> vector<16x32xf32>
    %c0_87 = arith.constant 0 : index
    %c0_88 = arith.constant 0 : index
    %195 = vector.load %arg23[%c0_87, %c0_88] : memref<1x32xf32, #tpu.memory_space<vmem>>, vector<1x32xf32>
    %196 = vector.broadcast %195 : vector<1x32xf32> to vector<16x32xf32>
    %197 = arith.addf %194, %196 : vector<16x32xf32>
    %c0_89 = arith.constant 0 : index
    %c0_90 = arith.constant 0 : index
    %198 = vector.load %arg24[%c0_89, %c0_90] : memref<32x32xf32, #tpu.memory_space<vmem>>, vector<32x32xf32>
    %cst_91 = arith.constant dense<0.000000e+00> : vector<16x32xf32>
    %199 = tpu.matmul %186, %198, %cst_91 {dimension_numbers = #tpu.dot_dimension_numbers<[1], [0], [0], [1], [0, 0, 1, 1], [], []>} : vector<16x32xf32>, vector<32x32xf32>, vector<16x32xf32> -> vector<16x32xf32>
    %c0_92 = arith.constant 0 : index
    %c0_93 = arith.constant 0 : index
    %200 = vector.load %arg25[%c0_92, %c0_93] : memref<1x32xf32, #tpu.memory_space<vmem>>, vector<1x32xf32>
    %201 = vector.broadcast %200 : vector<1x32xf32> to vector<16x32xf32>
    %202 = arith.addf %199, %201 : vector<16x32xf32>
    %203 = vector.extract_strided_slice %192 {offsets = [0, 0], sizes = [16, 8], strides = [1, 1]} : vector<16x32xf32> to vector<16x8xf32>
    %204 = vector.extract_strided_slice %197 {offsets = [0, 0], sizes = [16, 8], strides = [1, 1]} : vector<16x32xf32> to vector<16x8xf32>
    %205 = vector.extract_strided_slice %202 {offsets = [0, 0], sizes = [16, 8], strides = [1, 1]} : vector<16x32xf32> to vector<16x8xf32>
    %206 = tpu.transpose %204, [1, 0] : vector<16x8xf32> -> vector<8x16xf32>
    %cst_94 = arith.constant dense<0.000000e+00> : vector<16x16xf32>
    %207 = tpu.matmul %203, %206, %cst_94 {dimension_numbers = #tpu.dot_dimension_numbers<[1], [0], [0], [1], [0, 0, 1, 1], [], []>} : vector<16x8xf32>, vector<8x16xf32>, vector<16x16xf32> -> vector<16x16xf32>
    %cst_95 = arith.constant dense<0xFF800000> : vector<16xf32>
    %208 = vector.multi_reduction <maximumf>, %207, %cst_95 [1] : vector<16x16xf32> to vector<16xf32>
    %209 = vector.shape_cast %208 : vector<16xf32> to vector<16x1xf32>
    %210 = vector.broadcast %209 : vector<16x1xf32> to vector<16x16xf32>
    %211 = arith.subf %207, %210 : vector<16x16xf32>
    %212 = math.exp %211 : vector<16x16xf32>
    %cst_96 = arith.constant dense<0.000000e+00> : vector<16xf32>
    %213 = vector.multi_reduction <add>, %212, %cst_96 [1] : vector<16x16xf32> to vector<16xf32>
    %214 = vector.shape_cast %213 : vector<16xf32> to vector<16x1xf32>
    %215 = tpu.reciprocal %214 {approx = true} : vector<16x1xf32> -> vector<16x1xf32>
    %216 = vector.broadcast %215 : vector<16x1xf32> to vector<16x16xf32>
    %217 = arith.mulf %212, %216 : vector<16x16xf32>
    %cst_97 = arith.constant dense<0.000000e+00> : vector<16x8xf32>
    %218 = tpu.matmul %217, %205, %cst_97 {dimension_numbers = #tpu.dot_dimension_numbers<[1], [0], [0], [1], [0, 0, 1, 1], [], []>} : vector<16x16xf32>, vector<16x8xf32>, vector<16x8xf32> -> vector<16x8xf32>
    %219 = arith.addf %203, %218 : vector<16x8xf32>
    %220 = vector.extract_strided_slice %192 {offsets = [0, 8], sizes = [16, 8], strides = [1, 1]} : vector<16x32xf32> to vector<16x8xf32>
    %221 = vector.extract_strided_slice %197 {offsets = [0, 8], sizes = [16, 8], strides = [1, 1]} : vector<16x32xf32> to vector<16x8xf32>
    %222 = vector.extract_strided_slice %202 {offsets = [0, 8], sizes = [16, 8], strides = [1, 1]} : vector<16x32xf32> to vector<16x8xf32>
    %223 = tpu.transpose %221, [1, 0] : vector<16x8xf32> -> vector<8x16xf32>
    %cst_98 = arith.constant dense<0.000000e+00> : vector<16x16xf32>
    %224 = tpu.matmul %220, %223, %cst_98 {dimension_numbers = #tpu.dot_dimension_numbers<[1], [0], [0], [1], [0, 0, 1, 1], [], []>} : vector<16x8xf32>, vector<8x16xf32>, vector<16x16xf32> -> vector<16x16xf32>
    %cst_99 = arith.constant dense<0xFF800000> : vector<16xf32>
    %225 = vector.multi_reduction <maximumf>, %224, %cst_99 [1] : vector<16x16xf32> to vector<16xf32>
    %226 = vector.shape_cast %225 : vector<16xf32> to vector<16x1xf32>
    %227 = vector.broadcast %226 : vector<16x1xf32> to vector<16x16xf32>
    %228 = arith.subf %224, %227 : vector<16x16xf32>
    %229 = math.exp %228 : vector<16x16xf32>
    %cst_100 = arith.constant dense<0.000000e+00> : vector<16xf32>
    %230 = vector.multi_reduction <add>, %229, %cst_100 [1] : vector<16x16xf32> to vector<16xf32>
    %231 = vector.shape_cast %230 : vector<16xf32> to vector<16x1xf32>
    %232 = tpu.reciprocal %231 {approx = true} : vector<16x1xf32> -> vector<16x1xf32>
    %233 = vector.broadcast %232 : vector<16x1xf32> to vector<16x16xf32>
    %234 = arith.mulf %229, %233 : vector<16x16xf32>
    %cst_101 = arith.constant dense<0.000000e+00> : vector<16x8xf32>
    %235 = tpu.matmul %234, %222, %cst_101 {dimension_numbers = #tpu.dot_dimension_numbers<[1], [0], [0], [1], [0, 0, 1, 1], [], []>} : vector<16x16xf32>, vector<16x8xf32>, vector<16x8xf32> -> vector<16x8xf32>
    %236 = arith.addf %220, %235 : vector<16x8xf32>
    %237 = vector.extract_strided_slice %192 {offsets = [0, 16], sizes = [16, 8], strides = [1, 1]} : vector<16x32xf32> to vector<16x8xf32>
    %238 = vector.extract_strided_slice %197 {offsets = [0, 16], sizes = [16, 8], strides = [1, 1]} : vector<16x32xf32> to vector<16x8xf32>
    %239 = vector.extract_strided_slice %202 {offsets = [0, 16], sizes = [16, 8], strides = [1, 1]} : vector<16x32xf32> to vector<16x8xf32>
    %240 = tpu.transpose %238, [1, 0] : vector<16x8xf32> -> vector<8x16xf32>
    %cst_102 = arith.constant dense<0.000000e+00> : vector<16x16xf32>
    %241 = tpu.matmul %237, %240, %cst_102 {dimension_numbers = #tpu.dot_dimension_numbers<[1], [0], [0], [1], [0, 0, 1, 1], [], []>} : vector<16x8xf32>, vector<8x16xf32>, vector<16x16xf32> -> vector<16x16xf32>
    %cst_103 = arith.constant dense<0xFF800000> : vector<16xf32>
    %242 = vector.multi_reduction <maximumf>, %241, %cst_103 [1] : vector<16x16xf32> to vector<16xf32>
    %243 = vector.shape_cast %242 : vector<16xf32> to vector<16x1xf32>
    %244 = vector.broadcast %243 : vector<16x1xf32> to vector<16x16xf32>
    %245 = arith.subf %241, %244 : vector<16x16xf32>
    %246 = math.exp %245 : vector<16x16xf32>
    %cst_104 = arith.constant dense<0.000000e+00> : vector<16xf32>
    %247 = vector.multi_reduction <add>, %246, %cst_104 [1] : vector<16x16xf32> to vector<16xf32>
    %248 = vector.shape_cast %247 : vector<16xf32> to vector<16x1xf32>
    %249 = tpu.reciprocal %248 {approx = true} : vector<16x1xf32> -> vector<16x1xf32>
    %250 = vector.broadcast %249 : vector<16x1xf32> to vector<16x16xf32>
    %251 = arith.mulf %246, %250 : vector<16x16xf32>
    %cst_105 = arith.constant dense<0.000000e+00> : vector<16x8xf32>
    %252 = tpu.matmul %251, %239, %cst_105 {dimension_numbers = #tpu.dot_dimension_numbers<[1], [0], [0], [1], [0, 0, 1, 1], [], []>} : vector<16x16xf32>, vector<16x8xf32>, vector<16x8xf32> -> vector<16x8xf32>
    %253 = arith.addf %237, %252 : vector<16x8xf32>
    %254 = vector.extract_strided_slice %192 {offsets = [0, 24], sizes = [16, 8], strides = [1, 1]} : vector<16x32xf32> to vector<16x8xf32>
    %255 = vector.extract_strided_slice %197 {offsets = [0, 24], sizes = [16, 8], strides = [1, 1]} : vector<16x32xf32> to vector<16x8xf32>
    %256 = vector.extract_strided_slice %202 {offsets = [0, 24], sizes = [16, 8], strides = [1, 1]} : vector<16x32xf32> to vector<16x8xf32>
    %257 = tpu.transpose %255, [1, 0] : vector<16x8xf32> -> vector<8x16xf32>
    %cst_106 = arith.constant dense<0.000000e+00> : vector<16x16xf32>
    %258 = tpu.matmul %254, %257, %cst_106 {dimension_numbers = #tpu.dot_dimension_numbers<[1], [0], [0], [1], [0, 0, 1, 1], [], []>} : vector<16x8xf32>, vector<8x16xf32>, vector<16x16xf32> -> vector<16x16xf32>
    %cst_107 = arith.constant dense<0xFF800000> : vector<16xf32>
    %259 = vector.multi_reduction <maximumf>, %258, %cst_107 [1] : vector<16x16xf32> to vector<16xf32>
    %260 = vector.shape_cast %259 : vector<16xf32> to vector<16x1xf32>
    %261 = vector.broadcast %260 : vector<16x1xf32> to vector<16x16xf32>
    %262 = arith.subf %258, %261 : vector<16x16xf32>
    %263 = math.exp %262 : vector<16x16xf32>
    %cst_108 = arith.constant dense<0.000000e+00> : vector<16xf32>
    %264 = vector.multi_reduction <add>, %263, %cst_108 [1] : vector<16x16xf32> to vector<16xf32>
    %265 = vector.shape_cast %264 : vector<16xf32> to vector<16x1xf32>
    %266 = tpu.reciprocal %265 {approx = true} : vector<16x1xf32> -> vector<16x1xf32>
    %267 = vector.broadcast %266 : vector<16x1xf32> to vector<16x16xf32>
    %268 = arith.mulf %263, %267 : vector<16x16xf32>
    %cst_109 = arith.constant dense<0.000000e+00> : vector<16x8xf32>
    %269 = tpu.matmul %268, %256, %cst_109 {dimension_numbers = #tpu.dot_dimension_numbers<[1], [0], [0], [1], [0, 0, 1, 1], [], []>} : vector<16x16xf32>, vector<16x8xf32>, vector<16x8xf32> -> vector<16x8xf32>
    %270 = arith.addf %254, %269 : vector<16x8xf32>
    %271 = tpu.concatenate %219, %236, %253, %270 in 1 : vector<16x8xf32>, vector<16x8xf32>, vector<16x8xf32>, vector<16x8xf32> -> vector<16x32xf32>
    %c0_110 = arith.constant 0 : index
    %c0_111 = arith.constant 0 : index
    %272 = vector.load %arg26[%c0_110, %c0_111] : memref<32x32xf32, #tpu.memory_space<vmem>>, vector<32x32xf32>
    %cst_112 = arith.constant dense<0.000000e+00> : vector<16x32xf32>
    %273 = tpu.matmul %271, %272, %cst_112 {dimension_numbers = #tpu.dot_dimension_numbers<[1], [0], [0], [1], [0, 0, 1, 1], [], []>} : vector<16x32xf32>, vector<32x32xf32>, vector<16x32xf32> -> vector<16x32xf32>
    %c0_113 = arith.constant 0 : index
    %c0_114 = arith.constant 0 : index
    %274 = vector.load %arg27[%c0_113, %c0_114] : memref<1x32xf32, #tpu.memory_space<vmem>>, vector<1x32xf32>
    %275 = vector.broadcast %274 : vector<1x32xf32> to vector<16x32xf32>
    %276 = arith.addf %273, %275 : vector<16x32xf32>
    %cst_115 = arith.constant 0.000000e+00 : f32
    %277 = vector.broadcast %cst_115 : f32 to vector<16x32xf32>
    %278 = arith.maximumf %276, %277 : vector<16x32xf32>
    %279 = arith.addf %271, %278 : vector<16x32xf32>
    %c0_116 = arith.constant 0 : index
    %c0_117 = arith.constant 0 : index
    %280 = vector.load %arg28[%c0_116, %c0_117] : memref<32x32xf32, #tpu.memory_space<vmem>>, vector<32x32xf32>
    %cst_118 = arith.constant dense<0.000000e+00> : vector<16x32xf32>
    %281 = tpu.matmul %186, %280, %cst_118 {dimension_numbers = #tpu.dot_dimension_numbers<[1], [0], [0], [1], [0, 0, 1, 1], [], []>} : vector<16x32xf32>, vector<32x32xf32>, vector<16x32xf32> -> vector<16x32xf32>
    %c0_119 = arith.constant 0 : index
    %c0_120 = arith.constant 0 : index
    %282 = vector.load %arg29[%c0_119, %c0_120] : memref<1x32xf32, #tpu.memory_space<vmem>>, vector<1x32xf32>
    %283 = vector.broadcast %282 : vector<1x32xf32> to vector<16x32xf32>
    %284 = arith.addf %281, %283 : vector<16x32xf32>
    %c0_121 = arith.constant 0 : index
    %c0_122 = arith.constant 0 : index
    %285 = vector.load %arg30[%c0_121, %c0_122] : memref<32x32xf32, #tpu.memory_space<vmem>>, vector<32x32xf32>
    %cst_123 = arith.constant dense<0.000000e+00> : vector<16x32xf32>
    %286 = tpu.matmul %279, %285, %cst_123 {dimension_numbers = #tpu.dot_dimension_numbers<[1], [0], [0], [1], [0, 0, 1, 1], [], []>} : vector<16x32xf32>, vector<32x32xf32>, vector<16x32xf32> -> vector<16x32xf32>
    %c0_124 = arith.constant 0 : index
    %c0_125 = arith.constant 0 : index
    %287 = vector.load %arg31[%c0_124, %c0_125] : memref<1x32xf32, #tpu.memory_space<vmem>>, vector<1x32xf32>
    %288 = vector.broadcast %287 : vector<1x32xf32> to vector<16x32xf32>
    %289 = arith.addf %286, %288 : vector<16x32xf32>
    %c0_126 = arith.constant 0 : index
    %c0_127 = arith.constant 0 : index
    %290 = vector.load %arg32[%c0_126, %c0_127] : memref<32x32xf32, #tpu.memory_space<vmem>>, vector<32x32xf32>
    %cst_128 = arith.constant dense<0.000000e+00> : vector<16x32xf32>
    %291 = tpu.matmul %279, %290, %cst_128 {dimension_numbers = #tpu.dot_dimension_numbers<[1], [0], [0], [1], [0, 0, 1, 1], [], []>} : vector<16x32xf32>, vector<32x32xf32>, vector<16x32xf32> -> vector<16x32xf32>
    %c0_129 = arith.constant 0 : index
    %c0_130 = arith.constant 0 : index
    %292 = vector.load %arg33[%c0_129, %c0_130] : memref<1x32xf32, #tpu.memory_space<vmem>>, vector<1x32xf32>
    %293 = vector.broadcast %292 : vector<1x32xf32> to vector<16x32xf32>
    %294 = arith.addf %291, %293 : vector<16x32xf32>
    %295 = vector.extract_strided_slice %284 {offsets = [0, 0], sizes = [16, 8], strides = [1, 1]} : vector<16x32xf32> to vector<16x8xf32>
    %296 = vector.extract_strided_slice %289 {offsets = [0, 0], sizes = [16, 8], strides = [1, 1]} : vector<16x32xf32> to vector<16x8xf32>
    %297 = vector.extract_strided_slice %294 {offsets = [0, 0], sizes = [16, 8], strides = [1, 1]} : vector<16x32xf32> to vector<16x8xf32>
    %298 = tpu.transpose %296, [1, 0] : vector<16x8xf32> -> vector<8x16xf32>
    %cst_131 = arith.constant dense<0.000000e+00> : vector<16x16xf32>
    %299 = tpu.matmul %295, %298, %cst_131 {dimension_numbers = #tpu.dot_dimension_numbers<[1], [0], [0], [1], [0, 0, 1, 1], [], []>} : vector<16x8xf32>, vector<8x16xf32>, vector<16x16xf32> -> vector<16x16xf32>
    %cst_132 = arith.constant dense<0xFF800000> : vector<16xf32>
    %300 = vector.multi_reduction <maximumf>, %299, %cst_132 [1] : vector<16x16xf32> to vector<16xf32>
    %301 = vector.shape_cast %300 : vector<16xf32> to vector<16x1xf32>
    %302 = vector.broadcast %301 : vector<16x1xf32> to vector<16x16xf32>
    %303 = arith.subf %299, %302 : vector<16x16xf32>
    %304 = math.exp %303 : vector<16x16xf32>
    %cst_133 = arith.constant dense<0.000000e+00> : vector<16xf32>
    %305 = vector.multi_reduction <add>, %304, %cst_133 [1] : vector<16x16xf32> to vector<16xf32>
    %306 = vector.shape_cast %305 : vector<16xf32> to vector<16x1xf32>
    %307 = tpu.reciprocal %306 {approx = true} : vector<16x1xf32> -> vector<16x1xf32>
    %308 = vector.broadcast %307 : vector<16x1xf32> to vector<16x16xf32>
    %309 = arith.mulf %304, %308 : vector<16x16xf32>
    %cst_134 = arith.constant dense<0.000000e+00> : vector<16x8xf32>
    %310 = tpu.matmul %309, %297, %cst_134 {dimension_numbers = #tpu.dot_dimension_numbers<[1], [0], [0], [1], [0, 0, 1, 1], [], []>} : vector<16x16xf32>, vector<16x8xf32>, vector<16x8xf32> -> vector<16x8xf32>
    %311 = arith.addf %295, %310 : vector<16x8xf32>
    %312 = vector.extract_strided_slice %284 {offsets = [0, 8], sizes = [16, 8], strides = [1, 1]} : vector<16x32xf32> to vector<16x8xf32>
    %313 = vector.extract_strided_slice %289 {offsets = [0, 8], sizes = [16, 8], strides = [1, 1]} : vector<16x32xf32> to vector<16x8xf32>
    %314 = vector.extract_strided_slice %294 {offsets = [0, 8], sizes = [16, 8], strides = [1, 1]} : vector<16x32xf32> to vector<16x8xf32>
    %315 = tpu.transpose %313, [1, 0] : vector<16x8xf32> -> vector<8x16xf32>
    %cst_135 = arith.constant dense<0.000000e+00> : vector<16x16xf32>
    %316 = tpu.matmul %312, %315, %cst_135 {dimension_numbers = #tpu.dot_dimension_numbers<[1], [0], [0], [1], [0, 0, 1, 1], [], []>} : vector<16x8xf32>, vector<8x16xf32>, vector<16x16xf32> -> vector<16x16xf32>
    %cst_136 = arith.constant dense<0xFF800000> : vector<16xf32>
    %317 = vector.multi_reduction <maximumf>, %316, %cst_136 [1] : vector<16x16xf32> to vector<16xf32>
    %318 = vector.shape_cast %317 : vector<16xf32> to vector<16x1xf32>
    %319 = vector.broadcast %318 : vector<16x1xf32> to vector<16x16xf32>
    %320 = arith.subf %316, %319 : vector<16x16xf32>
    %321 = math.exp %320 : vector<16x16xf32>
    %cst_137 = arith.constant dense<0.000000e+00> : vector<16xf32>
    %322 = vector.multi_reduction <add>, %321, %cst_137 [1] : vector<16x16xf32> to vector<16xf32>
    %323 = vector.shape_cast %322 : vector<16xf32> to vector<16x1xf32>
    %324 = tpu.reciprocal %323 {approx = true} : vector<16x1xf32> -> vector<16x1xf32>
    %325 = vector.broadcast %324 : vector<16x1xf32> to vector<16x16xf32>
    %326 = arith.mulf %321, %325 : vector<16x16xf32>
    %cst_138 = arith.constant dense<0.000000e+00> : vector<16x8xf32>
    %327 = tpu.matmul %326, %314, %cst_138 {dimension_numbers = #tpu.dot_dimension_numbers<[1], [0], [0], [1], [0, 0, 1, 1], [], []>} : vector<16x16xf32>, vector<16x8xf32>, vector<16x8xf32> -> vector<16x8xf32>
    %328 = arith.addf %312, %327 : vector<16x8xf32>
    %329 = vector.extract_strided_slice %284 {offsets = [0, 16], sizes = [16, 8], strides = [1, 1]} : vector<16x32xf32> to vector<16x8xf32>
    %330 = vector.extract_strided_slice %289 {offsets = [0, 16], sizes = [16, 8], strides = [1, 1]} : vector<16x32xf32> to vector<16x8xf32>
    %331 = vector.extract_strided_slice %294 {offsets = [0, 16], sizes = [16, 8], strides = [1, 1]} : vector<16x32xf32> to vector<16x8xf32>
    %332 = tpu.transpose %330, [1, 0] : vector<16x8xf32> -> vector<8x16xf32>
    %cst_139 = arith.constant dense<0.000000e+00> : vector<16x16xf32>
    %333 = tpu.matmul %329, %332, %cst_139 {dimension_numbers = #tpu.dot_dimension_numbers<[1], [0], [0], [1], [0, 0, 1, 1], [], []>} : vector<16x8xf32>, vector<8x16xf32>, vector<16x16xf32> -> vector<16x16xf32>
    %cst_140 = arith.constant dense<0xFF800000> : vector<16xf32>
    %334 = vector.multi_reduction <maximumf>, %333, %cst_140 [1] : vector<16x16xf32> to vector<16xf32>
    %335 = vector.shape_cast %334 : vector<16xf32> to vector<16x1xf32>
    %336 = vector.broadcast %335 : vector<16x1xf32> to vector<16x16xf32>
    %337 = arith.subf %333, %336 : vector<16x16xf32>
    %338 = math.exp %337 : vector<16x16xf32>
    %cst_141 = arith.constant dense<0.000000e+00> : vector<16xf32>
    %339 = vector.multi_reduction <add>, %338, %cst_141 [1] : vector<16x16xf32> to vector<16xf32>
    %340 = vector.shape_cast %339 : vector<16xf32> to vector<16x1xf32>
    %341 = tpu.reciprocal %340 {approx = true} : vector<16x1xf32> -> vector<16x1xf32>
    %342 = vector.broadcast %341 : vector<16x1xf32> to vector<16x16xf32>
    %343 = arith.mulf %338, %342 : vector<16x16xf32>
    %cst_142 = arith.constant dense<0.000000e+00> : vector<16x8xf32>
    %344 = tpu.matmul %343, %331, %cst_142 {dimension_numbers = #tpu.dot_dimension_numbers<[1], [0], [0], [1], [0, 0, 1, 1], [], []>} : vector<16x16xf32>, vector<16x8xf32>, vector<16x8xf32> -> vector<16x8xf32>
    %345 = arith.addf %329, %344 : vector<16x8xf32>
    %346 = vector.extract_strided_slice %284 {offsets = [0, 24], sizes = [16, 8], strides = [1, 1]} : vector<16x32xf32> to vector<16x8xf32>
    %347 = vector.extract_strided_slice %289 {offsets = [0, 24], sizes = [16, 8], strides = [1, 1]} : vector<16x32xf32> to vector<16x8xf32>
    %348 = vector.extract_strided_slice %294 {offsets = [0, 24], sizes = [16, 8], strides = [1, 1]} : vector<16x32xf32> to vector<16x8xf32>
    %349 = tpu.transpose %347, [1, 0] : vector<16x8xf32> -> vector<8x16xf32>
    %cst_143 = arith.constant dense<0.000000e+00> : vector<16x16xf32>
    %350 = tpu.matmul %346, %349, %cst_143 {dimension_numbers = #tpu.dot_dimension_numbers<[1], [0], [0], [1], [0, 0, 1, 1], [], []>} : vector<16x8xf32>, vector<8x16xf32>, vector<16x16xf32> -> vector<16x16xf32>
    %cst_144 = arith.constant dense<0xFF800000> : vector<16xf32>
    %351 = vector.multi_reduction <maximumf>, %350, %cst_144 [1] : vector<16x16xf32> to vector<16xf32>
    %352 = vector.shape_cast %351 : vector<16xf32> to vector<16x1xf32>
    %353 = vector.broadcast %352 : vector<16x1xf32> to vector<16x16xf32>
    %354 = arith.subf %350, %353 : vector<16x16xf32>
    %355 = math.exp %354 : vector<16x16xf32>
    %cst_145 = arith.constant dense<0.000000e+00> : vector<16xf32>
    %356 = vector.multi_reduction <add>, %355, %cst_145 [1] : vector<16x16xf32> to vector<16xf32>
    %357 = vector.shape_cast %356 : vector<16xf32> to vector<16x1xf32>
    %358 = tpu.reciprocal %357 {approx = true} : vector<16x1xf32> -> vector<16x1xf32>
    %359 = vector.broadcast %358 : vector<16x1xf32> to vector<16x16xf32>
    %360 = arith.mulf %355, %359 : vector<16x16xf32>
    %cst_146 = arith.constant dense<0.000000e+00> : vector<16x8xf32>
    %361 = tpu.matmul %360, %348, %cst_146 {dimension_numbers = #tpu.dot_dimension_numbers<[1], [0], [0], [1], [0, 0, 1, 1], [], []>} : vector<16x16xf32>, vector<16x8xf32>, vector<16x8xf32> -> vector<16x8xf32>
    %362 = arith.addf %346, %361 : vector<16x8xf32>
    %363 = tpu.concatenate %311, %328, %345, %362 in 1 : vector<16x8xf32>, vector<16x8xf32>, vector<16x8xf32>, vector<16x8xf32> -> vector<16x32xf32>
    %c0_147 = arith.constant 0 : index
    %c0_148 = arith.constant 0 : index
    %364 = vector.load %arg34[%c0_147, %c0_148] : memref<32x32xf32, #tpu.memory_space<vmem>>, vector<32x32xf32>
    %cst_149 = arith.constant dense<0.000000e+00> : vector<16x32xf32>
    %365 = tpu.matmul %363, %364, %cst_149 {dimension_numbers = #tpu.dot_dimension_numbers<[1], [0], [0], [1], [0, 0, 1, 1], [], []>} : vector<16x32xf32>, vector<32x32xf32>, vector<16x32xf32> -> vector<16x32xf32>
    %c0_150 = arith.constant 0 : index
    %c0_151 = arith.constant 0 : index
    %366 = vector.load %arg35[%c0_150, %c0_151] : memref<1x32xf32, #tpu.memory_space<vmem>>, vector<1x32xf32>
    %367 = vector.broadcast %366 : vector<1x32xf32> to vector<16x32xf32>
    %368 = arith.addf %365, %367 : vector<16x32xf32>
    %cst_152 = arith.constant 0.000000e+00 : f32
    %369 = vector.broadcast %cst_152 : f32 to vector<16x32xf32>
    %370 = arith.maximumf %368, %369 : vector<16x32xf32>
    %371 = arith.addf %363, %370 : vector<16x32xf32>
    %c0_153 = arith.constant 0 : index
    %c0_154 = arith.constant 0 : index
    %372 = vector.load %arg36[%c0_153, %c0_154] : memref<8x32xf32, #tpu.memory_space<vmem>>, vector<8x32xf32>
    %c0_155 = arith.constant 0 : index
    %c0_156 = arith.constant 0 : index
    %373 = vector.load %arg37[%c0_155, %c0_156] : memref<32x32xf32, #tpu.memory_space<vmem>>, vector<32x32xf32>
    %cst_157 = arith.constant dense<0.000000e+00> : vector<8x32xf32>
    %374 = tpu.matmul %372, %373, %cst_157 {dimension_numbers = #tpu.dot_dimension_numbers<[1], [0], [0], [1], [0, 0, 1, 1], [], []>} : vector<8x32xf32>, vector<32x32xf32>, vector<8x32xf32> -> vector<8x32xf32>
    %c0_158 = arith.constant 0 : index
    %c0_159 = arith.constant 0 : index
    %375 = vector.load %arg38[%c0_158, %c0_159] : memref<1x32xf32, #tpu.memory_space<vmem>>, vector<1x32xf32>
    %376 = vector.broadcast %375 : vector<1x32xf32> to vector<8x32xf32>
    %377 = arith.addf %374, %376 : vector<8x32xf32>
    %c0_160 = arith.constant 0 : index
    %c0_161 = arith.constant 0 : index
    %378 = vector.load %arg39[%c0_160, %c0_161] : memref<32x32xf32, #tpu.memory_space<vmem>>, vector<32x32xf32>
    %cst_162 = arith.constant dense<0.000000e+00> : vector<16x32xf32>
    %379 = tpu.matmul %371, %378, %cst_162 {dimension_numbers = #tpu.dot_dimension_numbers<[1], [0], [0], [1], [0, 0, 1, 1], [], []>} : vector<16x32xf32>, vector<32x32xf32>, vector<16x32xf32> -> vector<16x32xf32>
    %c0_163 = arith.constant 0 : index
    %c0_164 = arith.constant 0 : index
    %380 = vector.load %arg40[%c0_163, %c0_164] : memref<1x32xf32, #tpu.memory_space<vmem>>, vector<1x32xf32>
    %381 = vector.broadcast %380 : vector<1x32xf32> to vector<16x32xf32>
    %382 = arith.addf %379, %381 : vector<16x32xf32>
    %c0_165 = arith.constant 0 : index
    %c0_166 = arith.constant 0 : index
    %383 = vector.load %arg41[%c0_165, %c0_166] : memref<32x32xf32, #tpu.memory_space<vmem>>, vector<32x32xf32>
    %cst_167 = arith.constant dense<0.000000e+00> : vector<16x32xf32>
    %384 = tpu.matmul %371, %383, %cst_167 {dimension_numbers = #tpu.dot_dimension_numbers<[1], [0], [0], [1], [0, 0, 1, 1], [], []>} : vector<16x32xf32>, vector<32x32xf32>, vector<16x32xf32> -> vector<16x32xf32>
    %c0_168 = arith.constant 0 : index
    %c0_169 = arith.constant 0 : index
    %385 = vector.load %arg42[%c0_168, %c0_169] : memref<1x32xf32, #tpu.memory_space<vmem>>, vector<1x32xf32>
    %386 = vector.broadcast %385 : vector<1x32xf32> to vector<16x32xf32>
    %387 = arith.addf %384, %386 : vector<16x32xf32>
    %388 = vector.extract_strided_slice %377 {offsets = [0, 0], sizes = [8, 8], strides = [1, 1]} : vector<8x32xf32> to vector<8x8xf32>
    %389 = vector.extract_strided_slice %382 {offsets = [0, 0], sizes = [16, 8], strides = [1, 1]} : vector<16x32xf32> to vector<16x8xf32>
    %390 = vector.extract_strided_slice %387 {offsets = [0, 0], sizes = [16, 8], strides = [1, 1]} : vector<16x32xf32> to vector<16x8xf32>
    %391 = tpu.transpose %389, [1, 0] : vector<16x8xf32> -> vector<8x16xf32>
    %cst_170 = arith.constant dense<0.000000e+00> : vector<8x16xf32>
    %392 = tpu.matmul %388, %391, %cst_170 {dimension_numbers = #tpu.dot_dimension_numbers<[1], [0], [0], [1], [0, 0, 1, 1], [], []>} : vector<8x8xf32>, vector<8x16xf32>, vector<8x16xf32> -> vector<8x16xf32>
    %cst_171 = arith.constant dense<0xFF800000> : vector<8xf32>
    %393 = vector.multi_reduction <maximumf>, %392, %cst_171 [1] : vector<8x16xf32> to vector<8xf32>
    %394 = vector.shape_cast %393 : vector<8xf32> to vector<8x1xf32>
    %395 = vector.broadcast %394 : vector<8x1xf32> to vector<8x16xf32>
    %396 = arith.subf %392, %395 : vector<8x16xf32>
    %397 = math.exp %396 : vector<8x16xf32>
    %cst_172 = arith.constant dense<0.000000e+00> : vector<8xf32>
    %398 = vector.multi_reduction <add>, %397, %cst_172 [1] : vector<8x16xf32> to vector<8xf32>
    %399 = vector.shape_cast %398 : vector<8xf32> to vector<8x1xf32>
    %400 = tpu.reciprocal %399 {approx = true} : vector<8x1xf32> -> vector<8x1xf32>
    %401 = vector.broadcast %400 : vector<8x1xf32> to vector<8x16xf32>
    %402 = arith.mulf %397, %401 : vector<8x16xf32>
    %cst_173 = arith.constant dense<0.000000e+00> : vector<8x8xf32>
    %403 = tpu.matmul %402, %390, %cst_173 {dimension_numbers = #tpu.dot_dimension_numbers<[1], [0], [0], [1], [0, 0, 1, 1], [], []>} : vector<8x16xf32>, vector<16x8xf32>, vector<8x8xf32> -> vector<8x8xf32>
    %404 = arith.addf %388, %403 : vector<8x8xf32>
    %405 = vector.extract_strided_slice %377 {offsets = [0, 8], sizes = [8, 8], strides = [1, 1]} : vector<8x32xf32> to vector<8x8xf32>
    %406 = vector.extract_strided_slice %382 {offsets = [0, 8], sizes = [16, 8], strides = [1, 1]} : vector<16x32xf32> to vector<16x8xf32>
    %407 = vector.extract_strided_slice %387 {offsets = [0, 8], sizes = [16, 8], strides = [1, 1]} : vector<16x32xf32> to vector<16x8xf32>
    %408 = tpu.transpose %406, [1, 0] : vector<16x8xf32> -> vector<8x16xf32>
    %cst_174 = arith.constant dense<0.000000e+00> : vector<8x16xf32>
    %409 = tpu.matmul %405, %408, %cst_174 {dimension_numbers = #tpu.dot_dimension_numbers<[1], [0], [0], [1], [0, 0, 1, 1], [], []>} : vector<8x8xf32>, vector<8x16xf32>, vector<8x16xf32> -> vector<8x16xf32>
    %cst_175 = arith.constant dense<0xFF800000> : vector<8xf32>
    %410 = vector.multi_reduction <maximumf>, %409, %cst_175 [1] : vector<8x16xf32> to vector<8xf32>
    %411 = vector.shape_cast %410 : vector<8xf32> to vector<8x1xf32>
    %412 = vector.broadcast %411 : vector<8x1xf32> to vector<8x16xf32>
    %413 = arith.subf %409, %412 : vector<8x16xf32>
    %414 = math.exp %413 : vector<8x16xf32>
    %cst_176 = arith.constant dense<0.000000e+00> : vector<8xf32>
    %415 = vector.multi_reduction <add>, %414, %cst_176 [1] : vector<8x16xf32> to vector<8xf32>
    %416 = vector.shape_cast %415 : vector<8xf32> to vector<8x1xf32>
    %417 = tpu.reciprocal %416 {approx = true} : vector<8x1xf32> -> vector<8x1xf32>
    %418 = vector.broadcast %417 : vector<8x1xf32> to vector<8x16xf32>
    %419 = arith.mulf %414, %418 : vector<8x16xf32>
    %cst_177 = arith.constant dense<0.000000e+00> : vector<8x8xf32>
    %420 = tpu.matmul %419, %407, %cst_177 {dimension_numbers = #tpu.dot_dimension_numbers<[1], [0], [0], [1], [0, 0, 1, 1], [], []>} : vector<8x16xf32>, vector<16x8xf32>, vector<8x8xf32> -> vector<8x8xf32>
    %421 = arith.addf %405, %420 : vector<8x8xf32>
    %422 = vector.extract_strided_slice %377 {offsets = [0, 16], sizes = [8, 8], strides = [1, 1]} : vector<8x32xf32> to vector<8x8xf32>
    %423 = vector.extract_strided_slice %382 {offsets = [0, 16], sizes = [16, 8], strides = [1, 1]} : vector<16x32xf32> to vector<16x8xf32>
    %424 = vector.extract_strided_slice %387 {offsets = [0, 16], sizes = [16, 8], strides = [1, 1]} : vector<16x32xf32> to vector<16x8xf32>
    %425 = tpu.transpose %423, [1, 0] : vector<16x8xf32> -> vector<8x16xf32>
    %cst_178 = arith.constant dense<0.000000e+00> : vector<8x16xf32>
    %426 = tpu.matmul %422, %425, %cst_178 {dimension_numbers = #tpu.dot_dimension_numbers<[1], [0], [0], [1], [0, 0, 1, 1], [], []>} : vector<8x8xf32>, vector<8x16xf32>, vector<8x16xf32> -> vector<8x16xf32>
    %cst_179 = arith.constant dense<0xFF800000> : vector<8xf32>
    %427 = vector.multi_reduction <maximumf>, %426, %cst_179 [1] : vector<8x16xf32> to vector<8xf32>
    %428 = vector.shape_cast %427 : vector<8xf32> to vector<8x1xf32>
    %429 = vector.broadcast %428 : vector<8x1xf32> to vector<8x16xf32>
    %430 = arith.subf %426, %429 : vector<8x16xf32>
    %431 = math.exp %430 : vector<8x16xf32>
    %cst_180 = arith.constant dense<0.000000e+00> : vector<8xf32>
    %432 = vector.multi_reduction <add>, %431, %cst_180 [1] : vector<8x16xf32> to vector<8xf32>
    %433 = vector.shape_cast %432 : vector<8xf32> to vector<8x1xf32>
    %434 = tpu.reciprocal %433 {approx = true} : vector<8x1xf32> -> vector<8x1xf32>
    %435 = vector.broadcast %434 : vector<8x1xf32> to vector<8x16xf32>
    %436 = arith.mulf %431, %435 : vector<8x16xf32>
    %cst_181 = arith.constant dense<0.000000e+00> : vector<8x8xf32>
    %437 = tpu.matmul %436, %424, %cst_181 {dimension_numbers = #tpu.dot_dimension_numbers<[1], [0], [0], [1], [0, 0, 1, 1], [], []>} : vector<8x16xf32>, vector<16x8xf32>, vector<8x8xf32> -> vector<8x8xf32>
    %438 = arith.addf %422, %437 : vector<8x8xf32>
    %439 = vector.extract_strided_slice %377 {offsets = [0, 24], sizes = [8, 8], strides = [1, 1]} : vector<8x32xf32> to vector<8x8xf32>
    %440 = vector.extract_strided_slice %382 {offsets = [0, 24], sizes = [16, 8], strides = [1, 1]} : vector<16x32xf32> to vector<16x8xf32>
    %441 = vector.extract_strided_slice %387 {offsets = [0, 24], sizes = [16, 8], strides = [1, 1]} : vector<16x32xf32> to vector<16x8xf32>
    %442 = tpu.transpose %440, [1, 0] : vector<16x8xf32> -> vector<8x16xf32>
    %cst_182 = arith.constant dense<0.000000e+00> : vector<8x16xf32>
    %443 = tpu.matmul %439, %442, %cst_182 {dimension_numbers = #tpu.dot_dimension_numbers<[1], [0], [0], [1], [0, 0, 1, 1], [], []>} : vector<8x8xf32>, vector<8x16xf32>, vector<8x16xf32> -> vector<8x16xf32>
    %cst_183 = arith.constant dense<0xFF800000> : vector<8xf32>
    %444 = vector.multi_reduction <maximumf>, %443, %cst_183 [1] : vector<8x16xf32> to vector<8xf32>
    %445 = vector.shape_cast %444 : vector<8xf32> to vector<8x1xf32>
    %446 = vector.broadcast %445 : vector<8x1xf32> to vector<8x16xf32>
    %447 = arith.subf %443, %446 : vector<8x16xf32>
    %448 = math.exp %447 : vector<8x16xf32>
    %cst_184 = arith.constant dense<0.000000e+00> : vector<8xf32>
    %449 = vector.multi_reduction <add>, %448, %cst_184 [1] : vector<8x16xf32> to vector<8xf32>
    %450 = vector.shape_cast %449 : vector<8xf32> to vector<8x1xf32>
    %451 = tpu.reciprocal %450 {approx = true} : vector<8x1xf32> -> vector<8x1xf32>
    %452 = vector.broadcast %451 : vector<8x1xf32> to vector<8x16xf32>
    %453 = arith.mulf %448, %452 : vector<8x16xf32>
    %cst_185 = arith.constant dense<0.000000e+00> : vector<8x8xf32>
    %454 = tpu.matmul %453, %441, %cst_185 {dimension_numbers = #tpu.dot_dimension_numbers<[1], [0], [0], [1], [0, 0, 1, 1], [], []>} : vector<8x16xf32>, vector<16x8xf32>, vector<8x8xf32> -> vector<8x8xf32>
    %455 = arith.addf %439, %454 : vector<8x8xf32>
    %456 = tpu.concatenate %404, %421, %438, %455 in 1 : vector<8x8xf32>, vector<8x8xf32>, vector<8x8xf32>, vector<8x8xf32> -> vector<8x32xf32>
    %c0_186 = arith.constant 0 : index
    %c0_187 = arith.constant 0 : index
    %457 = vector.load %arg43[%c0_186, %c0_187] : memref<32x32xf32, #tpu.memory_space<vmem>>, vector<32x32xf32>
    %cst_188 = arith.constant dense<0.000000e+00> : vector<8x32xf32>
    %458 = tpu.matmul %456, %457, %cst_188 {dimension_numbers = #tpu.dot_dimension_numbers<[1], [0], [0], [1], [0, 0, 1, 1], [], []>} : vector<8x32xf32>, vector<32x32xf32>, vector<8x32xf32> -> vector<8x32xf32>
    %c0_189 = arith.constant 0 : index
    %c0_190 = arith.constant 0 : index
    %459 = vector.load %arg44[%c0_189, %c0_190] : memref<1x32xf32, #tpu.memory_space<vmem>>, vector<1x32xf32>
    %460 = vector.broadcast %459 : vector<1x32xf32> to vector<8x32xf32>
    %461 = arith.addf %458, %460 : vector<8x32xf32>
    %cst_191 = arith.constant 0.000000e+00 : f32
    %462 = vector.broadcast %cst_191 : f32 to vector<8x32xf32>
    %463 = arith.maximumf %461, %462 : vector<8x32xf32>
    %464 = arith.addf %456, %463 : vector<8x32xf32>
    %c0_192 = arith.constant 0 : index
    %c0_193 = arith.constant 0 : index
    %465 = vector.load %arg45[%c0_192, %c0_193] : memref<32x32xf32, #tpu.memory_space<vmem>>, vector<32x32xf32>
    %cst_194 = arith.constant dense<0.000000e+00> : vector<8x32xf32>
    %466 = tpu.matmul %464, %465, %cst_194 {dimension_numbers = #tpu.dot_dimension_numbers<[1], [0], [0], [1], [0, 0, 1, 1], [], []>} : vector<8x32xf32>, vector<32x32xf32>, vector<8x32xf32> -> vector<8x32xf32>
    %c0_195 = arith.constant 0 : index
    %c0_196 = arith.constant 0 : index
    %467 = vector.load %arg46[%c0_195, %c0_196] : memref<1x32xf32, #tpu.memory_space<vmem>>, vector<1x32xf32>
    %468 = vector.broadcast %467 : vector<1x32xf32> to vector<8x32xf32>
    %469 = arith.addf %466, %468 : vector<8x32xf32>
    %c0_197 = arith.constant 0 : index
    %c0_198 = arith.constant 0 : index
    %470 = vector.load %arg47[%c0_197, %c0_198] : memref<32x32xf32, #tpu.memory_space<vmem>>, vector<32x32xf32>
    %cst_199 = arith.constant dense<0.000000e+00> : vector<8x32xf32>
    %471 = tpu.matmul %464, %470, %cst_199 {dimension_numbers = #tpu.dot_dimension_numbers<[1], [0], [0], [1], [0, 0, 1, 1], [], []>} : vector<8x32xf32>, vector<32x32xf32>, vector<8x32xf32> -> vector<8x32xf32>
    %c0_200 = arith.constant 0 : index
    %c0_201 = arith.constant 0 : index
    %472 = vector.load %arg48[%c0_200, %c0_201] : memref<1x32xf32, #tpu.memory_space<vmem>>, vector<1x32xf32>
    %473 = vector.broadcast %472 : vector<1x32xf32> to vector<8x32xf32>
    %474 = arith.addf %471, %473 : vector<8x32xf32>
    %c0_202 = arith.constant 0 : index
    %c0_203 = arith.constant 0 : index
    %475 = vector.load %arg49[%c0_202, %c0_203] : memref<32x32xf32, #tpu.memory_space<vmem>>, vector<32x32xf32>
    %cst_204 = arith.constant dense<0.000000e+00> : vector<8x32xf32>
    %476 = tpu.matmul %464, %475, %cst_204 {dimension_numbers = #tpu.dot_dimension_numbers<[1], [0], [0], [1], [0, 0, 1, 1], [], []>} : vector<8x32xf32>, vector<32x32xf32>, vector<8x32xf32> -> vector<8x32xf32>
    %c0_205 = arith.constant 0 : index
    %c0_206 = arith.constant 0 : index
    %477 = vector.load %arg50[%c0_205, %c0_206] : memref<1x32xf32, #tpu.memory_space<vmem>>, vector<1x32xf32>
    %478 = vector.broadcast %477 : vector<1x32xf32> to vector<8x32xf32>
    %479 = arith.addf %476, %478 : vector<8x32xf32>
    %480 = vector.extract_strided_slice %469 {offsets = [0, 0], sizes = [8, 8], strides = [1, 1]} : vector<8x32xf32> to vector<8x8xf32>
    %481 = vector.extract_strided_slice %474 {offsets = [0, 0], sizes = [8, 8], strides = [1, 1]} : vector<8x32xf32> to vector<8x8xf32>
    %482 = vector.extract_strided_slice %479 {offsets = [0, 0], sizes = [8, 8], strides = [1, 1]} : vector<8x32xf32> to vector<8x8xf32>
    %483 = tpu.transpose %481, [1, 0] : vector<8x8xf32> -> vector<8x8xf32>
    %cst_207 = arith.constant dense<0.000000e+00> : vector<8x8xf32>
    %484 = tpu.matmul %480, %483, %cst_207 {dimension_numbers = #tpu.dot_dimension_numbers<[1], [0], [0], [1], [0, 0, 1, 1], [], []>} : vector<8x8xf32>, vector<8x8xf32>, vector<8x8xf32> -> vector<8x8xf32>
    %cst_208 = arith.constant dense<0xFF800000> : vector<8xf32>
    %485 = vector.multi_reduction <maximumf>, %484, %cst_208 [1] : vector<8x8xf32> to vector<8xf32>
    %486 = vector.shape_cast %485 : vector<8xf32> to vector<8x1xf32>
    %487 = vector.broadcast %486 : vector<8x1xf32> to vector<8x8xf32>
    %488 = arith.subf %484, %487 : vector<8x8xf32>
    %489 = math.exp %488 : vector<8x8xf32>
    %cst_209 = arith.constant dense<0.000000e+00> : vector<8xf32>
    %490 = vector.multi_reduction <add>, %489, %cst_209 [1] : vector<8x8xf32> to vector<8xf32>
    %491 = vector.shape_cast %490 : vector<8xf32> to vector<8x1xf32>
    %492 = tpu.reciprocal %491 {approx = true} : vector<8x1xf32> -> vector<8x1xf32>
    %493 = vector.broadcast %492 : vector<8x1xf32> to vector<8x8xf32>
    %494 = arith.mulf %489, %493 : vector<8x8xf32>
    %cst_210 = arith.constant dense<0.000000e+00> : vector<8x8xf32>
    %495 = tpu.matmul %494, %482, %cst_210 {dimension_numbers = #tpu.dot_dimension_numbers<[1], [0], [0], [1], [0, 0, 1, 1], [], []>} : vector<8x8xf32>, vector<8x8xf32>, vector<8x8xf32> -> vector<8x8xf32>
    %496 = arith.addf %480, %495 : vector<8x8xf32>
    %497 = vector.extract_strided_slice %469 {offsets = [0, 8], sizes = [8, 8], strides = [1, 1]} : vector<8x32xf32> to vector<8x8xf32>
    %498 = vector.extract_strided_slice %474 {offsets = [0, 8], sizes = [8, 8], strides = [1, 1]} : vector<8x32xf32> to vector<8x8xf32>
    %499 = vector.extract_strided_slice %479 {offsets = [0, 8], sizes = [8, 8], strides = [1, 1]} : vector<8x32xf32> to vector<8x8xf32>
    %500 = tpu.transpose %498, [1, 0] : vector<8x8xf32> -> vector<8x8xf32>
    %cst_211 = arith.constant dense<0.000000e+00> : vector<8x8xf32>
    %501 = tpu.matmul %497, %500, %cst_211 {dimension_numbers = #tpu.dot_dimension_numbers<[1], [0], [0], [1], [0, 0, 1, 1], [], []>} : vector<8x8xf32>, vector<8x8xf32>, vector<8x8xf32> -> vector<8x8xf32>
    %cst_212 = arith.constant dense<0xFF800000> : vector<8xf32>
    %502 = vector.multi_reduction <maximumf>, %501, %cst_212 [1] : vector<8x8xf32> to vector<8xf32>
    %503 = vector.shape_cast %502 : vector<8xf32> to vector<8x1xf32>
    %504 = vector.broadcast %503 : vector<8x1xf32> to vector<8x8xf32>
    %505 = arith.subf %501, %504 : vector<8x8xf32>
    %506 = math.exp %505 : vector<8x8xf32>
    %cst_213 = arith.constant dense<0.000000e+00> : vector<8xf32>
    %507 = vector.multi_reduction <add>, %506, %cst_213 [1] : vector<8x8xf32> to vector<8xf32>
    %508 = vector.shape_cast %507 : vector<8xf32> to vector<8x1xf32>
    %509 = tpu.reciprocal %508 {approx = true} : vector<8x1xf32> -> vector<8x1xf32>
    %510 = vector.broadcast %509 : vector<8x1xf32> to vector<8x8xf32>
    %511 = arith.mulf %506, %510 : vector<8x8xf32>
    %cst_214 = arith.constant dense<0.000000e+00> : vector<8x8xf32>
    %512 = tpu.matmul %511, %499, %cst_214 {dimension_numbers = #tpu.dot_dimension_numbers<[1], [0], [0], [1], [0, 0, 1, 1], [], []>} : vector<8x8xf32>, vector<8x8xf32>, vector<8x8xf32> -> vector<8x8xf32>
    %513 = arith.addf %497, %512 : vector<8x8xf32>
    %514 = vector.extract_strided_slice %469 {offsets = [0, 16], sizes = [8, 8], strides = [1, 1]} : vector<8x32xf32> to vector<8x8xf32>
    %515 = vector.extract_strided_slice %474 {offsets = [0, 16], sizes = [8, 8], strides = [1, 1]} : vector<8x32xf32> to vector<8x8xf32>
    %516 = vector.extract_strided_slice %479 {offsets = [0, 16], sizes = [8, 8], strides = [1, 1]} : vector<8x32xf32> to vector<8x8xf32>
    %517 = tpu.transpose %515, [1, 0] : vector<8x8xf32> -> vector<8x8xf32>
    %cst_215 = arith.constant dense<0.000000e+00> : vector<8x8xf32>
    %518 = tpu.matmul %514, %517, %cst_215 {dimension_numbers = #tpu.dot_dimension_numbers<[1], [0], [0], [1], [0, 0, 1, 1], [], []>} : vector<8x8xf32>, vector<8x8xf32>, vector<8x8xf32> -> vector<8x8xf32>
    %cst_216 = arith.constant dense<0xFF800000> : vector<8xf32>
    %519 = vector.multi_reduction <maximumf>, %518, %cst_216 [1] : vector<8x8xf32> to vector<8xf32>
    %520 = vector.shape_cast %519 : vector<8xf32> to vector<8x1xf32>
    %521 = vector.broadcast %520 : vector<8x1xf32> to vector<8x8xf32>
    %522 = arith.subf %518, %521 : vector<8x8xf32>
    %523 = math.exp %522 : vector<8x8xf32>
    %cst_217 = arith.constant dense<0.000000e+00> : vector<8xf32>
    %524 = vector.multi_reduction <add>, %523, %cst_217 [1] : vector<8x8xf32> to vector<8xf32>
    %525 = vector.shape_cast %524 : vector<8xf32> to vector<8x1xf32>
    %526 = tpu.reciprocal %525 {approx = true} : vector<8x1xf32> -> vector<8x1xf32>
    %527 = vector.broadcast %526 : vector<8x1xf32> to vector<8x8xf32>
    %528 = arith.mulf %523, %527 : vector<8x8xf32>
    %cst_218 = arith.constant dense<0.000000e+00> : vector<8x8xf32>
    %529 = tpu.matmul %528, %516, %cst_218 {dimension_numbers = #tpu.dot_dimension_numbers<[1], [0], [0], [1], [0, 0, 1, 1], [], []>} : vector<8x8xf32>, vector<8x8xf32>, vector<8x8xf32> -> vector<8x8xf32>
    %530 = arith.addf %514, %529 : vector<8x8xf32>
    %531 = vector.extract_strided_slice %469 {offsets = [0, 24], sizes = [8, 8], strides = [1, 1]} : vector<8x32xf32> to vector<8x8xf32>
    %532 = vector.extract_strided_slice %474 {offsets = [0, 24], sizes = [8, 8], strides = [1, 1]} : vector<8x32xf32> to vector<8x8xf32>
    %533 = vector.extract_strided_slice %479 {offsets = [0, 24], sizes = [8, 8], strides = [1, 1]} : vector<8x32xf32> to vector<8x8xf32>
    %534 = tpu.transpose %532, [1, 0] : vector<8x8xf32> -> vector<8x8xf32>
    %cst_219 = arith.constant dense<0.000000e+00> : vector<8x8xf32>
    %535 = tpu.matmul %531, %534, %cst_219 {dimension_numbers = #tpu.dot_dimension_numbers<[1], [0], [0], [1], [0, 0, 1, 1], [], []>} : vector<8x8xf32>, vector<8x8xf32>, vector<8x8xf32> -> vector<8x8xf32>
    %cst_220 = arith.constant dense<0xFF800000> : vector<8xf32>
    %536 = vector.multi_reduction <maximumf>, %535, %cst_220 [1] : vector<8x8xf32> to vector<8xf32>
    %537 = vector.shape_cast %536 : vector<8xf32> to vector<8x1xf32>
    %538 = vector.broadcast %537 : vector<8x1xf32> to vector<8x8xf32>
    %539 = arith.subf %535, %538 : vector<8x8xf32>
    %540 = math.exp %539 : vector<8x8xf32>
    %cst_221 = arith.constant dense<0.000000e+00> : vector<8xf32>
    %541 = vector.multi_reduction <add>, %540, %cst_221 [1] : vector<8x8xf32> to vector<8xf32>
    %542 = vector.shape_cast %541 : vector<8xf32> to vector<8x1xf32>
    %543 = tpu.reciprocal %542 {approx = true} : vector<8x1xf32> -> vector<8x1xf32>
    %544 = vector.broadcast %543 : vector<8x1xf32> to vector<8x8xf32>
    %545 = arith.mulf %540, %544 : vector<8x8xf32>
    %cst_222 = arith.constant dense<0.000000e+00> : vector<8x8xf32>
    %546 = tpu.matmul %545, %533, %cst_222 {dimension_numbers = #tpu.dot_dimension_numbers<[1], [0], [0], [1], [0, 0, 1, 1], [], []>} : vector<8x8xf32>, vector<8x8xf32>, vector<8x8xf32> -> vector<8x8xf32>
    %547 = arith.addf %531, %546 : vector<8x8xf32>
    %548 = tpu.concatenate %496, %513, %530, %547 in 1 : vector<8x8xf32>, vector<8x8xf32>, vector<8x8xf32>, vector<8x8xf32> -> vector<8x32xf32>
    %c0_223 = arith.constant 0 : index
    %c0_224 = arith.constant 0 : index
    %549 = vector.load %arg51[%c0_223, %c0_224] : memref<32x32xf32, #tpu.memory_space<vmem>>, vector<32x32xf32>
    %cst_225 = arith.constant dense<0.000000e+00> : vector<8x32xf32>
    %550 = tpu.matmul %548, %549, %cst_225 {dimension_numbers = #tpu.dot_dimension_numbers<[1], [0], [0], [1], [0, 0, 1, 1], [], []>} : vector<8x32xf32>, vector<32x32xf32>, vector<8x32xf32> -> vector<8x32xf32>
    %c0_226 = arith.constant 0 : index
    %c0_227 = arith.constant 0 : index
    %551 = vector.load %arg52[%c0_226, %c0_227] : memref<1x32xf32, #tpu.memory_space<vmem>>, vector<1x32xf32>
    %552 = vector.broadcast %551 : vector<1x32xf32> to vector<8x32xf32>
    %553 = arith.addf %550, %552 : vector<8x32xf32>
    %cst_228 = arith.constant 0.000000e+00 : f32
    %554 = vector.broadcast %cst_228 : f32 to vector<8x32xf32>
    %555 = arith.maximumf %553, %554 : vector<8x32xf32>
    %556 = arith.addf %548, %555 : vector<8x32xf32>
    %c0_229 = arith.constant 0 : index
    %c0_230 = arith.constant 0 : index
    %557 = vector.load %arg53[%c0_229, %c0_230] : memref<32x32xf32, #tpu.memory_space<vmem>>, vector<32x32xf32>
    %cst_231 = arith.constant dense<0.000000e+00> : vector<8x32xf32>
    %558 = tpu.matmul %556, %557, %cst_231 {dimension_numbers = #tpu.dot_dimension_numbers<[1], [0], [0], [1], [0, 0, 1, 1], [], []>} : vector<8x32xf32>, vector<32x32xf32>, vector<8x32xf32> -> vector<8x32xf32>
    %c0_232 = arith.constant 0 : index
    %c0_233 = arith.constant 0 : index
    %559 = vector.load %arg54[%c0_232, %c0_233] : memref<1x32xf32, #tpu.memory_space<vmem>>, vector<1x32xf32>
    %560 = vector.broadcast %559 : vector<1x32xf32> to vector<8x32xf32>
    %561 = arith.addf %558, %560 : vector<8x32xf32>
    %562 = vector.shape_cast %561 : vector<8x32xf32> to vector<1x8x32xf32>
    %c0_234 = arith.constant 0 : index
    %c0_235 = arith.constant 0 : index
    %c0_236 = arith.constant 0 : index
    %563 = vector.load %arg55[%c0_234, %c0_235, %c0_236] : memref<1x8x32xf32, #tpu.memory_space<vmem>>, vector<1x8x32xf32>
    tpu.vector_store %arg55[%c0_234, %c0_235, %c0_236], %562 {strides = array<i32>} : memref<1x8x32xf32, #tpu.memory_space<vmem>>, vector<1x8x32xf32>,
    return
  }
  func.func @transform_0(%arg0: i32) -> (i32, i32, i32) {
    %c0_i32 = arith.constant 0 : i32
    %c0_i32_0 = arith.constant 0 : i32
    %c0_i32_1 = arith.constant 0 : i32
    return %arg0, %c0_i32, %c0_i32_0 : i32, i32, i32
  }
  func.func @transform_1(%arg0: i32) -> (i32, i32) {
    %c0_i32 = arith.constant 0 : i32
    %c0_i32_0 = arith.constant 0 : i32
    %c0_i32_1 = arith.constant 0 : i32
    return %c0_i32, %c0_i32_0 : i32, i32
  }
  func.func @transform_2(%arg0: i32) -> (i32, i32) {
    %c0_i32 = arith.constant 0 : i32
    %c0_i32_0 = arith.constant 0 : i32
    %c0_i32_1 = arith.constant 0 : i32
    return %c0_i32, %c0_i32_0 : i32, i32
  }
  func.func @transform_3(%arg0: i32) -> (i32, i32) {
    %c0_i32 = arith.constant 0 : i32
    %c0_i32_0 = arith.constant 0 : i32
    %c0_i32_1 = arith.constant 0 : i32
    return %c0_i32, %c0_i32_0 : i32, i32
  }
  func.func @transform_4(%arg0: i32) -> (i32, i32) {
    %c0_i32 = arith.constant 0 : i32
    %c0_i32_0 = arith.constant 0 : i32
    %c0_i32_1 = arith.constant 0 : i32
    return %c0_i32, %c0_i32_0 : i32, i32
  }
  func.func @transform_5(%arg0: i32) -> (i32, i32) {
    %c0_i32 = arith.constant 0 : i32
    %c0_i32_0 = arith.constant 0 : i32
    %c0_i32_1 = arith.constant 0 : i32
    return %c0_i32, %c0_i32_0 : i32, i32
  }
  func.func @transform_6(%arg0: i32) -> (i32, i32) {
    %c0_i32 = arith.constant 0 : i32
    %c0_i32_0 = arith.constant 0 : i32
    %c0_i32_1 = arith.constant 0 : i32
    return %c0_i32, %c0_i32_0 : i32, i32
  }
  func.func @transform_7(%arg0: i32) -> (i32, i32) {
    %c0_i32 = arith.constant 0 : i32
    %c0_i32_0 = arith.constant 0 : i32
    %c0_i32_1 = arith.constant 0 : i32
    return %c0_i32, %c0_i32_0 : i32, i32
  }
  func.func @transform_8(%arg0: i32) -> (i32, i32) {
    %c0_i32 = arith.constant 0 : i32
    %c0_i32_0 = arith.constant 0 : i32
    %c0_i32_1 = arith.constant 0 : i32
    return %c0_i32, %c0_i32_0 : i32, i32
  }
  func.func @transform_9(%arg0: i32) -> (i32, i32) {
    %c0_i32 = arith.constant 0 : i32
    %c0_i32_0 = arith.constant 0 : i32
    %c0_i32_1 = arith.constant 0 : i32
    return %c0_i32, %c0_i32_0 : i32, i32
  }
  func.func @transform_10(%arg0: i32) -> (i32, i32) {
    %c0_i32 = arith.constant 0 : i32
    %c0_i32_0 = arith.constant 0 : i32
    %c0_i32_1 = arith.constant 0 : i32
    return %c0_i32, %c0_i32_0 : i32, i32
  }
  func.func @transform_11(%arg0: i32) -> (i32, i32) {
    %c0_i32 = arith.constant 0 : i32
    %c0_i32_0 = arith.constant 0 : i32
    %c0_i32_1 = arith.constant 0 : i32
    return %c0_i32, %c0_i32_0 : i32, i32
  }
  func.func @transform_12(%arg0: i32) -> (i32, i32) {
    %c0_i32 = arith.constant 0 : i32
    %c0_i32_0 = arith.constant 0 : i32
    %c0_i32_1 = arith.constant 0 : i32
    return %c0_i32, %c0_i32_0 : i32, i32
  }
  func.func @transform_13(%arg0: i32) -> (i32, i32) {
    %c0_i32 = arith.constant 0 : i32
    %c0_i32_0 = arith.constant 0 : i32
    %c0_i32_1 = arith.constant 0 : i32
    return %c0_i32, %c0_i32_0 : i32, i32
  }
  func.func @transform_14(%arg0: i32) -> (i32, i32) {
    %c0_i32 = arith.constant 0 : i32
    %c0_i32_0 = arith.constant 0 : i32
    %c0_i32_1 = arith.constant 0 : i32
    return %c0_i32, %c0_i32_0 : i32, i32
  }
  func.func @transform_15(%arg0: i32) -> (i32, i32) {
    %c0_i32 = arith.constant 0 : i32
    %c0_i32_0 = arith.constant 0 : i32
    %c0_i32_1 = arith.constant 0 : i32
    return %c0_i32, %c0_i32_0 : i32, i32
  }
  func.func @transform_16(%arg0: i32) -> (i32, i32) {
    %c0_i32 = arith.constant 0 : i32
    %c0_i32_0 = arith.constant 0 : i32
    %c0_i32_1 = arith.constant 0 : i32
    return %c0_i32, %c0_i32_0 : i32, i32
  }
  func.func @transform_17(%arg0: i32) -> (i32, i32) {
    %c0_i32 = arith.constant 0 : i32
    %c0_i32_0 = arith.constant 0 : i32
    %c0_i32_1 = arith.constant 0 : i32
    return %c0_i32, %c0_i32_0 : i32, i32
  }
  func.func @transform_18(%arg0: i32) -> (i32, i32) {
    %c0_i32 = arith.constant 0 : i32
    %c0_i32_0 = arith.constant 0 : i32
    %c0_i32_1 = arith.constant 0 : i32
    return %c0_i32, %c0_i32_0 : i32, i32
  }
  func.func @transform_19(%arg0: i32) -> (i32, i32) {
    %c0_i32 = arith.constant 0 : i32
    %c0_i32_0 = arith.constant 0 : i32
    %c0_i32_1 = arith.constant 0 : i32
    return %c0_i32, %c0_i32_0 : i32, i32
  }
  func.func @transform_20(%arg0: i32) -> (i32, i32) {
    %c0_i32 = arith.constant 0 : i32
    %c0_i32_0 = arith.constant 0 : i32
    %c0_i32_1 = arith.constant 0 : i32
    return %c0_i32, %c0_i32_0 : i32, i32
  }
  func.func @transform_21(%arg0: i32) -> (i32, i32) {
    %c0_i32 = arith.constant 0 : i32
    %c0_i32_0 = arith.constant 0 : i32
    %c0_i32_1 = arith.constant 0 : i32
    return %c0_i32, %c0_i32_0 : i32, i32
  }
  func.func @transform_22(%arg0: i32) -> (i32, i32) {
    %c0_i32 = arith.constant 0 : i32
    %c0_i32_0 = arith.constant 0 : i32
    %c0_i32_1 = arith.constant 0 : i32
    return %c0_i32, %c0_i32_0 : i32, i32
  }
  func.func @transform_23(%arg0: i32) -> (i32, i32) {
    %c0_i32 = arith.constant 0 : i32
    %c0_i32_0 = arith.constant 0 : i32
    %c0_i32_1 = arith.constant 0 : i32
    return %c0_i32, %c0_i32_0 : i32, i32
  }
  func.func @transform_24(%arg0: i32) -> (i32, i32) {
    %c0_i32 = arith.constant 0 : i32
    %c0_i32_0 = arith.constant 0 : i32
    %c0_i32_1 = arith.constant 0 : i32
    return %c0_i32, %c0_i32_0 : i32, i32
  }
  func.func @transform_25(%arg0: i32) -> (i32, i32) {
    %c0_i32 = arith.constant 0 : i32
    %c0_i32_0 = arith.constant 0 : i32
    %c0_i32_1 = arith.constant 0 : i32
    return %c0_i32, %c0_i32_0 : i32, i32
  }
  func.func @transform_26(%arg0: i32) -> (i32, i32) {
    %c0_i32 = arith.constant 0 : i32
    %c0_i32_0 = arith.constant 0 : i32
    %c0_i32_1 = arith.constant 0 : i32
    return %c0_i32, %c0_i32_0 : i32, i32
  }
  func.func @transform_27(%arg0: i32) -> (i32, i32) {
    %c0_i32 = arith.constant 0 : i32
    %c0_i32_0 = arith.constant 0 : i32
    %c0_i32_1 = arith.constant 0 : i32
    return %c0_i32, %c0_i32_0 : i32, i32
  }
  func.func @transform_28(%arg0: i32) -> (i32, i32) {
    %c0_i32 = arith.constant 0 : i32
    %c0_i32_0 = arith.constant 0 : i32
    %c0_i32_1 = arith.constant 0 : i32
    return %c0_i32, %c0_i32_0 : i32, i32
  }
  func.func @transform_29(%arg0: i32) -> (i32, i32) {
    %c0_i32 = arith.constant 0 : i32
    %c0_i32_0 = arith.constant 0 : i32
    %c0_i32_1 = arith.constant 0 : i32
    return %c0_i32, %c0_i32_0 : i32, i32
  }
  func.func @transform_30(%arg0: i32) -> (i32, i32) {
    %c0_i32 = arith.constant 0 : i32
    %c0_i32_0 = arith.constant 0 : i32
    %c0_i32_1 = arith.constant 0 : i32
    return %c0_i32, %c0_i32_0 : i32, i32
  }
  func.func @transform_31(%arg0: i32) -> (i32, i32) {
    %c0_i32 = arith.constant 0 : i32
    %c0_i32_0 = arith.constant 0 : i32
    %c0_i32_1 = arith.constant 0 : i32
    return %c0_i32, %c0_i32_0 : i32, i32
  }
  func.func @transform_32(%arg0: i32) -> (i32, i32) {
    %c0_i32 = arith.constant 0 : i32
    %c0_i32_0 = arith.constant 0 : i32
    %c0_i32_1 = arith.constant 0 : i32
    return %c0_i32, %c0_i32_0 : i32, i32
  }
  func.func @transform_33(%arg0: i32) -> (i32, i32) {
    %c0_i32 = arith.constant 0 : i32
    %c0_i32_0 = arith.constant 0 : i32
    %c0_i32_1 = arith.constant 0 : i32
    return %c0_i32, %c0_i32_0 : i32, i32
  }
  func.func @transform_34(%arg0: i32) -> (i32, i32) {
    %c0_i32 = arith.constant 0 : i32
    %c0_i32_0 = arith.constant 0 : i32
    %c0_i32_1 = arith.constant 0 : i32
    return %c0_i32, %c0_i32_0 : i32, i32
  }
  func.func @transform_35(%arg0: i32) -> (i32, i32) {
    %c0_i32 = arith.constant 0 : i32
    %c0_i32_0 = arith.constant 0 : i32
    %c0_i32_1 = arith.constant 0 : i32
    return %c0_i32, %c0_i32_0 : i32, i32
  }
  func.func @transform_36(%arg0: i32) -> (i32, i32) {
    %c0_i32 = arith.constant 0 : i32
    %c0_i32_0 = arith.constant 0 : i32
    %c0_i32_1 = arith.constant 0 : i32
    return %c0_i32, %c0_i32_0 : i32, i32
  }
  func.func @transform_37(%arg0: i32) -> (i32, i32) {
    %c0_i32 = arith.constant 0 : i32
    %c0_i32_0 = arith.constant 0 : i32
    %c0_i32_1 = arith.constant 0 : i32
    return %c0_i32, %c0_i32_0 : i32, i32
  }
  func.func @transform_38(%arg0: i32) -> (i32, i32) {
    %c0_i32 = arith.constant 0 : i32
    %c0_i32_0 = arith.constant 0 : i32
    %c0_i32_1 = arith.constant 0 : i32
    return %c0_i32, %c0_i32_0 : i32, i32
  }
  func.func @transform_39(%arg0: i32) -> (i32, i32) {
    %c0_i32 = arith.constant 0 : i32
    %c0_i32_0 = arith.constant 0 : i32
    %c0_i32_1 = arith.constant 0 : i32
    return %c0_i32, %c0_i32_0 : i32, i32
  }
  func.func @transform_40(%arg0: i32) -> (i32, i32) {
    %c0_i32 = arith.constant 0 : i32
    %c0_i32_0 = arith.constant 0 : i32
    %c0_i32_1 = arith.constant 0 : i32
    return %c0_i32, %c0_i32_0 : i32, i32
  }
  func.func @transform_41(%arg0: i32) -> (i32, i32) {
    %c0_i32 = arith.constant 0 : i32
    %c0_i32_0 = arith.constant 0 : i32
    %c0_i32_1 = arith.constant 0 : i32
    return %c0_i32, %c0_i32_0 : i32, i32
  }
  func.func @transform_42(%arg0: i32) -> (i32, i32) {
    %c0_i32 = arith.constant 0 : i32
    %c0_i32_0 = arith.constant 0 : i32
    %c0_i32_1 = arith.constant 0 : i32
    return %c0_i32, %c0_i32_0 : i32, i32
  }
  func.func @transform_43(%arg0: i32) -> (i32, i32) {
    %c0_i32 = arith.constant 0 : i32
    %c0_i32_0 = arith.constant 0 : i32
    %c0_i32_1 = arith.constant 0 : i32
    return %c0_i32, %c0_i32_0 : i32, i32
  }
  func.func @transform_44(%arg0: i32) -> (i32, i32) {
    %c0_i32 = arith.constant 0 : i32
    %c0_i32_0 = arith.constant 0 : i32
    %c0_i32_1 = arith.constant 0 : i32
    return %c0_i32, %c0_i32_0 : i32, i32
  }
  func.func @transform_45(%arg0: i32) -> (i32, i32) {
    %c0_i32 = arith.constant 0 : i32
    %c0_i32_0 = arith.constant 0 : i32
    %c0_i32_1 = arith.constant 0 : i32
    return %c0_i32, %c0_i32_0 : i32, i32
  }
  func.func @transform_46(%arg0: i32) -> (i32, i32) {
    %c0_i32 = arith.constant 0 : i32
    %c0_i32_0 = arith.constant 0 : i32
    %c0_i32_1 = arith.constant 0 : i32
    return %c0_i32, %c0_i32_0 : i32, i32
  }
  func.func @transform_47(%arg0: i32) -> (i32, i32) {
    %c0_i32 = arith.constant 0 : i32
    %c0_i32_0 = arith.constant 0 : i32
    %c0_i32_1 = arith.constant 0 : i32
    return %c0_i32, %c0_i32_0 : i32, i32
  }
  func.func @transform_48(%arg0: i32) -> (i32, i32) {
    %c0_i32 = arith.constant 0 : i32
    %c0_i32_0 = arith.constant 0 : i32
    %c0_i32_1 = arith.constant 0 : i32
    return %c0_i32, %c0_i32_0 : i32, i32
  }
  func.func @transform_49(%arg0: i32) -> (i32, i32) {
    %c0_i32 = arith.constant 0 : i32
    %c0_i32_0 = arith.constant 0 : i32
    %c0_i32_1 = arith.constant 0 : i32
    return %c0_i32, %c0_i32_0 : i32, i32
  }
  func.func @transform_50(%arg0: i32) -> (i32, i32) {
    %c0_i32 = arith.constant 0 : i32
    %c0_i32_0 = arith.constant 0 : i32
    %c0_i32_1 = arith.constant 0 : i32
    return %c0_i32, %c0_i32_0 : i32, i32
  }
  func.func @transform_51(%arg0: i32) -> (i32, i32) {
    %c0_i32 = arith.constant 0 : i32
    %c0_i32_0 = arith.constant 0 : i32
    %c0_i32_1 = arith.constant 0 : i32
    return %c0_i32, %c0_i32_0 : i32, i32
  }
  func.func @transform_52(%arg0: i32) -> (i32, i32) {
    %c0_i32 = arith.constant 0 : i32
    %c0_i32_0 = arith.constant 0 : i32
    %c0_i32_1 = arith.constant 0 : i32
    return %c0_i32, %c0_i32_0 : i32, i32
  }
  func.func @transform_53(%arg0: i32) -> (i32, i32) {
    %c0_i32 = arith.constant 0 : i32
    %c0_i32_0 = arith.constant 0 : i32
    %c0_i32_1 = arith.constant 0 : i32
    return %c0_i32, %c0_i32_0 : i32, i32
  }
  func.func @transform_54(%arg0: i32) -> (i32, i32, i32) {
    %c0_i32 = arith.constant 0 : i32
    %c0_i32_0 = arith.constant 0 : i32
    %c0_i32_1 = arith.constant 0 : i32
    return %arg0, %c0_i32, %c0_i32_0 : i32, i32, i32
  }
}

</mosaic_0001>

<bundles_post_ra>
// kernel: set_transformer_forward.1
= control target key start
LH: loop header
LB: loop body
LE: loop exit
PB: predicated region body
PF: predicated region fallthrough
CT: control target
= control target key end

     0   :  { %s11669_s6 = smov 1   ;;  %s11670_s10 = smov 2   ;;  %s13243_s0 = inlined_call_operand.smem [shape: u32[55], index: -1, kind: input, shape index: {}] }
   0x1   :  { %s11760_s5 = sld [smem:[%s13243_s0]]   ;;  %s11671_s14 = smov 3  }
   0x2   :  { %s11765_s9 = sld [smem:[%s13243_s0 + %s11669_s6]]   ;;  %s11672_s18 = smov 4  }
   0x3   :  { %s11770_s13 = sld [smem:[%s13243_s0 + %s11670_s10]]   ;;  %s11673_s22 = smov 5  }
   0x4   :  { %s11775_s17 = sld [smem:[%s13243_s0 + %s11671_s14]]   ;;  %s11674_s26 = smov 6  }
   0x5   :  { %s11780_s21 = sld [smem:[%s13243_s0 + %s11672_s18]]   ;;  %s11675_s30 = smov 7  }
   0x6   :  { %s11785_s25 = sld [smem:[%s13243_s0 + %s11673_s22]]   ;;  %s11676_s4 = smov 8  }
   0x7   :  { %13304 = sst [smem:[#allocation40_spill]] %s11760_s5  ;;  %s11677_s10 = smov 9  }
   0x8   :  { %13305 = sst [smem:[#allocation41_spill]] %s11765_s9  ;;  %s11678_s15 = smov 10  }
   0x9   :  { %13306 = sst [smem:[#allocation42_spill]] %s11770_s13  ;;  %s11679_s20 = smov 11  }
   0xa   :  { %13307 = sst [smem:[#allocation43_spill]] %s11775_s17  ;;  %s11681_s1 = smov 13  }
   0xb   :  { %13308 = sst [smem:[#allocation44_spill]] %s11780_s21  ;;  %s11682_s7 = smov 14  }
   0xc   :  { %13309 = sst [smem:[#allocation45_spill]] %s11785_s25  ;;  %s11684_s22 = smov 16  }
   0xd   :  { %s11790_s29 = sld [smem:[%s13243_s0 + %s11674_s26]]   ;;  %s11680_s26 = smov 12  }
   0xe   :  { %s11795_s3 = sld [smem:[%s13243_s0 + %s11675_s30]]   ;;  %s11685_s28 = smov 17  }
   0xf   :  { %s11800_s8 = sld [smem:[%s13243_s0 + %s11676_s4]]  }
  0x10   :  { %s11805_s14 = sld [smem:[%s13243_s0 + %s11677_s10]]  }
  0x11   :  { %s11810_s19 = sld [smem:[%s13243_s0 + %s11678_s15]]   ;;  %s11683_s15 = smov 15  }
  0x12   :  { %s11815_s24 = sld [smem:[%s13243_s0 + %s11679_s20]]  }
  0x13   :  { %13310 = sst [smem:[#allocation46_spill]] %s11790_s29 }
  0x14   :  { %13311 = sst [smem:[#allocation47_spill]] %s11795_s3 }
  0x15   :  { %13312 = sst [smem:[#allocation48_spill]] %s11800_s8 }
  0x16   :  { %13313 = sst [smem:[#allocation49_spill]] %s11805_s14 }
  0x17   :  { %s11820_s30 = sld [smem:[%s13243_s0 + %s11680_s26]]  }
  0x18   :  { %13314 = sst [smem:[#allocation50_spill]] %s11815_s24 }
  0x19   :  { %s11825_s6 = sld [smem:[%s13243_s0 + %s11681_s1]]  }
  0x1a   :  { %s11830_s12 = sld [smem:[%s13243_s0 + %s11682_s7]]   ;;  %s11686_s7 = smov 18  }
  0x1b   :  { %s11835_s20 = sld [smem:[%s13243_s0 + %s11683_s15]]   ;;  %s11687_s15 = smov 19  }
  0x1c   :  { %s11840_s27 = sld [smem:[%s13243_s0 + %s11684_s22]]   ;;  %s11688_s22 = smov 20  }
  0x1d   :  { %13315 = sst [smem:[#allocation51_spill]] %s11820_s30 }
  0x1e   :  { %s11845_s4 = sld [smem:[%s13243_s0 + %s11685_s28]]   ;;  %s11689_s28 = smov 21  }
  0x1f   :  { %13316 = sst [smem:[#allocation52_spill]] %s11825_s6 }
  0x20   :  { %13317 = sst [smem:[#allocation53_spill]] %s11830_s12 }
  0x21   :  { %13318 = sst [smem:[#allocation54_spill]] %s11835_s20 }
  0x22   :  { %13319 = sst [smem:[#allocation55_spill]] %s11840_s27 }
  0x23   :  { %s11850_s6 = sld [smem:[%s13243_s0 + %s11686_s7]]   ;;  %s11690_s7 = smov 22  }
  0x24   :  { %13320 = sst [smem:[#allocation56_spill]] %s11845_s4 }
  0x25   :  { %s11855_s20 = sld [smem:[%s13243_s0 + %s11687_s15]]   ;;  %s11691_s15 = smov 23  }
  0x26   :  { %s11860_s27 = sld [smem:[%s13243_s0 + %s11688_s22]]   ;;  %s11692_s22 = smov 24  }
  0x27   :  { %s11865_s24 = sld [smem:[%s13243_s0 + %s11689_s28]]   ;;  %s11693_s28 = smov 25  }
  0x28   :  { %s11870_s12 = sld [smem:[%s13243_s0 + %s11690_s7]]   ;;  %s11694_s7 = smov 26  }
  0x29   :  { %13321 = sst [smem:[#allocation57_spill]] %s11850_s6 }
  0x2b   :  { %13322 = sst [smem:[#allocation58_spill]] %s11855_s20 }
  0x2c   :  { %13323 = sst [smem:[#allocation59_spill]] %s11860_s27 }
  0x2d   :  { %13324 = sst [smem:[#allocation60_spill]] %s11865_s24 }
  0x2e   :  { %13325 = sst [smem:[#allocation61_spill]] %s11870_s12 }
  0x2f   :  { %s11875_s20 = sld [smem:[%s13243_s0 + %s11691_s15]]   ;;  %s11695_s15 = smov 27  }
  0x30   :  { %s11880_s27 = sld [smem:[%s13243_s0 + %s11692_s22]]   ;;  %s11696_s22 = smov 28  }
  0x31   :  { %s11885_s24 = sld [smem:[%s13243_s0 + %s11693_s28]]   ;;  %s11697_s28 = smov 29  }
  0x32   :  { %s11890_s12 = sld [smem:[%s13243_s0 + %s11694_s7]]   ;;  %s11698_s7 = smov 30  }
  0x35   :  { %13326 = sst [smem:[#allocation62_spill]] %s11875_s20 }
  0x36   :  { %13327 = sst [smem:[#allocation63_spill]] %s11880_s27 }
  0x37   :  { %13328 = sst [smem:[#allocation64_spill]] %s11885_s24 }
  0x38   :  { %13329 = sst [smem:[#allocation65_spill]] %s11890_s12 }
  0x39   :  { %s11895_s20 = sld [smem:[%s13243_s0 + %s11695_s15]]   ;;  %s11699_s15 = smov 31  }
  0x3a   :  { %s11900_s27 = sld [smem:[%s13243_s0 + %s11696_s22]]   ;;  %s11700_s22 = smov 32  }
  0x3b   :  { %s11905_s24 = sld [smem:[%s13243_s0 + %s11697_s28]]   ;;  %s11701_s28 = smov 33  }
  0x3c   :  { %s11910_s12 = sld [smem:[%s13243_s0 + %s11698_s7]]   ;;  %s11702_s7 = smov 34  }
  0x3f   :  { %13330 = sst [smem:[#allocation66_spill]] %s11895_s20 }
  0x40   :  { %13331 = sst [smem:[#allocation67_spill]] %s11900_s27 }
  0x41   :  { %13332 = sst [smem:[#allocation68_spill]] %s11905_s24 }
  0x42   :  { %13333 = sst [smem:[#allocation69_spill]] %s11910_s12 }
  0x43   :  { %s11915_s20 = sld [smem:[%s13243_s0 + %s11699_s15]]   ;;  %s11703_s15 = smov 35  }
  0x44   :  { %s11920_s27 = sld [smem:[%s13243_s0 + %s11700_s22]]   ;;  %s11704_s22 = smov 36  }
  0x45   :  { %s11925_s24 = sld [smem:[%s13243_s0 + %s11701_s28]]   ;;  %s11705_s28 = smov 37  }
  0x46   :  { %s11930_s12 = sld [smem:[%s13243_s0 + %s11702_s7]]   ;;  %s11706_s7 = smov 38  }
  0x49   :  { %13334 = sst [smem:[#allocation70_spill]] %s11915_s20 }
  0x4a   :  { %13335 = sst [smem:[#allocation71_spill]] %s11920_s27 }
  0x4b   :  { %13336 = sst [smem:[#allocation72_spill]] %s11925_s24 }
  0x4c   :  { %13337 = sst [smem:[#allocation73_spill]] %s11930_s12 }
  0x4d   :  { %s11935_s20 = sld [smem:[%s13243_s0 + %s11703_s15]]   ;;  %s11707_s15 = smov 39  }
  0x4e   :  { %s11940_s27 = sld [smem:[%s13243_s0 + %s11704_s22]]   ;;  %s11708_s22 = smov 40  }
  0x4f   :  { %s11945_s24 = sld [smem:[%s13243_s0 + %s11705_s28]]   ;;  %s11709_s28 = smov 41  }
  0x50   :  { %s11950_s12 = sld [smem:[%s13243_s0 + %s11706_s7]]   ;;  %s11710_s7 = smov 42  }
  0x51   :  { %s11955_s30 = sld [smem:[%s13243_s0 + %s11707_s15]]   ;;  %s11711_s15 = smov 43  }
  0x52   :  { %s11965_s8 = sld [smem:[%s13243_s0 + %s11709_s28]]   ;;  %s11713_s28 = smov 45  }
  0x53   :  { %s11985_s25 = sld [smem:[%s13243_s0 + %s11713_s28]]   ;;  %s11717_s28 = smov 49  }
  0x54   :  { %13338 = sst [smem:[#allocation74_spill]] %s11940_s27 }
  0x55   :  { %s11960_s27 = sld [smem:[%s13243_s0 + %s11708_s22]]   ;;  %s11712_s22 = smov 44  }
  0x56   :  { %13339 = sst [smem:[#allocation75_spill]] %s11950_s12 }
  0x57   :  { %13340 = sst [smem:[#allocation76_spill]] %s11955_s30 }
  0x58   :  { %13342 = sst [smem:[#allocation78_spill]] %s11965_s8 }
  0x59   :  { %s11970_s12 = sld [smem:[%s13243_s0 + %s11710_s7]]   ;;  %s11714_s7 = smov 46  }
  0x5a   :  { %s11975_s30 = sld [smem:[%s13243_s0 + %s11711_s15]]   ;;  %s11715_s15 = smov 47  }
  0x5b   :  { %13341 = sst [smem:[#allocation77_spill]] %s11960_s27 }
  0x5c   :  { %s11980_s27 = sld [smem:[%s13243_s0 + %s11712_s22]]   ;;  %s11716_s22 = smov 48  }
  0x5d   :  { %s11995_s29 = sld [smem:[%s13243_s0 + %s11715_s15]]   ;;  %s11719_s15 = smov 51  }
  0x5e   :  { %s12005_s13 = sld [smem:[%s13243_s0 + %s11717_s28]]   ;;  %s11721_s28 = smov 53  }
  0x5f   :  { %13343 = sst [smem:[#allocation79_spill]] %s11970_s12 }
  0x60   :  { %s11990_s12 = sld [smem:[%s13243_s0 + %s11714_s7]]   ;;  %s11718_s7 = smov 50  }
  0x61   :  { %s12025_s21 = sld [smem:[%s13243_s0 + %s11721_s28]]  }
  0x62   :  { %13344 = sst [smem:[#allocation80_spill]] %s11980_s27 }
  0x63   :  { %13346 = sst [smem:[#allocation82_spill]] %s11995_s29 }
  0x64   :  { %s12000_s27 = sld [smem:[%s13243_s0 + %s11716_s22]]   ;;  %s11720_s22 = smov 52  }
  0x65   :  { %s12015_s29 = sld [smem:[%s13243_s0 + %s11719_s15]]  }
  0x66   :  { %13345 = sst [smem:[#allocation81_spill]] %s11990_s12 }
  0x67   :  { %s12010_s12 = sld [smem:[%s13243_s0 + %s11718_s7]]   ;;  %s11722_s7 = smov 54  }
  0x68   :  { %s12030_s5 = sld [smem:[%s13243_s0 + %s11722_s7]]  }
  0x6a   :  { %13347 = sst [smem:[#allocation83_spill]] %s12000_s27 }
  0x6b   :  { %s12020_s27 = sld [smem:[%s13243_s0 + %s11720_s22]]  }
  0x6c   :  { %114 = vsyncpa [#allocation3], 0 }
  0x6d   :  { %115 = vsyncpa [#allocation6], 0 }
  0x6e   :  { %116 = vsyncpa [#allocation9], 0 }
  0x6f   :  { %117 = vsyncpa [#allocation12], 0 }
  0x70   :  { %118 = vsyncpa [#allocation15], 0 }
  0x71   :  { %119 = vsyncpa [#allocation18], 0 }
  0x72   :  { %120 = vsyncpa [#allocation21], 0 }
  0x73   :  { %121 = vsyncpa [#allocation24], 0 }
  0x74   :  { %122 = vsyncpa [#allocation27], 0 }
  0x75   :  { %123 = vsyncpa [#allocation4], 0 }
  0x76   :  { %125 = vsyncpa [#allocation4 + $0x1], 0  ;;  %s12032_s15 = smov 0   ;;  %s12034_s16 = smov 0  }
  0x77   :  { %s12036_s18 = smov 0   ;;  %s12038_s22 = smov 0  }
  0x78 LB: > { %s13348_s9 = sld [smem:[#allocation41_spill]]  ;;  %s13349_s8 = sld [smem:[#allocation78_spill]]  ;;  %s11663_s18 = sphi %s12036_s18, %s13436_s18   ;;  %s11659_s16 = sphi %s12034_s16, %s13438_s16   ;;  %s11655_s15 = sphi %s12032_s15, %s13437_s15   ;;  %s11667_s22 = sphi %s12038_s22, %s13434_s22  }
  0x79   : > { %s13350_s6 = sld [smem:[#allocation57_spill]]  ;;  %s13351_s3 = sld [smem:[#allocation47_spill]] }
  0x7a   : > { %s13352_s4 = sld [smem:[#allocation56_spill]]  ;;  %s13353_s17 = sld [smem:[#allocation43_spill]] }
  0x7b   : > { %s13354_s14 = sld [smem:[#allocation49_spill]]  ;;  %13355 = sst [smem:[#allocation84_spill]] %s11655_s15 }
  0x7c   : > { %13356 = sst [smem:[#allocation85_spill]] %s11663_s18  ;;  %s12053_s0 = sadd.s32 4294967295, %s11667_s22  }
  0x7d   : > { %s9038_s23 = sadd.s32 4294967294, %s11667_s22   ;;  %s12057_s26 = sadd.s32 1, %s11667_s22  }
  0x7e   : > { %13357 = sst [smem:[#allocation86_spill]] %s12057_s26  ;;  %s1277_s28 = sadd.s32 1, %s11663_s18 }
  0x7f   : > { %s1274_s1 = ssub.s32 %s11667_s22, %s12057_s26  ;;  %p1287_p0 = scmp.ne.s32.totalorder %s11663_s18, %s11659_s16 }
  0x80   : > { %p1275_p1 = scmp.eq.s32.totalorder %s1274_s1, 0  ;;  %p1288_p2 = scmp.eq.s32.totalorder %s12053_s0, 1 }
  0x81   : > { %p1293_p3 = scmp.ne.s32.totalorder %s11659_s16, %s11655_s15  ;;  %p1294_p4 = scmp.eq.s32.totalorder %s9038_s23, 1 }
  0x82   : > { %s12068_s2 = scalar_select %p1275_p1, %s11663_s18, %s1277_s28  }
  0x83   : > { %p12070_p5 = por %p1288_p2, %p1287_p0  ;;  %p12074_p6 = por %p1294_p4, %p1293_p3 }
  0x84   : > { %13358 = sst [smem:[#allocation87_spill]] %s12068_s2  ;;  %p9039_p7 = scmp.ge.s32.totalorder %s11667_s22, 1 }
  0x85   : > { %s13359_s7 = scalar_select %p12070_p5, 1, 0 }
  0x86   : > { %s13360_s10 = scalar_select %p12074_p6, 1, 0 }
  0x87   : > { %p1301_p8 = scmp.lt.s32.totalorder %s11667_s22, 3  ;;  %p13269_p9 = scmp.eq.s32.totalorder %s12053_s0, 0 }
  0x88   : > { %13361 = sst [smem:[#allocation88_spill]] %s13360_s10  ;;  %s11723_s23 = smov [#allocation5]  }
  0x89   : > { %p12081_p10 = pnand %p9039_p7, %p1301_p8  ;;  %s1330_s28 = sshll.u32 %s11723_s23, 4  ;;  %s1331_s28 = int_to_ptr.vmem [resolvable:$true] %s1330_s28 }
  0x8a   : > { %s11724_s1 = smov [#allocation8]   ;;  %s11725_s26 = smov [#allocation11]  }
  0x8b   : > { %s13362_s11 = scalar_select %p12081_p10, 1, 0 }
  0x8c   : > { %p10578_p11 = pneg %p12081_p10  ;;  %s1364_s2 = sshll.u32 %s11724_s1, 4  ;;  %s12093_s2 = int_to_ptr.vmem [resolvable:$true] %s1364_s2 }
  0x8d   : > { %s1404_s10 = sshll.u32 %s11725_s26, 4  ;;  %s11093_s15 = scalar_lea.hbm %s13353_s17, 16  ;;  %s12095_s10 = int_to_ptr.vmem [resolvable:$true] %s1404_s10 }
  0x8e   : > { %p12089_p12 = pnand %p13269_p9, %p10578_p11  ;;  %p11094_p13 = scmp.ne.s32.totalorder %s13353_s17, %s11093_s15 }
  0x8f   : > { %p11100_p3 = scmp.lt.u32.totalorder %s11093_s15, %s13353_s17 }
  0x90   : > { %p12101_p0 = pneg %p12089_p12 }
  0x92   : > { %p11096_p1 = pnand %p12101_p0, %p11094_p13 }
  0x94   : > { %p11097_p2 = pneg %p11096_p1 }
  0x96   : > { %p11102_p4 = pnand %p11100_p3, %p11097_p2 }
  0x98   : > { %11105 = shalt.err (!%p11102_p4)
}
  0x99   : > { %s11106_s1 = scalar_lea.vmem %s1331_s28, 16  ;;  %s11113_s26 = scalar_lea.vmem %s1331_s28, 32 }
  0x9a   : > { %p11107_p7 = scmp.ne.s32.totalorder %s1331_s28, %s11106_s1  ;;  %p11114_p9 = scmp.lt.s32.totalorder %s1331_s28, %s1331_s28 }
  0x9b   : > { %p11115_p6 = scmp.lt.s32.totalorder %s11113_s26, %s11106_s1 }
  0x9c   : > { %p11109_p8 = pnand %p11107_p7, %p12101_p0 }
  0x9d   : > { %p11116_p5 = por %p11115_p6, %p11114_p9 }
  0x9e   : > { %p11110_p11 = pneg %p11109_p8 }
  0xa0   : > { %p11117_p10 = pnand %p11116_p5, %p11110_p11 }
  0xa2   : > { %11120 = shalt.err (!%p11117_p10)
}
  0xa3   : > { %10584 = dma.hbm_to_vmem [thread:$0]  (!%p12089_p12), %s13353_s17, 16, %s1331_s28, [#allocation6]  }
  0xa4   : > { %s11121_s15 = scalar_lea.hbm %s13354_s14, 16 }
  0xa5   : > { %p11122_p13 = scmp.ne.s32.totalorder %s13354_s14, %s11121_s15  ;;  %p11128_p3 = scmp.lt.u32.totalorder %s11121_s15, %s13354_s14 }
  0xa7   : > { %p11124_p1 = pnand %p11122_p13, %p12101_p0 }
  0xa9   : > { %p11125_p2 = pneg %p11124_p1 }
  0xab   : > { %p11130_p4 = pnand %p11128_p3, %p11125_p2 }
  0xad   : > { %11133 = shalt.err (!%p11130_p4)
}
  0xae   : > { %s11134_s1 = scalar_lea.vmem %s12093_s2, 16  ;;  %s11141_s26 = scalar_lea.vmem %s12093_s2, 32 }
  0xaf   : > { %p11135_p5 = scmp.ne.s32.totalorder %s12093_s2, %s11134_s1  ;;  %p11142_p10 = scmp.lt.s32.totalorder %s12093_s2, %s12093_s2 }
  0xb0   : > { %p11143_p7 = scmp.lt.s32.totalorder %s11141_s26, %s11134_s1 }
  0xb1   : > { %p11137_p6 = pnand %p11135_p5, %p12101_p0 }
  0xb2   : > { %p11144_p8 = por %p11143_p7, %p11142_p10 }
  0xb3   : > { %p11138_p9 = pneg %p11137_p6 }
  0xb5   : > { %p11145_p11 = pnand %p11144_p8, %p11138_p9 }
  0xb7   : > { %11148 = shalt.err (!%p11145_p11)
}
  0xb8   : > { %10590 = dma.hbm_to_vmem [thread:$0]  (!%p12089_p12), %s13354_s14, 16, %s12093_s2, [#allocation9]  }
  0xb9   : > { %s11149_s28 = scalar_lea.hbm %s13352_s4, 16 }
  0xba   : > { %p11150_p13 = scmp.ne.s32.totalorder %s13352_s4, %s11149_s28  ;;  %p11156_p3 = scmp.lt.u32.totalorder %s11149_s28, %s13352_s4 }
  0xbc   : > { %p11152_p1 = pnand %p11150_p13, %p12101_p0 }
  0xbe   : > { %p11153_p2 = pneg %p11152_p1 }
  0xc0   : > { %p11158_p4 = pnand %p11156_p3, %p11153_p2 }
  0xc2   : > { %11161 = shalt.err (!%p11158_p4)
}
  0xc3   : > { %s11162_s15 = scalar_lea.vmem %s12095_s10, 16  ;;  %s11169_s1 = scalar_lea.vmem %s12095_s10, 32 }
  0xc4   : > { %p11163_p5 = scmp.ne.s32.totalorder %s12095_s10, %s11162_s15  ;;  %p11170_p10 = scmp.lt.s32.totalorder %s12095_s10, %s12095_s10 }
  0xc5   : > { %p11171_p7 = scmp.lt.s32.totalorder %s11169_s1, %s11162_s15 }
  0xc6   : > { %p11165_p6 = pnand %p11163_p5, %p12101_p0 }
  0xc7   : > { %p11172_p8 = por %p11171_p7, %p11170_p10 }
  0xc8   : > { %p11166_p9 = pneg %p11165_p6 }
  0xca   : > { %p11173_p11 = pnand %p11172_p8, %p11166_p9 }
  0xcc   : > { %11176 = shalt.err (!%p11173_p11)
}
  0xcd   : > { %10596 = dma.hbm_to_vmem [thread:$0]  (!%p12089_p12), %s13352_s4, 16, %s12095_s10, [#allocation12]  }
  0xce   : > { %s11726_s2 = smov [#allocation14]   ;;  %s11727_s28 = smov [#allocation17]  }
  0xcf   : > { %s1476_s26 = sshll.u32 %s11726_s2, 4  ;;  %s1510_s14 = sshll.u32 %s11727_s28, 4  ;;  %s1477_s26 = int_to_ptr.vmem [resolvable:$true] %s1476_s26  ;;  %s1511_s14 = int_to_ptr.vmem [resolvable:$true] %s1510_s14 }
  0xd0   : > { %s11177_s17 = scalar_lea.hbm %s11935_s20, 128 }
  0xd1   : > { %p11178_p13 = scmp.ne.s32.totalorder %s11935_s20, %s11177_s17  ;;  %p11184_p3 = scmp.lt.u32.totalorder %s11177_s17, %s11935_s20 }
  0xd3   : > { %p11180_p1 = pnand %p11178_p13, %p12101_p0 }
  0xd5   : > { %p11181_p2 = pneg %p11180_p1 }
  0xd7   : > { %p11186_p4 = pnand %p11184_p3, %p11181_p2 }
  0xd9   : > { %11189 = shalt.err (!%p11186_p4)
}
  0xda   : > { %s11190_s15 = scalar_lea.vmem %s1477_s26, 128  ;;  %p11198_p10 = scmp.lt.s32.totalorder %s1477_s26, %s1477_s26 }
  0xdb   : > { %p11191_p5 = scmp.ne.s32.totalorder %s1477_s26, %s11190_s15  ;;  %p11199_p7 = scmp.lt.s32.totalorder %s11190_s15, %s11190_s15 }
  0xdd   : > { %p11193_p6 = pnand %p11191_p5, %p12101_p0  ;;  %p11200_p8 = por %p11199_p7, %p11198_p10 }
  0xdf   : > { %p11194_p9 = pneg %p11193_p6 }
  0xe1   : > { %p11201_p11 = pnand %p11200_p8, %p11194_p9 }
  0xe3   : > { %11204 = shalt.err (!%p11201_p11)
}
  0xe4   : > { %10602 = dma.hbm_to_vmem [thread:$0]  (!%p12089_p12), %s11935_s20, 128, %s1477_s26, [#allocation15]  }
  0xe5   : > { %s11205_s17 = scalar_lea.hbm %s13349_s8, 16 }
  0xe6   : > { %p11206_p13 = scmp.ne.s32.totalorder %s13349_s8, %s11205_s17  ;;  %p11212_p3 = scmp.lt.u32.totalorder %s11205_s17, %s13349_s8 }
  0xe8   : > { %p11208_p1 = pnand %p11206_p13, %p12101_p0 }
  0xea   : > { %p11209_p2 = pneg %p11208_p1 }
  0xec   : > { %p11214_p4 = pnand %p11212_p3, %p11209_p2 }
  0xee   : > { %11217 = shalt.err (!%p11214_p4)
}
  0xef   : > { %s11218_s10 = scalar_lea.vmem %s1511_s14, 16  ;;  %s11225_s1 = scalar_lea.vmem %s1511_s14, 32 }
  0xf0   : > { %p11219_p5 = scmp.ne.s32.totalorder %s1511_s14, %s11218_s10  ;;  %p11226_p10 = scmp.lt.s32.totalorder %s1511_s14, %s1511_s14 }
  0xf1   : > { %p11227_p7 = scmp.lt.s32.totalorder %s11225_s1, %s11218_s10 }
  0xf2   : > { %p11221_p6 = pnand %p11219_p5, %p12101_p0 }
  0xf3   : > { %p11228_p8 = por %p11227_p7, %p11226_p10 }
  0xf4   : > { %p11222_p9 = pneg %p11221_p6 }
  0xf6   : > { %p11229_p11 = pnand %p11228_p8, %p11222_p9 }
  0xf8   : > { %11232 = shalt.err (!%p11229_p11)
}
  0xf9   : > { %10608 = dma.hbm_to_vmem [thread:$0]  (!%p12089_p12), %s13349_s8, 16, %s1511_s14, [#allocation18]  }
  0xfa   : > { %s11728_s2 = smov [#allocation20]   ;;  %s11233_s28 = scalar_lea.hbm %s11985_s25, 16 }
  0xfb   : > { %s1538_s26 = sshll.u32 %s11728_s2, 4  ;;  %p11234_p13 = scmp.ne.s32.totalorder %s11985_s25, %s11233_s28  ;;  %s1539_s26 = int_to_ptr.vmem [resolvable:$true] %s1538_s26 }
  0xfc   : > { %p11240_p3 = scmp.lt.u32.totalorder %s11233_s28, %s11985_s25 }
  0xfd   : > { %p11236_p1 = pnand %p11234_p13, %p12101_p0 }
  0xff   : > { %p11237_p2 = pneg %p11236_p1 }
 0x101   : > { %p11242_p4 = pnand %p11240_p3, %p11237_p2 }
 0x103   : > { %11245 = shalt.err (!%p11242_p4)
}
 0x104   : > { %s11246_s15 = scalar_lea.vmem %s1539_s26, 16  ;;  %s11253_s17 = scalar_lea.vmem %s1539_s26, 32 }
 0x105   : > { %p11247_p5 = scmp.ne.s32.totalorder %s1539_s26, %s11246_s15  ;;  %p11254_p10 = scmp.lt.s32.totalorder %s1539_s26, %s1539_s26 }
 0x106   : > { %p11255_p7 = scmp.lt.s32.totalorder %s11253_s17, %s11246_s15 }
 0x107   : > { %p11249_p6 = pnand %p11247_p5, %p12101_p0 }
 0x108   : > { %p11256_p8 = por %p11255_p7, %p11254_p10 }
 0x109   : > { %p11250_p9 = pneg %p11249_p6 }
 0x10b   : > { %p11257_p11 = pnand %p11256_p8, %p11250_p9 }
 0x10d   : > { %11260 = shalt.err (!%p11257_p11)
}
 0x10e   : > { %10614 = dma.hbm_to_vmem [thread:$0]  (!%p12089_p12), %s11985_s25, 16, %s1539_s26, [#allocation21]  }
 0x10f   : > { %s11729_s14 = smov [#allocation23]   ;;  %s11730_s1 = smov [#allocation26]  }
 0x110   : > { %s1568_s10 = sshll.u32 %s11729_s14, 4  ;;  %s1592_s2 = sshll.u32 %s11730_s1, 4  ;;  %s1569_s10 = int_to_ptr.vmem [resolvable:$true] %s1568_s10  ;;  %s12175_s2 = int_to_ptr.vmem [resolvable:$true] %s1592_s2 }
 0x111   : > { %s11261_s28 = scalar_lea.hbm %s12010_s12, 512 }
 0x112   : > { %p11262_p13 = scmp.ne.s32.totalorder %s12010_s12, %s11261_s28  ;;  %p11268_p3 = scmp.lt.u32.totalorder %s11261_s28, %s12010_s12 }
 0x114   : > { %p11264_p1 = pnand %p11262_p13, %p12101_p0 }
 0x116   : > { %p11265_p2 = pneg %p11264_p1 }
 0x118   : > { %p11270_p4 = pnand %p11268_p3, %p11265_p2 }
 0x11a   : > { %11273 = shalt.err (!%p11270_p4)
}
 0x11b   : > { %s11274_s15 = scalar_lea.vmem %s1569_s10, 512  ;;  %p11282_p10 = scmp.lt.s32.totalorder %s1569_s10, %s1569_s10 }
 0x11c   : > { %p11275_p5 = scmp.ne.s32.totalorder %s1569_s10, %s11274_s15  ;;  %p11283_p7 = scmp.lt.s32.totalorder %s11274_s15, %s11274_s15 }
 0x11e   : > { %p11277_p6 = pnand %p11275_p5, %p12101_p0  ;;  %p11284_p8 = por %p11283_p7, %p11282_p10 }
 0x120   : > { %p11278_p9 = pneg %p11277_p6 }
 0x122   : > { %p11285_p11 = pnand %p11284_p8, %p11278_p9 }
 0x124   : > { %11288 = shalt.err (!%p11285_p11)
}
 0x125   : > { %s11731_s26 = smov 128   ;;  %s11732_s17 = smov 8  }
 0x126   : > { %10620 = dma.hbm_to_vmem [thread:$0]  (!%p12089_p12), %s12010_s12, 512, %s1569_s10, [#allocation24], %s11731_s26, %s11731_s26, %s11732_s17  }
 0x127   : > { %s11289_s14 = scalar_lea.hbm %s12020_s27, 512 }
 0x128   : > { %p11290_p13 = scmp.ne.s32.totalorder %s12020_s27, %s11289_s14  ;;  %p11296_p3 = scmp.lt.u32.totalorder %s11289_s14, %s12020_s27 }
 0x12a   : > { %p11292_p1 = pnand %p11290_p13, %p12101_p0 }
 0x12c   : > { %p11293_p2 = pneg %p11292_p1 }
 0x12e   : > { %p11298_p4 = pnand %p11296_p3, %p11293_p2 }
 0x130   : > { %11301 = shalt.err (!%p11298_p4)
}
 0x131   : > { %s11302_s1 = scalar_lea.vmem %s12175_s2, 512  ;;  %p11310_p10 = scmp.lt.s32.totalorder %s12175_s2, %s12175_s2 }
 0x132   : > { %p11303_p5 = scmp.ne.s32.totalorder %s12175_s2, %s11302_s1  ;;  %p11311_p7 = scmp.lt.s32.totalorder %s11302_s1, %s11302_s1 }
 0x134   : > { %p11305_p6 = pnand %p11303_p5, %p12101_p0  ;;  %p11312_p8 = por %p11311_p7, %p11310_p10 }
 0x136   : > { %p11306_p9 = pneg %p11305_p6 }
 0x138   : > { %p11313_p11 = pnand %p11312_p8, %p11306_p9 }
 0x13a   : > { %11316 = shalt.err (!%p11313_p11)
}
 0x13b   : > { %10626 = dma.hbm_to_vmem [thread:$0]  (!%p12089_p12), %s12020_s27, 512, %s12175_s2, [#allocation27], %s11731_s26, %s11731_s26, %s11732_s17  }
 0x13c   : > { %s11733_s10 = smov [#allocation2]   ;;  %s11734_s15 = smov [#allocation7]  }
 0x13d   : > { %s1313_s28 = sshll.u32 %s11733_s10, 4  ;;  %s1350_s14 = sshll.u32 %s11734_s15, 4  ;;  %s1314_s28 = int_to_ptr.vmem [resolvable:$true] %s1313_s28  ;;  %s12208_s14 = int_to_ptr.vmem [resolvable:$true] %s1350_s14 }
 0x13e   : > { %s11317_s1 = scalar_lea.hbm %s13348_s9, 256 }
 0x13f   : > { %p11318_p13 = scmp.ne.s32.totalorder %s13348_s9, %s11317_s1  ;;  %p11324_p3 = scmp.lt.u32.totalorder %s11317_s1, %s13348_s9 }
 0x141   : > { %p11320_p1 = pnand %p11318_p13, %p12101_p0 }
 0x143   : > { %p11321_p2 = pneg %p11320_p1 }
 0x145   : > { %p11326_p4 = pnand %p11324_p3, %p11321_p2 }
 0x147   : > { %11329 = shalt.err (!%p11326_p4)
}
 0x148   : > { %s11330_s4 = scalar_lea.vmem %s1314_s28, 256  ;;  %p11338_p10 = scmp.lt.s32.totalorder %s1314_s28, %s1314_s28 }
 0x149   : > { %p11331_p5 = scmp.ne.s32.totalorder %s1314_s28, %s11330_s4  ;;  %p11339_p7 = scmp.lt.s32.totalorder %s11330_s4, %s11330_s4 }
 0x14b   : > { %p11333_p6 = pnand %p11331_p5, %p12101_p0  ;;  %p11340_p8 = por %p11339_p7, %p11338_p10 }
 0x14d   : > { %p11334_p9 = pneg %p11333_p6 }
 0x14f   : > { %p11341_p11 = pnand %p11340_p8, %p11334_p9 }
 0x151   : > { %11344 = shalt.err (!%p11341_p11)
}
 0x152   : > { %10581 = dma.hbm_to_vmem [thread:$0]  (!%p12089_p12), %s13348_s9, 256, %s1314_s28, [#allocation3], %s11731_s26, %s11731_s26, %s11732_s17  }
 0x153   : > { %s11345_s2 = scalar_lea.hbm %s13351_s3, 16 }
 0x154   : > { %p11346_p13 = scmp.ne.s32.totalorder %s13351_s3, %s11345_s2  ;;  %p11352_p3 = scmp.lt.u32.totalorder %s11345_s2, %s13351_s3 }
 0x156   : > { %p11348_p1 = pnand %p11346_p13, %p12101_p0 }
 0x158   : > { %p11349_p2 = pneg %p11348_p1 }
 0x15a   : > { %p11354_p4 = pnand %p11352_p3, %p11349_p2 }
 0x15c   : > { %11357 = shalt.err (!%p11354_p4)
}
 0x15d   : > { %s11358_s4 = scalar_lea.vmem %s12208_s14, 16  ;;  %s11365_s10 = scalar_lea.vmem %s12208_s14, 32 }
 0x15e   : > { %p11359_p5 = scmp.ne.s32.totalorder %s12208_s14, %s11358_s4  ;;  %p11366_p10 = scmp.lt.s32.totalorder %s12208_s14, %s12208_s14 }
 0x15f   : > { %p11367_p7 = scmp.lt.s32.totalorder %s11365_s10, %s11358_s4 }
 0x160   : > { %p11361_p6 = pnand %p11359_p5, %p12101_p0 }
 0x161   : > { %p11368_p8 = por %p11367_p7, %p11366_p10 }
 0x162   : > { %p11362_p9 = pneg %p11361_p6 }
 0x164   : > { %p11369_p11 = pnand %p11368_p8, %p11362_p9 }
 0x166   : > { %11372 = shalt.err (!%p11369_p11)
}
 0x167   : > { %10587 = dma.hbm_to_vmem [thread:$0]  (!%p12089_p12), %s13351_s3, 16, %s12208_s14, [#allocation6]  }
 0x168   : > { %s11735_s28 = smov [#allocation10]   ;;  %s11736_s1 = smov [#allocation13]  }
 0x169   : > { %s1375_s15 = sshll.u32 %s11735_s28, 4  ;;  %s1414_s2 = sshll.u32 %s11736_s1, 4  ;;  %s1376_s15 = int_to_ptr.vmem [resolvable:$true] %s1375_s15  ;;  %s12239_s2 = int_to_ptr.vmem [resolvable:$true] %s1414_s2 }
 0x16a   : > { %s11373_s4 = scalar_lea.hbm %s11810_s19, 64 }
 0x16b   : > { %p11374_p13 = scmp.ne.s32.totalorder %s11810_s19, %s11373_s4  ;;  %p11380_p3 = scmp.lt.u32.totalorder %s11373_s4, %s11810_s19 }
 0x16d   : > { %p11376_p1 = pnand %p11374_p13, %p12101_p0 }
 0x16f   : > { %p11377_p2 = pneg %p11376_p1 }
 0x171   : > { %p11382_p4 = pnand %p11380_p3, %p11377_p2 }
 0x173   : > { %11385 = shalt.err (!%p11382_p4)
}
 0x174   : > { %s11386_s10 = scalar_lea.vmem %s1376_s15, 64  ;;  %p11394_p10 = scmp.lt.s32.totalorder %s1376_s15, %s1376_s15 }
 0x175   : > { %p11387_p5 = scmp.ne.s32.totalorder %s1376_s15, %s11386_s10  ;;  %p11395_p7 = scmp.lt.s32.totalorder %s11386_s10, %s11386_s10 }
 0x177   : > { %p11389_p6 = pnand %p11387_p5, %p12101_p0  ;;  %p11396_p8 = por %p11395_p7, %p11394_p10 }
 0x179   : > { %p11390_p9 = pneg %p11389_p6 }
 0x17b   : > { %p11397_p11 = pnand %p11396_p8, %p11390_p9 }
 0x17d   : > { %11400 = shalt.err (!%p11397_p11)
}
 0x17e   : > { %10593 = dma.hbm_to_vmem [thread:$0]  (!%p12089_p12), %s11810_s19, 64, %s1376_s15, [#allocation9]  }
 0x17f   : > { %s11401_s14 = scalar_lea.hbm %s13350_s6, 256 }
 0x180   : > { %p11402_p13 = scmp.ne.s32.totalorder %s13350_s6, %s11401_s14  ;;  %p11408_p3 = scmp.lt.u32.totalorder %s11401_s14, %s13350_s6 }
 0x182   : > { %p11404_p1 = pnand %p11402_p13, %p12101_p0 }
 0x184   : > { %p11405_p2 = pneg %p11404_p1 }
 0x186   : > { %p11410_p4 = pnand %p11408_p3, %p11405_p2 }
 0x188   : > { %11413 = shalt.err (!%p11410_p4)
}
 0x189   : > { %s11414_s28 = scalar_lea.vmem %s12239_s2, 256  ;;  %p11422_p10 = scmp.lt.s32.totalorder %s12239_s2, %s12239_s2 }
 0x18a   : > { %p11415_p5 = scmp.ne.s32.totalorder %s12239_s2, %s11414_s28  ;;  %p11423_p7 = scmp.lt.s32.totalorder %s11414_s28, %s11414_s28 }
 0x18c   : > { %p11417_p6 = pnand %p11415_p5, %p12101_p0  ;;  %p11424_p8 = por %p11423_p7, %p11422_p10 }
 0x18e   : > { %p11418_p9 = pneg %p11417_p6 }
 0x190   : > { %p11425_p11 = pnand %p11424_p8, %p11418_p9 }
 0x192   : > { %11428 = shalt.err (!%p11425_p11)
}
 0x193   : > { %10599 = dma.hbm_to_vmem [thread:$0]  (!%p12089_p12), %s13350_s6, 256, %s12239_s2, [#allocation12], %s11731_s26, %s11731_s26, %s11732_s17  }
 0x194   : > { %s11737_s15 = smov [#allocation16]   ;;  %s11738_s4 = smov [#allocation19]  }
 0x195   : > { %s1490_s1 = sshll.u32 %s11737_s15, 4  ;;  %s1524_s10 = sshll.u32 %s11738_s4, 4  ;;  %s1491_s1 = int_to_ptr.vmem [resolvable:$true] %s1490_s1  ;;  %s12269_s10 = int_to_ptr.vmem [resolvable:$true] %s1524_s10 }
 0x196   : > { %s11429_s14 = scalar_lea.hbm %s11945_s24, 16 }
 0x197   : > { %p11430_p13 = scmp.ne.s32.totalorder %s11945_s24, %s11429_s14  ;;  %p11436_p3 = scmp.lt.u32.totalorder %s11429_s14, %s11945_s24 }
 0x199   : > { %p11432_p1 = pnand %p11430_p13, %p12101_p0 }
 0x19b   : > { %p11433_p2 = pneg %p11432_p1 }
 0x19d   : > { %p11438_p4 = pnand %p11436_p3, %p11433_p2 }
 0x19f   : > { %11441 = shalt.err (!%p11438_p4)
}
 0x1a0   : > { %s11442_s28 = scalar_lea.vmem %s1491_s1, 16  ;;  %s11449_s26 = scalar_lea.vmem %s1491_s1, 32 }
 0x1a1   : > { %p11443_p5 = scmp.ne.s32.totalorder %s1491_s1, %s11442_s28  ;;  %p11450_p10 = scmp.lt.s32.totalorder %s1491_s1, %s1491_s1 }
 0x1a2   : > { %p11451_p7 = scmp.lt.s32.totalorder %s11449_s26, %s11442_s28 }
 0x1a3   : > { %p11445_p6 = pnand %p11443_p5, %p12101_p0 }
 0x1a4   : > { %p11452_p8 = por %p11451_p7, %p11450_p10 }
 0x1a5   : > { %p11446_p9 = pneg %p11445_p6 }
 0x1a7   : > { %p11453_p11 = pnand %p11452_p8, %p11446_p9 }
 0x1a9   : > { %11456 = shalt.err (!%p11453_p11)
}
 0x1aa   : > { %10605 = dma.hbm_to_vmem [thread:$0]  (!%p12089_p12), %s11945_s24, 16, %s1491_s1, [#allocation15]  }
 0x1ab   : > { %s11457_s17 = scalar_lea.hbm %s11975_s30, 16 }
 0x1ac   : > { %p11458_p13 = scmp.ne.s32.totalorder %s11975_s30, %s11457_s17  ;;  %p11464_p3 = scmp.lt.u32.totalorder %s11457_s17, %s11975_s30 }
 0x1ae   : > { %p11460_p1 = pnand %p11458_p13, %p12101_p0 }
 0x1b0   : > { %p11461_p2 = pneg %p11460_p1 }
 0x1b2   : > { %p11466_p4 = pnand %p11464_p3, %p11461_p2 }
 0x1b4   : > { %11469 = shalt.err (!%p11466_p4)
}
 0x1b5   : > { %s11470_s2 = scalar_lea.vmem %s12269_s10, 16  ;;  %s11477_s15 = scalar_lea.vmem %s12269_s10, 32 }
 0x1b6   : > { %p11471_p5 = scmp.ne.s32.totalorder %s12269_s10, %s11470_s2  ;;  %p11478_p10 = scmp.lt.s32.totalorder %s12269_s10, %s12269_s10 }
 0x1b7   : > { %p11479_p7 = scmp.lt.s32.totalorder %s11477_s15, %s11470_s2 }
 0x1b8   : > { %p11473_p6 = pnand %p11471_p5, %p12101_p0 }
 0x1b9   : > { %p11480_p8 = por %p11479_p7, %p11478_p10 }
 0x1ba   : > { %p11474_p9 = pneg %p11473_p6 }
 0x1bc   : > { %p11481_p11 = pnand %p11480_p8, %p11474_p9 }
 0x1be   : > { %11484 = shalt.err (!%p11481_p11)
}
 0x1bf   : > { %10611 = dma.hbm_to_vmem [thread:$0]  (!%p12089_p12), %s11975_s30, 16, %s12269_s10, [#allocation18]  }
 0x1c0   : > { %s11739_s1 = smov [#allocation22]   ;;  %s11740_s14 = smov [#allocation25]  }
 0x1c1   : > { %s1558_s4 = sshll.u32 %s11739_s1, 4  ;;  %s1582_s28 = sshll.u32 %s11740_s14, 4  ;;  %s1559_s4 = int_to_ptr.vmem [resolvable:$true] %s1558_s4  ;;  %s12297_s28 = int_to_ptr.vmem [resolvable:$true] %s1582_s28 }
 0x1c2   : > { %s11485_s26 = scalar_lea.hbm %s12005_s13, 16 }
 0x1c3   : > { %p11486_p13 = scmp.ne.s32.totalorder %s12005_s13, %s11485_s26  ;;  %p11492_p3 = scmp.lt.u32.totalorder %s11485_s26, %s12005_s13 }
 0x1c5   : > { %p11488_p1 = pnand %p11486_p13, %p12101_p0 }
 0x1c7   : > { %p11489_p2 = pneg %p11488_p1 }
 0x1c9   : > { %p11494_p4 = pnand %p11492_p3, %p11489_p2 }
 0x1cb   : > { %11497 = shalt.err (!%p11494_p4)
}
 0x1cc   : > { %s11498_s17 = scalar_lea.vmem %s1559_s4, 16  ;;  %s11505_s10 = scalar_lea.vmem %s1559_s4, 32 }
 0x1cd   : > { %p11499_p5 = scmp.ne.s32.totalorder %s1559_s4, %s11498_s17  ;;  %p11506_p10 = scmp.lt.s32.totalorder %s1559_s4, %s1559_s4 }
 0x1ce   : > { %p11507_p7 = scmp.lt.s32.totalorder %s11505_s10, %s11498_s17 }
 0x1cf   : > { %p11501_p6 = pnand %p11499_p5, %p12101_p0 }
 0x1d0   : > { %p11508_p8 = por %p11507_p7, %p11506_p10 }
 0x1d1   : > { %p11502_p9 = pneg %p11501_p6 }
 0x1d3   : > { %p11509_p11 = pnand %p11508_p8, %p11502_p9 }
 0x1d5   : > { %11512 = shalt.err (!%p11509_p11)
}
 0x1d6   : > { %10617 = dma.hbm_to_vmem [thread:$0]  (!%p12089_p12), %s12005_s13, 16, %s1559_s4, [#allocation21]  }
 0x1d7   : > { %s11513_s2 = scalar_lea.hbm %s12015_s29, 16 }
 0x1d8   : > { %p11514_p13 = scmp.ne.s32.totalorder %s12015_s29, %s11513_s2  ;;  %p11520_p3 = scmp.lt.u32.totalorder %s11513_s2, %s12015_s29 }
 0x1da   : > { %p11516_p1 = pnand %p11514_p13, %p12101_p0 }
 0x1dc   : > { %p11517_p2 = pneg %p11516_p1 }
 0x1de   : > { %p11522_p4 = pnand %p11520_p3, %p11517_p2 }
 0x1e0   : > { %11525 = shalt.err (!%p11522_p4)
}
 0x1e1   : > { %s11526_s15 = scalar_lea.vmem %s12297_s28, 16  ;;  %s11533_s1 = scalar_lea.vmem %s12297_s28, 32 }
 0x1e2   : > { %p11527_p5 = scmp.ne.s32.totalorder %s12297_s28, %s11526_s15  ;;  %p11534_p10 = scmp.lt.s32.totalorder %s12297_s28, %s12297_s28 }
 0x1e3   : > { %p11535_p7 = scmp.lt.s32.totalorder %s11533_s1, %s11526_s15 }
 0x1e4   : > { %p11529_p6 = pnand %p11527_p5, %p12101_p0 }
 0x1e5   : > { %p11536_p8 = por %p11535_p7, %p11534_p10 }
 0x1e6   : > { %p11530_p9 = pneg %p11529_p6 }
 0x1e8   : > { %p11537_p11 = pnand %p11536_p8, %p11530_p9 }
 0x1ea   : > { %11540 = shalt.err (!%p11537_p11)
}
 0x1eb   : > { %10623 = dma.hbm_to_vmem [thread:$0]  (!%p12089_p12), %s12015_s29, 16, %s12297_s28, [#allocation24]  }
 0x1ec   : > { %s11741_s4 = smov [#allocation28]   ;;  %s11541_s26 = scalar_lea.hbm %s12025_s21, 16 }
 0x1ed   : > { %s1606_s14 = sshll.u32 %s11741_s4, 4  ;;  %p11542_p13 = scmp.ne.s32.totalorder %s12025_s21, %s11541_s26  ;;  %s1607_s14 = int_to_ptr.vmem [resolvable:$true] %s1606_s14 }
 0x1ee   : > { %p11548_p3 = scmp.lt.u32.totalorder %s11541_s26, %s12025_s21 }
 0x1ef   : > { %p11544_p1 = pnand %p11542_p13, %p12101_p0 }
 0x1f1   : > { %p11545_p2 = pneg %p11544_p1 }
 0x1f3   : > { %p11550_p4 = pnand %p11548_p3, %p11545_p2 }
 0x1f5   : > { %11553 = shalt.err (!%p11550_p4)
}
 0x1f6   : > { %s11554_s17 = scalar_lea.vmem %s1607_s14, 16  ;;  %s11561_s10 = scalar_lea.vmem %s1607_s14, 32 }
 0x1f7   : > { %p11555_p5 = scmp.ne.s32.totalorder %s1607_s14, %s11554_s17  ;;  %p11562_p10 = scmp.lt.s32.totalorder %s1607_s14, %s1607_s14 }
 0x1f8   : > { %p11563_p7 = scmp.lt.s32.totalorder %s11561_s10, %s11554_s17 }
 0x1f9   : > { %p11557_p6 = pnand %p11555_p5, %p12101_p0 }
 0x1fa   : > { %p11564_p8 = por %p11563_p7, %p11562_p10 }
 0x1fb   : > { %p11558_p9 = pneg %p11557_p6 }
 0x1fd   : > { %p11565_p11 = pnand %p11564_p8, %p11558_p9 }
 0x1ff   : > { %11568 = shalt.err (!%p11565_p11)
}
 0x200   : > { %10629 = dma.hbm_to_vmem [thread:$0]  (!%p12089_p12), %s12025_s21, 16, %s1607_s14, [#allocation27]  }
 0x201   : > { %p13365_p13 = scmp.ne.s32.totalorder %s13362_s11, 0 }
 0x202   : > { %p13366_p1 = scmp.eq.s32.totalorder (!%p13365_p13), %s12053_s0, 0 }
 0x203   : > { %1627 = sbr.rel (%p13365_p13) target bundleno = 16852 (0x41d4), region = 236 }
 0x20a   : > { %11614 = dma.done.wait (%p13366_p1), [#allocation3], 256   ;;  %p13367_p2 = pmov %p13366_p1 }
 0x20b   : > { %p13368_p0 = pmov %p13366_p1 }
 0x20c   : > { %11616 = vsyncadd (%p13367_p2), [#allocation3], 4294967040 }
 0x20d   : > { %11618 = dma.done.wait (%p13368_p0), [#allocation6], 32   ;;  %p13369_p3 = pmov %p13368_p0 }
 0x20e   : > { %p13370_p4 = pmov %p13368_p0 }
 0x20f   : > { %11620 = vsyncadd (%p13369_p3), [#allocation6], 4294967264 }
 0x210   : > { %11622 = dma.done.wait (%p13370_p4), [#allocation9], 80   ;;  %p13371_p12 = pmov %p13368_p0 }
 0x211   : > { %p13372_p5 = pmov %p13368_p0 }
 0x212   : > { %11624 = vsyncadd (%p13371_p12), [#allocation9], 4294967216 }
 0x213   : > { %11626 = dma.done.wait (%p13372_p5), [#allocation12], 272   ;;  %p13373_p6 = pmov %p13368_p0 }
 0x214   : > { %p13374_p9 = pmov %p13368_p0 }
 0x215   : > { %11628 = vsyncadd (%p13373_p6), [#allocation12], 4294967024 }
 0x216   : > { %11630 = dma.done.wait (%p13374_p9), [#allocation15], 144   ;;  %p13375_p10 = pmov %p13368_p0 }
 0x217   : > { %p13376_p7 = pmov %p13368_p0 }
 0x218   : > { %11632 = vsyncadd (%p13375_p10), [#allocation15], 4294967152 }
 0x219   : > { %11634 = dma.done.wait (%p13376_p7), [#allocation18], 32   ;;  %p13377_p8 = pmov %p13368_p0 }
 0x21a   : > { %p13378_p11 = pmov %p13368_p0 }
 0x21b   : > { %11636 = vsyncadd (%p13377_p8), [#allocation18], 4294967264 }
 0x21c   : > { %11638 = dma.done.wait (%p13378_p11), [#allocation21], 32   ;;  %p13379_p13 = pmov %p13368_p0 }
 0x21d   : > { %p13380_p1 = pmov %p13368_p0 }
 0x21e   : > { %11640 = vsyncadd (%p13379_p13), [#allocation21], 4294967264 }
 0x21f   : > { %11642 = dma.done.wait (%p13380_p1), [#allocation24], 528   ;;  %p13381_p2 = pmov %p13368_p0 }
 0x221   : > { %11644 = vsyncadd (%p13381_p2), [#allocation24], 4294966768 }
 0x222   : > { %11646 = dma.done.wait (%p13368_p0), [#allocation27], 528   ;;  %p13382_p3 = pmov %p13368_p0 }
 0x223   : > { %s13383_s18 = sld [smem:[#allocation40_spill]]  ;;  %s13384_s11 = sld [smem:[#allocation44_spill]]  ;;  %vm1934_vm0 = vcmask 1043456   ;;  %vm1927_vm1 = vcmask 31744   ;;  %vm1837_vm2 = vcmask 261120   ;;  %v1824_v8 = vld [vmem:[#allocation2] sm:$0xff] }
 0x224   : > { %11648 = vsyncadd (%p13382_p3), [#allocation27], 4294966768  ;;  %s13385_s23 = sld [smem:[#allocation42_spill]]  ;;  %p1817_p4 = scmp.lt.s32.totalorder %s12053_s0, 1  ;;  %9589 = vmatprep.mubr.msk.f32.mxu0 %vm1837_vm2, %v1824_v8  ;;  %v1825_v11 = vld [vmem:[#allocation2 + $0x8] sm:$0xff]  ;;  %vm2099_vm3 = vcmask 64512  }
 0x225   : > { %s13386_s1 = sld [smem:[#allocation46_spill]]  ;;  %s13387_s4 = sld [smem:[#allocation45_spill]]  ;;  %v9086_v17 = vld [vmem:[#allocation7] ss:$0 sm:$0xff]  ;;  %vm12403_vm4 = vmpackc.low %vm2099_vm3, %vm2099_vm3  ;;  %v9079_v25 = vld [vmem:[#allocation5] ss:$0 sm:$0xff] }
 0x226   : > { %s1818_s28 = scalar_select %p1817_p4, %s12053_s0, 1  ;;  %vm2187_vm5 = vcmask 130048   ;;  %vm2929_vm6 = vcmask 195584   ;;  %vm11749_vm7 = vmmov 0  }
 0x227   : > { %s13285_s14 = smov 120   ;;  %s13283_s26 = smov 112  }
 0x228   : > { %s9278_s2 = sshll.u32 %s1818_s28, 4  ;;  %s13281_s17 = smov 104  }
 0x229   : > { %s1821_s15 = scalar_lea.vmem %s13383_s18, %s9278_s2  ;;  %v1919_v0 = vld [vmem:[%s13384_s11] sm:$0xf]  ;;  %s13279_s10 = smov 8  }
 0x22a   : > { %v12377_v1 = vld [vmem:[%s1821_s15] sm:$0xff]  ;;  %9592 = vmatprep.subr.msk.mxu1 %vm1934_vm0, %v1919_v0  ;;  %v1827_v3 = vld [vmem:[%s13385_s23 + $0x8] sm:$0xff]  ;;  %v1828_v5 = vld [vmem:[%s13385_s23 + $0x10] sm:$0xff]  ;;  %s13277_s18 = smov 16   ;;  %s13390_s11 = sld [smem:[#allocation48_spill]] }
 0x22b   : > { %v1826_v2 = vld [vmem:[%s13385_s23] sm:$0xff]  ;;  %9594 = vmatprep.mubr.msk.f32.mxu1 %vm1927_vm1, %v12377_v1  ;;  %v12384_v4 = vld [vmem:[%s1821_s15 + $0x8] sm:$0xff]  ;;  %9593 = vmatpush3.msk.msra.mxu1 %vm1934_vm0, %v1919_v0  ;;  %v1829_v7 = vld [vmem:[%s13385_s23 + $0x18] sm:$0xff]  ;;  %s13275_s28 = smov 24   ;;  %s13391_s2 = sld [smem:[#allocation51_spill]] }
 0x22c   : > { %v10158_v6 = vpack.c.bf16 %v1827_v3, %v1826_v2  ;;  %9595 = vmatmul.mubr.msk.f32.vlgmr.msra.gmra.mrb[0].mxu1 %vm1927_vm1, %v12384_v4  ;;  %v10162_v9 = vpack.c.bf16 %v1829_v7, %v1828_v5  ;;  %v2013_v10 = vld [vmem:[%s13386_s1] sm:$0xf]  ;;  %s13392_s15 = sld [smem:[#allocation53_spill]]  ;;  %s13412_s3 = smov 16  }
 0x22d   : > { %9597 = vmatprep.subr.msk.mxu1 %vm1934_vm0, %v2013_v10  ;;  %9599 = vmatprep.mubr.msk.f32.mxu1 %vm1927_vm1, %v12377_v1  ;;  %v9082_v12 = vld [vmem:[%s13387_s4] ss:$0 sm:$0xff]  ;;  %s13394_s4 = sld [smem:[#allocation50_spill]]  ;;  %s13416_s6 = sld [smem:[#allocation65_spill]] }
 0x22e   : > { %10159 = vmatprep.subr.bf16.mxu0 %v10158_v6  ;;  %9598 = vmatpush3.msk.msra.mxu1 %vm1934_vm0, %v2013_v10  ;;  %s13417_s8 = sld [smem:[#allocation69_spill]]  ;;  %s13418_s9 = sld [smem:[#allocation71_spill]] }
 0x22f   : > { %10161 = vmatpush3.bf16.msra.mxu0 %v10158_v6  ;;  %p13430_p5 = scmp.ne.s32.totalorder %s13359_s7, 0 }
 0x230   : > { %10163 = vmatprep.subr.bf16.mxu0 %v10162_v9  ;;  %9600 = vmatmul.mubr.msk.f32.vlgmr.msra.gmra.mrb[2].mxu1 %vm1927_vm1, %v12384_v4 }
 0x232   : > { %s13393_s1 = smov %s13392_s15 }
 0x233   : > { %10165 = vmatpush3.bf16.msra.mxu0 %v10162_v9 }
 0x236   : > { %9590 = vmatmul.mubr.msk.f32.vlgmr.msra.gmra.mrb[0].mxu0 %vm1837_vm2, %v1825_v11 }
 0x2ff   : > { %v9596_v13 = vpop.f32.mrb[0].mxu1 }
 0x300   : > { %v2010_v14 = vadd.f32 %v9596_v13, %v9082_v12  ;;  %v2004_v15 = vpop.f32.mrb[1].mxu1 }
 0x301   : > { %v2005_v16 = vadd.f32 %v9082_v12, %v2004_v15 }
 0x303   : > { %v10166_v19 = vpack.c.bf16 %v2010_v14, %v2005_v16  ;;  %v9601_v20 = vpop.f32.mrb[2].mxu1  ;;  %v12407_v21 = vpack.i.bf16 %v2010_v14, %v2005_v16 }
 0x304   : > { %v12409_v22 = vadd.f32 %v9601_v20, %v9086_v17  ;;  %v2090_v23 = vpop.f32.mrb[3].mxu1 }
 0x305   : > { %10168 = vmatprep.subr.msk.bf16.mxu1 %vm12403_vm4, %v10166_v19  ;;  %v12413_v24 = vadd.f32 %v9086_v17, %v2090_v23 }
 0x306   : > { %10171 = vmatpush3.bf16.xpose.msk.msra.mxu1 %vm12403_vm4, %v10166_v19 }
 0x307   : > { %v10172_v26 = vpack.c.bf16 %v12409_v22, %v12413_v24  ;;  %v12453_v63 = vpack.i.bf16 %v12409_v22, %v12413_v24 }
 0x309   : > { %v9591_v27 = vpop.f32.mrb[0].mxu0  ;;  %10173 = vmatprep.subr.bf16.mxu0 %v10172_v26 }
 0x30a   : > { %v1910_v28 = vpop.f32.mrb[1].mxu0  ;;  %10175 = vmatpush3.bf16.msra.mxu0 %v10172_v26  ;;  %v12421_v30 = vadd.f32 %v9591_v27, %v9079_v25 }
 0x30b   : > { %v12419_v29 = vadd.f32 %v9079_v25, %v1910_v28 }
 0x30d   : > { %2293 = vrot.lane.b32.xlu1 %v12419_v29, %s13285_s14  ;;  %9606 = vmatprep.mubr.msk.f32.mxu1 %vm2099_vm3, %v12419_v29 }
 0x30e   : > { %9607 = vmatmul.mubr.msk.f32.vlgmr.msra.gmra.mrb[4].mxu1 %vm2099_vm3, %v12421_v30 }
 0x37f   : > { %v2294_v49 = vpop.permute.xlu1 %2293 }
 0x3e1   : > { %v9608_v31 = vpop.f32.mrb[4].mxu1 }
 0x3e2   : > { %v2178_v32 = vpop.f32.mrb[5].mxu1  ;;  %v2191_v34 = vsel %vm2187_vm5, %v9608_v31, -inf }
 0x3e3   : > { %v2188_v33 = vsel %vm2187_vm5, %v2178_v32, -inf }
 0x3e4   : > { %2189 = vmax.xlane.f32.xlu0 %v2188_v33 }
 0x3e8   : > { %2192 = vmax.xlane.f32.xlu0 %v2191_v34 }
 0x3fe   : > { %10784 = vrot.lane.b32.xlu0 %v12407_v21, %s13285_s14 }
 0x471   : > { %v2190_v35 = vpop.xlane.xlu0 %2189 }
 0x472   : > { %v2194_v36 = vsub.f32 %v2178_v32, %v2190_v35 }
 0x474   : > { %v2196_v39 = vmul.f32 1.442695, %v2194_v36 }
 0x475   : > { %v2193_v37 = vpop.xlane.xlu0 %2192 }
 0x476   : > { %v2195_v38 = vsub.f32 %v9608_v31, %v2193_v37 }
 0x478   : > { %v2198_v40 = vmul.f32 1.442695, %v2195_v38 }
 0x479   : > { %v10785_v41 = vpop.permute.xlu0 %10784 }
 0x47a   : > { %10933 = vpow2.f32 %v2198_v40  ;;  %v10787_v42 = vunpack.i.h.bf16 %v10785_v41  ;;  %v10786_v43 = vunpack.i.l.bf16 %v10785_v41 }
 0x47b   : > { %10935 = vpow2.f32 %v2196_v39 }
 0x47c   : > { %v10176_v44 = vpack.c.bf16 %v10787_v42, %v10786_v43 }
 0x47e   : > { %10178 = vmatprep.subr.msk.bf16.mxu0 %vm12403_vm4, %v10176_v44 }
 0x484   : > { %v10934_v45 = vpop.eup %10933 }
 0x485   : > { %v2203_v46 = vsel %vm2187_vm5, %v10934_v45, 0.0  ;;  %v10936_v47 = vpop.eup %10935 }
 0x486   : > { %2204 = vadd.xlane.f32.xlu1 %v2203_v46  ;;  %v2200_v48 = vsel %vm2187_vm5, %v10936_v47, 0.0 }
 0x48a   : > { %2201 = vadd.xlane.f32.xlu1 %v2200_v48 }
 0x49b   : > { %2295 = vrot.lane.b32.xlu1 %v12421_v30, %s13285_s14 }
 0x513   : > { %v2205_v50 = vpop.xlane.xlu1 %2204 }
 0x514   : > { %10937 = vrcp.f32 %v2205_v50 }
 0x517   : > { %v2202_v51 = vpop.xlane.xlu1 %2201 }
 0x518   : > { %10939 = vrcp.f32 %v2202_v51 }
 0x51b   : > { %v2296_v56 = vpop.permute.xlu1 %2295 }
 0x51e   : > { %v10938_v52 = vpop.eup %10937 }
 0x51f   : > { %v2209_v55 = vmul.f32 %v10938_v52, %v10934_v45 }
 0x522   : > { %v10940_v53 = vpop.eup %10939 }
 0x523   : > { %v2208_v54 = vmul.f32 %v10940_v53, %v10936_v47 }
 0x525   : > { %9613 = vmatprep.mubr.msk.f32.mxu0 %vm2187_vm5, %v2208_v54 }
 0x526   : > { %9614 = vmatmul.mubr.msk.f32.vlgmr.msra.gmra.mrb[2].mxu0 %vm2187_vm5, %v2209_v55 }
 0x527   : > { %10181 = vmatpush3.bf16.xpose.msk.msra.mxu0 %vm12403_vm4, %v10176_v44  ;;  %9620 = vmatprep.mubr.msk.f32.mxu0 %vm2099_vm3, %v2294_v49 }
 0x52e   : > { %9621 = vmatmul.mubr.msk.f32.vlgmr.msra.gmra.mrb[4].mxu0 %vm2099_vm3, %v2296_v56 }
 0x5f9   : > { %v12445_v57 = vpop.f32.mrb[2].mxu0 }
 0x5fa   : > { %v12447_v58 = vpop.f32.mrb[3].mxu0 }
 0x601   : > { %v9622_v59 = vpop.f32.mrb[4].mxu0 }
 0x602   : > { %v2375_v60 = vpop.f32.mrb[5].mxu0  ;;  %v2387_v61 = vsel %vm2187_vm5, %v9622_v59, -inf }
 0x603   : > { %2388 = vmax.xlane.f32.xlu0 %v2387_v61  ;;  %v2384_v62 = vsel %vm2187_vm5, %v2375_v60, -inf }
 0x604   : > { %2385 = vmax.xlane.f32.xlu1 %v2384_v62 }
 0x615   : > { %10789 = vrot.lane.b32.xlu1 %v12453_v63, %s13285_s14 }
 0x619   : > { %2505 = vrot.lane.b32.xlu1 %v12419_v29, %s13283_s26 }
 0x61d   : > { %2507 = vrot.lane.b32.xlu1 %v12421_v30, %s13283_s26 }
 0x690   : > { %v2389_v0 = vpop.xlane.xlu0 %2388 }
 0x691   : > { %v2391_v2 = vsub.f32 %v9622_v59, %v2389_v0  ;;  %v2386_v3 = vpop.xlane.xlu1 %2385 }
 0x692   : > { %v2390_v5 = vsub.f32 %v2375_v60, %v2386_v3 }
 0x693   : > { %v2394_v6 = vmul.f32 1.442695, %v2391_v2 }
 0x694   : > { %v2392_v7 = vmul.f32 1.442695, %v2390_v5 }
 0x695   : > { %10941 = vpow2.f32 %v2394_v6  ;;  %v10790_v8 = vpop.permute.xlu1 %10789 }
 0x696   : > { %v10792_v9 = vunpack.i.h.bf16 %v10790_v8  ;;  %v10791_v10 = vunpack.i.l.bf16 %v10790_v8  ;;  %10943 = vpow2.f32 %v2392_v7 }
 0x698   : > { %v10182_v11 = vpack.c.bf16 %v10792_v9, %v10791_v10 }
 0x699   : > { %v2506_v28 = vpop.permute.xlu1 %2505 }
 0x69a   : > { %10183 = vmatprep.subr.bf16.mxu1 %v10182_v11 }
 0x69b   : > { %10185 = vmatpush3.bf16.msra.mxu1 %v10182_v11 }
 0x69d   : > { %v2508_v31 = vpop.permute.xlu1 %2507 }
 0x69f   : > { %v10942_v12 = vpop.eup %10941 }
 0x6a0   : > { %v2399_v13 = vsel %vm2187_vm5, %v10942_v12, 0.0  ;;  %v10944_v14 = vpop.eup %10943 }
 0x6a1   : > { %2400 = vadd.xlane.f32.xlu0 %v2399_v13  ;;  %v2396_v15 = vsel %vm2187_vm5, %v10944_v14, 0.0 }
 0x6a5   : > { %2397 = vadd.xlane.f32.xlu0 %v2396_v15 }
 0x6bb   : > { %10794 = vrot.lane.b32.xlu0 %v12407_v21, %s13283_s26 }
 0x72e   : > { %v2401_v16 = vpop.xlane.xlu0 %2400 }
 0x72f   : > { %10945 = vrcp.f32 %v2401_v16 }
 0x732   : > { %v2398_v17 = vpop.xlane.xlu0 %2397 }
 0x733   : > { %10947 = vrcp.f32 %v2398_v17 }
 0x736   : > { %v10795_v19 = vpop.permute.xlu0 %10794 }
 0x737   : > { %v10797_v20 = vunpack.i.h.bf16 %v10795_v19  ;;  %v10796_v22 = vunpack.i.l.bf16 %v10795_v19 }
 0x739   : > { %v10186_v23 = vpack.c.bf16 %v10797_v20, %v10796_v22  ;;  %v10946_v24 = vpop.eup %10945 }
 0x73a   : > { %v2405_v27 = vmul.f32 %v10946_v24, %v10942_v12 }
 0x73b   : > { %10188 = vmatprep.subr.msk.bf16.mxu1 %vm12403_vm4, %v10186_v23 }
 0x73d   : > { %v10948_v25 = vpop.eup %10947 }
 0x73e   : > { %v2404_v26 = vmul.f32 %v10948_v25, %v10944_v14 }
 0x740   : > { %9627 = vmatprep.mubr.msk.f32.mxu1 %vm2187_vm5, %v2404_v26 }
 0x741   : > { %9628 = vmatmul.mubr.msk.f32.vlgmr.msra.gmra.mrb[6].mxu1 %vm2187_vm5, %v2405_v27 }
 0x742   : > { %10191 = vmatpush3.bf16.xpose.msk.msra.mxu1 %vm12403_vm4, %v10186_v23  ;;  %9634 = vmatprep.mubr.msk.f32.mxu1 %vm2099_vm3, %v2506_v28 }
 0x749   : > { %9635 = vmatmul.mubr.msk.f32.vlgmr.msra.gmra.mrb[8].mxu1 %vm2099_vm3, %v2508_v31 }
 0x814   : > { %v12473_v32 = vpop.f32.mrb[6].mxu1 }
 0x815   : > { %v12475_v33 = vpop.f32.mrb[7].mxu1 }
 0x81c   : > { %v9636_v34 = vpop.f32.mrb[8].mxu1 }
 0x81d   : > { %v2587_v35 = vpop.f32.mrb[9].mxu1  ;;  %v2599_v36 = vsel %vm2187_vm5, %v9636_v34, -inf }
 0x81e   : > { %2600 = vmax.xlane.f32.xlu0 %v2599_v36  ;;  %v2596_v37 = vsel %vm2187_vm5, %v2587_v35, -inf  ;;  %v2935_v36 = vld [vmem:[%s13390_s11 + $0x18] sm:$0xff] }
 0x81f   : > { %2597 = vmax.xlane.f32.xlu1 %v2596_v37 }
 0x830   : > { %10799 = vrot.lane.b32.xlu1 %v12453_v63, %s13283_s26 }
 0x834   : > { %2715 = vrot.lane.b32.xlu1 %v12419_v29, %s13281_s17 }
 0x838   : > { %2717 = vrot.lane.b32.xlu1 %v12421_v30, %s13281_s17 }
 0x8ab   : > { %v2601_v38 = vpop.xlane.xlu0 %2600 }
 0x8ac   : > { %v2603_v39 = vsub.f32 %v9636_v34, %v2601_v38  ;;  %v2598_v40 = vpop.xlane.xlu1 %2597  ;;  %v2933_v34 = vld [vmem:[%s13390_s11 + $0x8] sm:$0xff]  ;;  %v3028_v38 = vld [vmem:[#allocation10] sm:$0xf] }
 0x8ad   : > { %v2602_v41 = vsub.f32 %v2587_v35, %v2598_v40 }
 0x8ae   : > { %v2606_v42 = vmul.f32 1.442695, %v2603_v39 }
 0x8af   : > { %v2604_v43 = vmul.f32 1.442695, %v2602_v41 }
 0x8b0   : > { %10949 = vpow2.f32 %v2606_v42  ;;  %v10800_v44 = vpop.permute.xlu1 %10799 }
 0x8b1   : > { %v10802_v45 = vunpack.i.h.bf16 %v10800_v44  ;;  %v10801_v46 = vunpack.i.l.bf16 %v10800_v44  ;;  %10951 = vpow2.f32 %v2604_v43 }
 0x8b3   : > { %v10192_v47 = vpack.c.bf16 %v10802_v45, %v10801_v46  ;;  %v2291_v46 = vadd.f32 %v12447_v58, %v12419_v29 }
 0x8b4   : > { %v2716_v2 = vpop.permute.xlu1 %2715 }
 0x8b5   : > { %10193 = vmatprep.subr.bf16.mxu0 %v10192_v47 }
 0x8b6   : > { %10195 = vmatpush3.bf16.msra.mxu0 %v10192_v47 }
 0x8ba   : > { %v10950_v48 = vpop.eup %10949 }
 0x8bb   : > { %v2611_v49 = vsel %vm2187_vm5, %v10950_v48, 0.0  ;;  %v10952_v50 = vpop.eup %10951 }
 0x8bc   : > { %2612 = vadd.xlane.f32.xlu0 %v2611_v49  ;;  %v2608_v51 = vsel %vm2187_vm5, %v10952_v50, 0.0 }
 0x8c0   : > { %2609 = vadd.xlane.f32.xlu0 %v2608_v51 }
 0x8d6   : > { %10804 = vrot.lane.b32.xlu0 %v12407_v21, %s13281_s17  ;;  %v2718_v21 = vpop.permute.xlu1 %2717 }
 0x949   : > { %v2613_v52 = vpop.xlane.xlu0 %2612 }
 0x94a   : > { %10953 = vrcp.f32 %v2613_v52 }
 0x94d   : > { %v2610_v53 = vpop.xlane.xlu0 %2609 }
 0x94e   : > { %10955 = vrcp.f32 %v2610_v53 }
 0x951   : > { %v10805_v54 = vpop.permute.xlu0 %10804 }
 0x952   : > { %v10807_v55 = vunpack.i.h.bf16 %v10805_v54  ;;  %v10806_v56 = vunpack.i.l.bf16 %v10805_v54 }
 0x954   : > { %v10196_v59 = vpack.c.bf16 %v10807_v55, %v10806_v56  ;;  %v10954_v60 = vpop.eup %10953 }
 0x955   : > { %v2617_v0 = vmul.f32 %v10954_v60, %v10950_v48  ;;  %v3206_v60 = vld [vmem:[%s13392_s15] sm:$0xff]  ;;  %s13395_s15 = sld [smem:[#allocation52_spill]] }
 0x956   : > { %10198 = vmatprep.subr.msk.bf16.mxu0 %vm12403_vm4, %v10196_v59 }
 0x958   : > { %v10956_v61 = vpop.eup %10955 }
 0x959   : > { %v2616_v62 = vmul.f32 %v10956_v61, %v10952_v50  ;;  %v2292_v50 = vadd.f32 %v12445_v57, %v12421_v30 }
 0x95b   : > { %9641 = vmatprep.mubr.msk.f32.mxu0 %vm2187_vm5, %v2616_v62  ;;  %v3207_v62 = vld [vmem:[%s13393_s1 + $0x8] sm:$0xff] }
 0x95c   : > { %9642 = vmatmul.mubr.msk.f32.vlgmr.msra.gmra.mrb[6].mxu0 %vm2187_vm5, %v2617_v0  ;;  %v10222_v0 = vpack.c.bf16 %v3207_v62, %v3206_v60 }
 0x95d   : > { %10201 = vmatpush3.bf16.xpose.msk.msra.mxu0 %vm12403_vm4, %v10196_v59  ;;  %9648 = vmatprep.mubr.msk.f32.mxu0 %vm2099_vm3, %v2716_v2  ;;  %v3116_v2 = vld [vmem:[%s13391_s2 + $0x10] sm:$0xff] }
 0x95e   : > { %9669 = vmatprep.subr.msk.mxu0 %vm1934_vm0, %v3028_v38 }
 0x964   : > { %9649 = vmatmul.mubr.msk.f32.vlgmr.msra.gmra.mrb[8].mxu0 %vm2099_vm3, %v2718_v21  ;;  %v3117_v21 = vld [vmem:[%s13391_s2 + $0x18] sm:$0xff] }
 0x965   : > { %9671 = vmatprep.mubr.msk.f32.mxu0 %vm1927_vm1, %v12377_v1  ;;  %9670 = vmatpush3.msk.msra.mxu0 %vm1934_vm0, %v3028_v38 }
 0x968   : > { %9672 = vmatmul.mubr.msk.f32.vlgmr.msra.gmra.mrb[10].mxu0 %vm1927_vm1, %v12384_v4 }
 0xa2f   : > { %v9643_v3 = vpop.f32.mrb[6].mxu0 }
 0xa30   : > { %v2696_v5 = vpop.f32.mrb[7].mxu0 }
 0xa37   : > { %v9650_v6 = vpop.f32.mrb[8].mxu0 }
 0xa38   : > { %v2797_v7 = vpop.f32.mrb[9].mxu0  ;;  %v2809_v8 = vsel %vm2187_vm5, %v9650_v6, -inf }
 0xa39   : > { %2810 = vmax.xlane.f32.xlu0 %v2809_v8  ;;  %v2806_v9 = vsel %vm2187_vm5, %v2797_v7, -inf }
 0xa3a   : > { %2807 = vmax.xlane.f32.xlu1 %v2806_v9  ;;  %v9117_v9 = vld [vmem:[%s13394_s4] ss:$0 sm:$0xff]  ;;  %s13398_s4 = sld [smem:[#allocation58_spill]] }
 0xa3b   : > { %v9673_v8 = vpop.f32.mrb[10].mxu0 }
 0xa4b   : > { %10809 = vrot.lane.b32.xlu1 %v12453_v63, %s13281_s17 }
 0xa4f   : > { %2499 = vrot.lane.b32.xlu1 %v12473_v32, %s13279_s10  ;;  %v2932_v32 = vld [vmem:[%s13390_s11] sm:$0xff] }
 0xa50   : > { %v10206_v35 = vpack.c.bf16 %v2933_v34, %v2932_v32 }
 0xa53   : > { %2707 = vrot.lane.b32.xlu1 %v2696_v5, %s13277_s18  ;;  %v10218_v5 = vpack.c.bf16 %v3117_v21, %v3116_v2 }
 0xa57   : > { %2709 = vrot.lane.b32.xlu1 %v9643_v3, %s13277_s18  ;;  %v3208_v3 = vld [vmem:[%s13393_s1 + $0x10] sm:$0xff] }
 0xac6   : > { %v2811_v1 = vpop.xlane.xlu0 %2810 }
 0xac7   : > { %v2813_v10 = vsub.f32 %v9650_v6, %v2811_v1  ;;  %v2808_v11 = vpop.xlane.xlu1 %2807  ;;  %v3209_v6 = vld [vmem:[%s13393_s1 + $0x18] sm:$0xff]  ;;  %v12550_v1 = vadd.f32 %v9673_v8, %v9117_v9  ;;  %s13409_s1 = sld [smem:[#allocation66_spill]] }
 0xac8   : > { %v2812_v12 = vsub.f32 %v2797_v7, %v2808_v11  ;;  %v10226_v7 = vpack.c.bf16 %v3209_v6, %v3208_v3  ;;  %v9114_v11 = vld [vmem:[#allocation8] ss:$0 sm:$0xff] }
 0xac9   : > { %v2816_v13 = vmul.f32 1.442695, %v2813_v10  ;;  %v3105_v10 = vpop.f32.mrb[11].mxu0 }
 0xaca   : > { %v2814_v14 = vmul.f32 1.442695, %v2812_v12 }
 0xacb   : > { %v10810_v15 = vpop.permute.xlu1 %10809 }
 0xacc   : > { %10957 = vpow2.f32 %v2814_v14  ;;  %v10812_v16 = vunpack.i.h.bf16 %v10810_v15  ;;  %v10811_v17 = vunpack.i.l.bf16 %v10810_v15 }
 0xacd   : > { %10959 = vpow2.f32 %v2816_v13 }
 0xace   : > { %v10202_v63 = vpack.c.bf16 %v10812_v16, %v10811_v17 }
 0xacf   : > { %v2500_v41 = vpop.permute.xlu1 %2499 }
 0xad0   : > { %10203 = vmatprep.subr.bf16.mxu1 %v10202_v63  ;;  %v2504_v47 = vadd.f32 %v2500_v41, %v12421_v30 }
 0xad1   : > { %10205 = vmatpush3.bf16.msra.mxu1 %v10202_v63 }
 0xad2   : > { %10207 = vmatprep.subr.bf16.mxu1 %v10206_v35  ;;  %v2926_v54 = vsel %vm2099_vm3, %v2292_v50, %v2504_v47 }
 0xad3   : > { %v2708_v42 = vpop.permute.xlu1 %2707 }
 0xad4   : > { %v2713_v51 = vadd.f32 %v2708_v42, %v12419_v29 }
 0xad6   : > { %v10958_v19 = vpop.eup %10957 }
 0xad7   : > { %v2818_v20 = vsel %vm2187_vm5, %v10958_v19, 0.0  ;;  %v10960_v22 = vpop.eup %10959  ;;  %v2710_v44 = vpop.permute.xlu1 %2709 }
 0xad8   : > { %2819 = vadd.xlane.f32.xlu0 %v2818_v20  ;;  %v2821_v23 = vsel %vm2187_vm5, %v10960_v22, 0.0  ;;  %v2714_v4 = vadd.f32 %v2710_v44, %v12421_v30 }
 0xada   : > { %v2928_v56 = vsel %vm2187_vm5, %v2926_v54, %v2714_v4 }
 0xadc   : > { %2822 = vadd.xlane.f32.xlu0 %v2821_v23 }
 0xaf2   : > { %2497 = vrot.lane.b32.xlu0 %v12475_v33, %s13279_s10  ;;  %v2934_v33 = vld [vmem:[%s13390_s11 + $0x10] sm:$0xff] }
 0xaf3   : > { %v10210_v37 = vpack.c.bf16 %v2935_v36, %v2934_v33 }
 0xb65   : > { %v2820_v24 = vpop.xlane.xlu0 %2819 }
 0xb66   : > { %10961 = vrcp.f32 %v2820_v24 }
 0xb69   : > { %v2823_v25 = vpop.xlane.xlu0 %2822 }
 0xb6a   : > { %10963 = vrcp.f32 %v2823_v25 }
 0xb6d   : > { %v2498_v43 = vpop.permute.xlu0 %2497 }
 0xb6e   : > { %v2503_v45 = vadd.f32 %v2498_v43, %v12419_v29 }
 0xb70   : > { %v10962_v26 = vpop.eup %10961  ;;  %v2925_v48 = vsel %vm2099_vm3, %v2291_v46, %v2503_v45 }
 0xb71   : > { %v2826_v27 = vmul.f32 %v10962_v26, %v10958_v19  ;;  %v2927_v55 = vsel %vm2187_vm5, %v2925_v48, %v2713_v51  ;;  %v12552_v19 = vadd.f32 %v9117_v9, %v3105_v10 }
 0xb73   : > { %9655 = vmatprep.mubr.msk.f32.mxu1 %vm2187_vm5, %v2826_v27 }
 0xb74   : > { %v10964_v28 = vpop.eup %10963 }
 0xb75   : > { %v2827_v31 = vmul.f32 %v10964_v28, %v10960_v22  ;;  %v9121_v22 = vld [vmem:[%s13395_s15] ss:$0 sm:$0xff]  ;;  %s13399_s15 = smov 24  }
 0xb77   : > { %9656 = vmatmul.mubr.msk.f32.vlgmr.msra.gmra.mrb[10].mxu1 %vm2187_vm5, %v2827_v31 }
 0xb78   : > { %10209 = vmatpush3.bf16.msra.mxu1 %v10206_v35 }
 0xb79   : > { %10211 = vmatprep.subr.bf16.mxu1 %v10210_v37 }
 0xb7c   : > { %10213 = vmatpush3.bf16.msra.mxu1 %v10210_v37 }
 0xb7d   : > { %10223 = vmatprep.subr.bf16.mxu1 %v10222_v0 }
 0xc4a   : > { %v9657_v39 = vpop.f32.mrb[10].mxu1 }
 0xc4b   : > { %2919 = vrot.lane.b32.xlu1 %v9657_v39, %s13275_s28  ;;  %v2906_v40 = vpop.f32.mrb[11].mxu1 }
 0xc4c   : > { %2917 = vrot.lane.b32.xlu0 %v2906_v40, %s13275_s28  ;;  %s13396_s28 = sld [smem:[#allocation54_spill]] }
 0xc52   : > { %v9124_v23 = vld [vmem:[%s13396_s28] ss:$0 sm:$0xff]  ;;  %s13397_s28 = sld [smem:[#allocation55_spill]] }
 0xcbd   : > { %v2920_v49 = vpop.permute.xlu1 %2919 }
 0xcbe   : > { %v2924_v52 = vadd.f32 %v2920_v49, %v12421_v30  ;;  %v2918_v53 = vpop.permute.xlu0 %2917  ;;  %v3114_v30 = vld [vmem:[%s13391_s2] sm:$0xff] }
 0xcbf   : > { %v2923_v58 = vadd.f32 %v2918_v53, %v12419_v29  ;;  %v3115_v29 = vld [vmem:[%s13391_s2 + $0x8] sm:$0xff]  ;;  %s13410_s2 = sld [smem:[#allocation67_spill]] }
 0xcc0   : > { %v2931_v59 = vsel %vm2929_vm6, %v2928_v56, %v2924_v52  ;;  %v10214_v61 = vpack.c.bf16 %v3115_v29, %v3114_v30 }
 0xcc1   : > { %v2930_v57 = vsel %vm2929_vm6, %v2927_v55, %v2923_v58 }
 0xcc2   : > { %9666 = vmatprep.mubr.msk.f32.mxu1 %vm1837_vm2, %v2930_v57  ;;  %10215 = vmatprep.subr.bf16.mxu0 %v10214_v61 }
 0xcc3   : > { %9667 = vmatmul.mubr.msk.f32.vlgmr.msra.gmra.mrb[12].mxu1 %vm1837_vm2, %v2931_v59  ;;  %10217 = vmatpush3.bf16.msra.mxu0 %v10214_v61 }
 0xcc4   : > { %10225 = vmatpush3.bf16.msra.mxu1 %v10222_v0  ;;  %10219 = vmatprep.subr.bf16.mxu0 %v10218_v5 }
 0xcc5   : > { %10227 = vmatprep.subr.bf16.mxu1 %v10226_v7 }
 0xcc7   : > { %10221 = vmatpush3.bf16.msra.mxu0 %v10218_v5 }
 0xcc8   : > { %10229 = vmatpush3.bf16.msra.mxu1 %v10226_v7 }
 0xd96   : > { %v9668_v12 = vpop.f32.mrb[12].mxu1 }
 0xd97   : > { %v3021_v13 = vadd.f32 %v9668_v12, %v9114_v11  ;;  %v3015_v14 = vpop.f32.mrb[13].mxu1 }
 0xd98   : > { %v3016_v15 = vadd.f32 %v9114_v11, %v3015_v14 }
 0xd99   : > { %v3025_v16 = vmax.f32 %v3021_v13, 0.0 }
 0xd9a   : > { %v3024_v17 = vmax.f32 %v3016_v15, 0.0 }
 0xd9b   : > { %v3027_v20 = vadd.f32 %v3025_v16, %v2931_v59 }
 0xd9c   : > { %v3026_v63 = vadd.f32 %v3024_v17, %v2930_v57 }
 0xd9e   : > { %9682 = vmatprep.mubr.msk.f32.mxu0 %vm1837_vm2, %v3026_v63  ;;  %9693 = vmatprep.mubr.msk.f32.mxu1 %vm1837_vm2, %v3026_v63 }
 0xd9f   : > { %9683 = vmatmul.mubr.msk.f32.vlgmr.msra.gmra.mrb[12].mxu0 %vm1837_vm2, %v3027_v20  ;;  %9694 = vmatmul.mubr.msk.f32.vlgmr.msra.gmra.mrb[14].mxu1 %vm1837_vm2, %v3027_v20 }
 0xda0   : > { %9700 = vmatprep.mubr.msk.f32.mxu0 %vm2099_vm3, %v12552_v19 }
 0xe72   : > { %v9684_v24 = vpop.f32.mrb[12].mxu0  ;;  %v9695_v25 = vpop.f32.mrb[14].mxu1 }
 0xe73   : > { %v3203_v26 = vadd.f32 %v9684_v24, %v9121_v22  ;;  %v3289_v27 = vadd.f32 %v9695_v25, %v9124_v23  ;;  %v3197_v28 = vpop.f32.mrb[13].mxu0  ;;  %v3283_v31 = vpop.f32.mrb[15].mxu1 }
 0xe74   : > { %v3198_v32 = vadd.f32 %v9121_v22, %v3197_v28  ;;  %v3284_v34 = vadd.f32 %v9124_v23, %v3283_v31 }
 0xe76   : > { %v10230_v35 = vpack.c.bf16 %v3203_v26, %v3198_v32  ;;  %v10236_v33 = vpack.c.bf16 %v3289_v27, %v3284_v34  ;;  %v12562_v36 = vpack.i.bf16 %v3203_v26, %v3198_v32  ;;  %v12564_v37 = vpack.i.bf16 %v3289_v27, %v3284_v34 }
 0xe78   : > { %10232 = vmatprep.subr.msk.bf16.mxu0 %vm12403_vm4, %v10230_v35  ;;  %10237 = vmatprep.subr.bf16.mxu1 %v10236_v33 }
 0xe79   : > { %10235 = vmatpush3.bf16.xpose.msk.msra.mxu0 %vm12403_vm4, %v10230_v35  ;;  %10239 = vmatpush3.bf16.msra.mxu1 %v10236_v33 }
 0xe80   : > { %9701 = vmatmul.mubr.msk.f32.vlgmr.msra.gmra.mrb[14].mxu0 %vm2099_vm3, %v12550_v1 }
 0xf53   : > { %v9702_v38 = vpop.f32.mrb[14].mxu0 }
 0xf54   : > { %v3370_v39 = vpop.f32.mrb[15].mxu0  ;;  %v3382_v40 = vsel %vm2187_vm5, %v9702_v38, -inf }
 0xf55   : > { %3383 = vmax.xlane.f32.xlu1 %v3382_v40  ;;  %v3379_v41 = vsel %vm2187_vm5, %v3370_v39, -inf }
 0xf56   : > { %3380 = vmax.xlane.f32.xlu0 %v3379_v41 }
 0xf66   : > { %3484 = vrot.lane.b32.xlu1 %v12552_v19, %s13285_s14 }
 0xf6a   : > { %3486 = vrot.lane.b32.xlu1 %v12550_v1, %s13285_s14 }
 0xfe2   : > { %v3384_v42 = vpop.xlane.xlu1 %3383 }
 0xfe3   : > { %v3386_v43 = vsub.f32 %v9702_v38, %v3384_v42  ;;  %v3381_v44 = vpop.xlane.xlu0 %3380 }
 0xfe4   : > { %v3385_v45 = vsub.f32 %v3370_v39, %v3381_v44 }
 0xfe5   : > { %v3389_v46 = vmul.f32 1.442695, %v3386_v43 }
 0xfe6   : > { %v3387_v47 = vmul.f32 1.442695, %v3385_v45  ;;  %v3485_v29 = vpop.permute.xlu1 %3484 }
 0xfe7   : > { %10965 = vpow2.f32 %v3389_v46 }
 0xfe8   : > { %10967 = vpow2.f32 %v3387_v47 }
 0xfea   : > { %v3487_v60 = vpop.permute.xlu1 %3486 }
 0xff1   : > { %v10966_v4 = vpop.eup %10965 }
 0xff2   : > { %v3394_v48 = vsel %vm2187_vm5, %v10966_v4, 0.0  ;;  %v10968_v49 = vpop.eup %10967 }
 0xff3   : > { %3395 = vadd.xlane.f32.xlu0 %v3394_v48  ;;  %v3391_v50 = vsel %vm2187_vm5, %v10968_v49, 0.0 }
 0xff7   : > { %3392 = vadd.xlane.f32.xlu0 %v3391_v50 }
0x100d   : > { %10814 = vrot.lane.b32.xlu0 %v12562_v36, %s13285_s14 }
0x1080   : > { %v3396_v51 = vpop.xlane.xlu0 %3395 }
0x1081   : > { %10969 = vrcp.f32 %v3396_v51 }
0x1084   : > { %v3393_v52 = vpop.xlane.xlu0 %3392 }
0x1085   : > { %10971 = vrcp.f32 %v3393_v52 }
0x1088   : > { %v10815_v53 = vpop.permute.xlu0 %10814 }
0x1089   : > { %v10817_v58 = vunpack.i.h.bf16 %v10815_v53  ;;  %v10816_v54 = vunpack.i.l.bf16 %v10815_v53 }
0x108b   : > { %v10240_v55 = vpack.c.bf16 %v10817_v58, %v10816_v54  ;;  %v10970_v56 = vpop.eup %10969 }
0x108c   : > { %v3400_v30 = vmul.f32 %v10970_v56, %v10966_v4 }
0x108d   : > { %10242 = vmatprep.subr.msk.bf16.mxu1 %vm12403_vm4, %v10240_v55 }
0x108f   : > { %v10972_v57 = vpop.eup %10971 }
0x1090   : > { %v3399_v59 = vmul.f32 %v10972_v57, %v10968_v49 }
0x1092   : > { %9707 = vmatprep.mubr.msk.f32.mxu1 %vm2187_vm5, %v3399_v59 }
0x1093   : > { %9708 = vmatmul.mubr.msk.f32.vlgmr.msra.gmra.mrb[16].mxu1 %vm2187_vm5, %v3400_v30 }
0x1094   : > { %10245 = vmatpush3.bf16.xpose.msk.msra.mxu1 %vm12403_vm4, %v10240_v55  ;;  %9714 = vmatprep.mubr.msk.f32.mxu1 %vm2099_vm3, %v3485_v29 }
0x109b   : > { %9715 = vmatmul.mubr.msk.f32.vlgmr.msra.gmra.mrb[18].mxu1 %vm2099_vm3, %v3487_v60 }
0x1166   : > { %v12590_v61 = vpop.f32.mrb[16].mxu1 }
0x1167   : > { %v12592_v62 = vpop.f32.mrb[17].mxu1 }
0x116e   : > { %v9716_v0 = vpop.f32.mrb[18].mxu1 }
0x116f   : > { %v3566_v2 = vpop.f32.mrb[19].mxu1  ;;  %v3578_v21 = vsel %vm2187_vm5, %v9716_v0, -inf }
0x1170   : > { %3579 = vmax.xlane.f32.xlu0 %v3578_v21  ;;  %v3575_v3 = vsel %vm2187_vm5, %v3566_v2, -inf }
0x1171   : > { %3576 = vmax.xlane.f32.xlu1 %v3575_v3 }
0x1182   : > { %10819 = vrot.lane.b32.xlu1 %v12564_v37, %s13285_s14  ;;  %s13405_s14 = sld [smem:[#allocation63_spill]] }
0x1186   : > { %3696 = vrot.lane.b32.xlu1 %v12552_v19, %s13283_s26 }
0x118a   : > { %3698 = vrot.lane.b32.xlu1 %v12550_v1, %s13283_s26 }
0x11fd   : > { %v3580_v5 = vpop.xlane.xlu0 %3579 }
0x11fe   : > { %v3582_v6 = vsub.f32 %v9716_v0, %v3580_v5  ;;  %v3577_v7 = vpop.xlane.xlu1 %3576 }
0x11ff   : > { %v3581_v8 = vsub.f32 %v3566_v2, %v3577_v7 }
0x1200   : > { %v3585_v9 = vmul.f32 1.442695, %v3582_v6 }
0x1201   : > { %v3583_v10 = vmul.f32 1.442695, %v3581_v8 }
0x1202   : > { %10973 = vpow2.f32 %v3585_v9  ;;  %v10820_v11 = vpop.permute.xlu1 %10819 }
0x1203   : > { %v10822_v12 = vunpack.i.h.bf16 %v10820_v11  ;;  %v10821_v13 = vunpack.i.l.bf16 %v10820_v11  ;;  %10975 = vpow2.f32 %v3583_v10 }
0x1205   : > { %v10246_v14 = vpack.c.bf16 %v10822_v12, %v10821_v13 }
0x1206   : > { %v3697_v34 = vpop.permute.xlu1 %3696 }
0x1207   : > { %10247 = vmatprep.subr.bf16.mxu0 %v10246_v14 }
0x1208   : > { %10249 = vmatpush3.bf16.msra.mxu0 %v10246_v14 }
0x120a   : > { %v3699_v35 = vpop.permute.xlu1 %3698 }
0x120c   : > { %v10974_v15 = vpop.eup %10973 }
0x120d   : > { %v3590_v16 = vsel %vm2187_vm5, %v10974_v15, 0.0  ;;  %v10976_v17 = vpop.eup %10975 }
0x120e   : > { %3591 = vadd.xlane.f32.xlu0 %v3590_v16  ;;  %v3587_v63 = vsel %vm2187_vm5, %v10976_v17, 0.0 }
0x1212   : > { %3588 = vadd.xlane.f32.xlu0 %v3587_v63 }
0x1228   : > { %10824 = vrot.lane.b32.xlu0 %v12562_v36, %s13283_s26 }
0x129b   : > { %v3592_v20 = vpop.xlane.xlu0 %3591 }
0x129c   : > { %10977 = vrcp.f32 %v3592_v20 }
0x129f   : > { %v3589_v22 = vpop.xlane.xlu0 %3588 }
0x12a0   : > { %10979 = vrcp.f32 %v3589_v22 }
0x12a3   : > { %v10825_v23 = vpop.permute.xlu0 %10824 }
0x12a4   : > { %v10827_v24 = vunpack.i.h.bf16 %v10825_v23  ;;  %v10826_v25 = vunpack.i.l.bf16 %v10825_v23 }
0x12a6   : > { %v10250_v26 = vpack.c.bf16 %v10827_v24, %v10826_v25  ;;  %v10978_v27 = vpop.eup %10977 }
0x12a7   : > { %v3596_v32 = vmul.f32 %v10978_v27, %v10974_v15 }
0x12a8   : > { %10252 = vmatprep.subr.msk.bf16.mxu0 %vm12403_vm4, %v10250_v26 }
0x12aa   : > { %v10980_v28 = vpop.eup %10979 }
0x12ab   : > { %v3595_v31 = vmul.f32 %v10980_v28, %v10976_v17 }
0x12ad   : > { %9721 = vmatprep.mubr.msk.f32.mxu0 %vm2187_vm5, %v3595_v31 }
0x12ae   : > { %9722 = vmatmul.mubr.msk.f32.vlgmr.msra.gmra.mrb[16].mxu0 %vm2187_vm5, %v3596_v32 }
0x12af   : > { %10255 = vmatpush3.bf16.xpose.msk.msra.mxu0 %vm12403_vm4, %v10250_v26  ;;  %9728 = vmatprep.mubr.msk.f32.mxu0 %vm2099_vm3, %v3697_v34 }
0x12b6   : > { %9729 = vmatmul.mubr.msk.f32.vlgmr.msra.gmra.mrb[18].mxu0 %vm2099_vm3, %v3699_v35  ;;  %v4122_v35 = vld [vmem:[%s13397_s28] sm:$0xff] }
0x1381   : > { %v9723_v33 = vpop.f32.mrb[16].mxu0 }
0x1382   : > { %v12614_v38 = vpop.f32.mrb[17].mxu0 }
0x1389   : > { %v9730_v39 = vpop.f32.mrb[18].mxu0 }
0x138a   : > { %v3778_v40 = vpop.f32.mrb[19].mxu0  ;;  %v3790_v41 = vsel %vm2187_vm5, %v9730_v39, -inf }
0x138b   : > { %3791 = vmax.xlane.f32.xlu0 %v3790_v41  ;;  %v3787_v42 = vsel %vm2187_vm5, %v3778_v40, -inf }
0x138c   : > { %3788 = vmax.xlane.f32.xlu1 %v3787_v42  ;;  %v4220_v42 = vld [vmem:[%s13398_s4] sm:$0xff] }
0x139d   : > { %10829 = vrot.lane.b32.xlu1 %v12564_v37, %s13283_s26  ;;  %s13404_s26 = sld [smem:[#allocation61_spill]] }
0x13a1   : > { %3906 = vrot.lane.b32.xlu1 %v12552_v19, %s13281_s17 }
0x13a5   : > { %3908 = vrot.lane.b32.xlu1 %v12550_v1, %s13281_s17 }
0x1418   : > { %v3792_v43 = vpop.xlane.xlu0 %3791 }
0x1419   : > { %v3794_v44 = vsub.f32 %v9730_v39, %v3792_v43  ;;  %v3789_v45 = vpop.xlane.xlu1 %3788  ;;  %v4124_v39 = vld [vmem:[%s13397_s28 + $0x10] sm:$0xff]  ;;  %v4221_v43 = vld [vmem:[%s13398_s4 + $0x8] sm:$0xff] }
0x141a   : > { %v3793_v46 = vsub.f32 %v3778_v40, %v3789_v45  ;;  %v4125_v40 = vld [vmem:[%s13397_s28 + $0x18] sm:$0xff]  ;;  %v10278_v45 = vpack.c.bf16 %v4221_v43, %v4220_v42 }
0x141b   : > { %v3797_v47 = vmul.f32 1.442695, %v3794_v44  ;;  %v10274_v41 = vpack.c.bf16 %v4125_v40, %v4124_v39  ;;  %v4222_v44 = vld [vmem:[%s13398_s4 + $0x10] sm:$0xff] }
0x141c   : > { %v3795_v4 = vmul.f32 1.442695, %v3793_v46  ;;  %v4223_v46 = vld [vmem:[%s13398_s4 + $0x18] sm:$0xff]  ;;  %s13415_s4 = sld [smem:[#allocation70_spill]] }
0x141d   : > { %10981 = vpow2.f32 %v3797_v47  ;;  %v10830_v48 = vpop.permute.xlu1 %10829  ;;  %v10282_v47 = vpack.c.bf16 %v4223_v46, %v4222_v44 }
0x141e   : > { %v10832_v49 = vunpack.i.h.bf16 %v10830_v48  ;;  %v10831_v50 = vunpack.i.l.bf16 %v10830_v48  ;;  %10983 = vpow2.f32 %v3795_v4 }
0x1420   : > { %v10256_v51 = vpack.c.bf16 %v10832_v49, %v10831_v50 }
0x1421   : > { %v3907_v3 = vpop.permute.xlu1 %3906 }
0x1422   : > { %10257 = vmatprep.subr.bf16.mxu1 %v10256_v51 }
0x1423   : > { %10259 = vmatpush3.bf16.msra.mxu1 %v10256_v51 }
0x1427   : > { %v10982_v52 = vpop.eup %10981 }
0x1428   : > { %v3802_v53 = vsel %vm2187_vm5, %v10982_v52, 0.0  ;;  %v10984_v58 = vpop.eup %10983 }
0x1429   : > { %3803 = vadd.xlane.f32.xlu0 %v3802_v53  ;;  %v3799_v54 = vsel %vm2187_vm5, %v10984_v58, 0.0 }
0x142d   : > { %3800 = vadd.xlane.f32.xlu0 %v3799_v54 }
0x1443   : > { %10834 = vrot.lane.b32.xlu0 %v12562_v36, %s13281_s17  ;;  %v3909_v36 = vpop.permute.xlu1 %3908 }
0x14b6   : > { %v3804_v55 = vpop.xlane.xlu0 %3803 }
0x14b7   : > { %10985 = vrcp.f32 %v3804_v55 }
0x14ba   : > { %v3801_v56 = vpop.xlane.xlu0 %3800 }
0x14bb   : > { %10987 = vrcp.f32 %v3801_v56 }
0x14be   : > { %v10835_v57 = vpop.permute.xlu0 %10834 }
0x14bf   : > { %v10837_v59 = vunpack.i.h.bf16 %v10835_v57  ;;  %v10836_v30 = vunpack.i.l.bf16 %v10835_v57 }
0x14c1   : > { %v10260_v29 = vpack.c.bf16 %v10837_v59, %v10836_v30  ;;  %v10986_v60 = vpop.eup %10985  ;;  %v3483_v59 = vadd.f32 %v12590_v61, %v12550_v1 }
0x14c2   : > { %v3808_v21 = vmul.f32 %v10986_v60, %v10982_v52 }
0x14c3   : > { %10262 = vmatprep.subr.msk.bf16.mxu1 %vm12403_vm4, %v10260_v29 }
0x14c5   : > { %v10988_v0 = vpop.eup %10987 }
0x14c6   : > { %v3807_v2 = vmul.f32 %v10988_v0, %v10984_v58  ;;  %v3482_v58 = vadd.f32 %v12592_v62, %v12552_v19 }
0x14c8   : > { %9735 = vmatprep.mubr.msk.f32.mxu1 %vm2187_vm5, %v3807_v2 }
0x14c9   : > { %9736 = vmatmul.mubr.msk.f32.vlgmr.msra.gmra.mrb[20].mxu1 %vm2187_vm5, %v3808_v21 }
0x14ca   : > { %10265 = vmatpush3.bf16.xpose.msk.msra.mxu1 %vm12403_vm4, %v10260_v29  ;;  %9742 = vmatprep.mubr.msk.f32.mxu1 %vm2099_vm3, %v3907_v3 }
0x14cb   : > { %10279 = vmatprep.subr.bf16.mxu1 %v10278_v45 }
0x14d1   : > { %9743 = vmatmul.mubr.msk.f32.vlgmr.msra.gmra.mrb[22].mxu1 %vm2099_vm3, %v3909_v36 }
0x14d2   : > { %10281 = vmatpush3.bf16.msra.mxu1 %v10278_v45 }
0x14d3   : > { %10283 = vmatprep.subr.bf16.mxu1 %v10282_v47 }
0x14d6   : > { %10285 = vmatpush3.bf16.msra.mxu1 %v10282_v47 }
0x159c   : > { %v9737_v5 = vpop.f32.mrb[20].mxu1 }
0x159d   : > { %v3887_v6 = vpop.f32.mrb[21].mxu1 }
0x15a4   : > { %v9744_v7 = vpop.f32.mrb[22].mxu1 }
0x15a5   : > { %v3988_v8 = vpop.f32.mrb[23].mxu1  ;;  %v4000_v9 = vsel %vm2187_vm5, %v9744_v7, -inf }
0x15a6   : > { %4001 = vmax.xlane.f32.xlu0 %v4000_v9  ;;  %v3997_v10 = vsel %vm2187_vm5, %v3988_v8, -inf  ;;  %v4219_v9 = vld [vmem:[#allocation13 + $0x8] sm:$0xff] }
0x15a7   : > { %3998 = vmax.xlane.f32.xlu1 %v3997_v10 }
0x15b8   : > { %10839 = vrot.lane.b32.xlu1 %v12564_v37, %s13281_s17  ;;  %s13402_s17 = sld [smem:[#allocation62_spill]] }
0x15bc   : > { %3690 = vrot.lane.b32.xlu1 %v9723_v33, %s13279_s10  ;;  %v4123_v33 = vld [vmem:[%s13397_s28 + $0x8] sm:$0xff] }
0x15c0   : > { %3898 = vrot.lane.b32.xlu1 %v3887_v6, %s13277_s18  ;;  %v4405_v6 = vld [vmem:[%s13402_s17 + $0x8] sm:$0xff] }
0x15c4   : > { %3900 = vrot.lane.b32.xlu1 %v9737_v5, %s13277_s18  ;;  %s13400_s18 = sld [smem:[#allocation60_spill]] }
0x1633   : > { %v4002_v11 = vpop.xlane.xlu0 %4001 }
0x1634   : > { %v4004_v12 = vsub.f32 %v9744_v7, %v4002_v11  ;;  %v3999_v13 = vpop.xlane.xlu1 %3998  ;;  %v4218_v7 = vld [vmem:[#allocation13] sm:$0xff] }
0x1635   : > { %v4003_v14 = vsub.f32 %v3988_v8, %v3999_v13  ;;  %9771 = vmatprep.mubr.msk.f32.mxu1 %vm1837_vm2, %v4218_v7 }
0x1636   : > { %v4007_v15 = vmul.f32 1.442695, %v4004_v12  ;;  %9772 = vmatmul.mubr.msk.f32.vlgmr.msra.gmra.mrb[24].mxu1 %vm1837_vm2, %v4219_v9  ;;  %v4406_v12 = vld [vmem:[%s13402_s17 + $0x10] sm:$0xff] }
0x1637   : > { %v4005_v16 = vmul.f32 1.442695, %v4003_v14  ;;  %v4407_v14 = vld [vmem:[%s13402_s17 + $0x18] sm:$0xff] }
0x1638   : > { %v10840_v17 = vpop.permute.xlu1 %10839 }
0x1639   : > { %10989 = vpow2.f32 %v4005_v16  ;;  %v10842_v63 = vunpack.i.h.bf16 %v10840_v17  ;;  %v10841_v20 = vunpack.i.l.bf16 %v10840_v17  ;;  %v9151_v16 = vld [vmem:[#allocation11] ss:$0 sm:$0xff] }
0x163a   : > { %10991 = vpow2.f32 %v4007_v15  ;;  %v10298_v15 = vpack.c.bf16 %v4407_v14, %v4406_v12 }
0x163b   : > { %v10266_v22 = vpack.c.bf16 %v10842_v63, %v10841_v20 }
0x163c   : > { %v3691_v49 = vpop.permute.xlu1 %3690 }
0x163d   : > { %10267 = vmatprep.subr.bf16.mxu0 %v10266_v22  ;;  %v3695_v54 = vadd.f32 %v3691_v49, %v12550_v1 }
0x163e   : > { %10269 = vmatpush3.bf16.msra.mxu0 %v10266_v22 }
0x163f   : > { %v4117_v0 = vsel %vm2099_vm3, %v3483_v59, %v3695_v54 }
0x1640   : > { %v3899_v50 = vpop.permute.xlu1 %3898 }
0x1641   : > { %v3904_v30 = vadd.f32 %v3899_v50, %v12552_v19 }
0x1643   : > { %v10990_v37 = vpop.eup %10989 }
0x1644   : > { %v4009_v23 = vsel %vm2187_vm5, %v10990_v37, 0.0  ;;  %v10992_v24 = vpop.eup %10991  ;;  %v3901_v52 = vpop.permute.xlu1 %3900 }
0x1645   : > { %4010 = vadd.xlane.f32.xlu0 %v4009_v23  ;;  %v4012_v25 = vsel %vm2187_vm5, %v10992_v24, 0.0  ;;  %v3905_v55 = vadd.f32 %v3901_v52, %v12550_v1 }
0x1647   : > { %v4119_v21 = vsel %vm2187_vm5, %v4117_v0, %v3905_v55 }
0x1649   : > { %4013 = vadd.xlane.f32.xlu0 %v4012_v25 }
0x165f   : > { %3688 = vrot.lane.b32.xlu0 %v12614_v38, %s13279_s10  ;;  %v10270_v38 = vpack.c.bf16 %v4123_v33, %v4122_v35  ;;  %s13401_s10 = smov %s13400_s18  ;;  %v9160_v35 = vld [vmem:[%s13405_s14] ss:$0 sm:$0xff]  ;;  %s13406_s14 = smov 120  }
0x1660   : > { %v4313_v36 = vld [vmem:[%s13401_s10 + $0x8] sm:$0xff]  ;;  %v4314_v10 = vld [vmem:[%s13401_s10 + $0x10] sm:$0xff]  ;;  %v4315_v11 = vld [vmem:[%s13401_s10 + $0x18] sm:$0xff] }
0x1661   : > { %10271 = vmatprep.subr.bf16.mxu0 %v10270_v38  ;;  %v10290_v13 = vpack.c.bf16 %v4315_v11, %v4314_v10 }
0x16d2   : > { %v4011_v26 = vpop.xlane.xlu0 %4010 }
0x16d3   : > { %10993 = vrcp.f32 %v4011_v26 }
0x16d6   : > { %v4014_v27 = vpop.xlane.xlu0 %4013 }
0x16d7   : > { %10995 = vrcp.f32 %v4014_v27 }
0x16da   : > { %v3689_v51 = vpop.permute.xlu0 %3688 }
0x16db   : > { %v3694_v53 = vadd.f32 %v3689_v51, %v12552_v19 }
0x16dd   : > { %v10994_v28 = vpop.eup %10993  ;;  %v4116_v56 = vsel %vm2099_vm3, %v3482_v58, %v3694_v53 }
0x16de   : > { %v4017_v31 = vmul.f32 %v10994_v28, %v10990_v37  ;;  %v4118_v2 = vsel %vm2187_vm5, %v4116_v56, %v3904_v30 }
0x16e0   : > { %9749 = vmatprep.mubr.msk.f32.mxu0 %vm2187_vm5, %v4017_v31 }
0x16e1   : > { %v10996_v32 = vpop.eup %10995 }
0x16e2   : > { %v4018_v34 = vmul.f32 %v10996_v32, %v10992_v24 }
0x16e4   : > { %9750 = vmatmul.mubr.msk.f32.vlgmr.msra.gmra.mrb[20].mxu0 %vm2187_vm5, %v4018_v34  ;;  %v9157_v34 = vld [vmem:[%s13404_s26] ss:$0 sm:$0xff]  ;;  %s13407_s26 = smov 112  }
0x16e5   : > { %10273 = vmatpush3.bf16.msra.mxu0 %v10270_v38 }
0x16e6   : > { %10275 = vmatprep.subr.bf16.mxu0 %v10274_v41 }
0x16e9   : > { %10277 = vmatpush3.bf16.msra.mxu0 %v10274_v41 }
0x1709   : > { %v9773_v27 = vpop.f32.mrb[24].mxu1 }
0x170a   : > { %v4303_v31 = vpop.f32.mrb[25].mxu1 }
0x17b7   : > { %v9751_v4 = vpop.f32.mrb[20].mxu0 }
0x17b8   : > { %4110 = vrot.lane.b32.xlu1 %v9751_v4, %s13399_s15  ;;  %v4097_v48 = vpop.f32.mrb[21].mxu0 }
0x17b9   : > { %4108 = vrot.lane.b32.xlu0 %v4097_v48, %s13399_s15 }
0x182a   : > { %v4111_v57 = vpop.permute.xlu1 %4110 }
0x182b   : > { %v4115_v29 = vadd.f32 %v4111_v57, %v12550_v1  ;;  %v4109_v60 = vpop.permute.xlu0 %4108  ;;  %v4312_v1 = vld [vmem:[%s13400_s18] sm:$0xff]  ;;  %s13403_s18 = sld [smem:[#allocation59_spill]] }
0x182c   : > { %v4114_v62 = vadd.f32 %v4109_v60, %v12552_v19  ;;  %v4404_v19 = vld [vmem:[%s13402_s17] sm:$0xff]  ;;  %v10286_v5 = vpack.c.bf16 %v4313_v36, %v4312_v1 }
0x182d   : > { %v4121_v61 = vsel %vm2929_vm6, %v4119_v21, %v4115_v29  ;;  %v10294_v8 = vpack.c.bf16 %v4405_v6, %v4404_v19 }
0x182e   : > { %v4120_v3 = vsel %vm2929_vm6, %v4118_v2, %v4114_v62  ;;  %10287 = vmatprep.subr.bf16.mxu0 %v10286_v5 }
0x182f   : > { %9760 = vmatprep.mubr.msk.f32.mxu0 %vm1837_vm2, %v4120_v3  ;;  %10295 = vmatprep.subr.bf16.mxu1 %v10294_v8 }
0x1830   : > { %9761 = vmatmul.mubr.msk.f32.vlgmr.msra.gmra.mrb[22].mxu0 %vm1837_vm2, %v4121_v61  ;;  %10297 = vmatpush3.bf16.msra.mxu1 %v10294_v8 }
0x1831   : > { %10289 = vmatpush3.bf16.msra.mxu0 %v10286_v5  ;;  %10299 = vmatprep.subr.bf16.mxu1 %v10298_v15  ;;  %v9154_v26 = vld [vmem:[%s13403_s18] ss:$0 sm:$0xff]  ;;  %s13408_s18 = smov 104  }
0x1832   : > { %10291 = vmatprep.subr.bf16.mxu0 %v10290_v13  ;;  %v12700_v28 = vadd.f32 %v9773_v27, %v9154_v26  ;;  %v12702_v32 = vadd.f32 %v9154_v26, %v4303_v31 }
0x1834   : > { %10301 = vmatpush3.bf16.msra.mxu1 %v10298_v15 }
0x1835   : > { %10293 = vmatpush3.bf16.msra.mxu0 %v10290_v13 }
0x1903   : > { %v9762_v17 = vpop.f32.mrb[22].mxu0 }
0x1904   : > { %v4211_v63 = vadd.f32 %v9762_v17, %v9151_v16  ;;  %v4205_v20 = vpop.f32.mrb[23].mxu0 }
0x1905   : > { %v4206_v22 = vadd.f32 %v9151_v16, %v4205_v20 }
0x1906   : > { %v4215_v37 = vmax.f32 %v4211_v63, 0.0 }
0x1907   : > { %v4214_v23 = vmax.f32 %v4206_v22, 0.0 }
0x1908   : > { %v12689_v25 = vadd.f32 %v4215_v37, %v4121_v61 }
0x1909   : > { %v12687_v24 = vadd.f32 %v4214_v23, %v4120_v3 }
0x190b   : > { %9782 = vmatprep.mubr.msk.f32.mxu0 %vm1837_vm2, %v12687_v24  ;;  %9793 = vmatprep.mubr.msk.f32.mxu1 %vm1837_vm2, %v12687_v24 }
0x190c   : > { %9783 = vmatmul.mubr.msk.f32.vlgmr.msra.gmra.mrb[24].mxu0 %vm1837_vm2, %v12689_v25  ;;  %9794 = vmatmul.mubr.msk.f32.vlgmr.msra.gmra.mrb[26].mxu1 %vm1837_vm2, %v12689_v25 }
0x190d   : > { %9800 = vmatprep.mubr.msk.f32.mxu0 %vm2099_vm3, %v12702_v32 }
0x19df   : > { %v9784_v33 = vpop.f32.mrb[24].mxu0  ;;  %v9795_v38 = vpop.f32.mrb[26].mxu1 }
0x19e0   : > { %v4401_v39 = vadd.f32 %v9784_v33, %v9157_v34  ;;  %v4487_v40 = vadd.f32 %v9795_v38, %v9160_v35  ;;  %v4395_v41 = vpop.f32.mrb[25].mxu0  ;;  %v4481_v42 = vpop.f32.mrb[27].mxu1 }
0x19e1   : > { %v4396_v43 = vadd.f32 %v9157_v34, %v4395_v41  ;;  %v4482_v44 = vadd.f32 %v9160_v35, %v4481_v42 }
0x19e3   : > { %v10302_v45 = vpack.c.bf16 %v4401_v39, %v4396_v43  ;;  %v10308_v46 = vpack.c.bf16 %v4487_v40, %v4482_v44  ;;  %v12708_v47 = vpack.i.bf16 %v4401_v39, %v4396_v43  ;;  %v12710_v4 = vpack.i.bf16 %v4487_v40, %v4482_v44 }
0x19e5   : > { %10304 = vmatprep.subr.msk.bf16.mxu0 %vm12403_vm4, %v10302_v45  ;;  %10309 = vmatprep.subr.bf16.mxu1 %v10308_v46 }
0x19e6   : > { %10307 = vmatpush3.bf16.xpose.msk.msra.mxu0 %vm12403_vm4, %v10302_v45  ;;  %10311 = vmatpush3.bf16.msra.mxu1 %v10308_v46 }
0x19ed   : > { %9801 = vmatmul.mubr.msk.f32.vlgmr.msra.gmra.mrb[26].mxu0 %vm2099_vm3, %v12700_v28 }
0x1ac0   : > { %v9802_v48 = vpop.f32.mrb[26].mxu0 }
0x1ac1   : > { %v4568_v49 = vpop.f32.mrb[27].mxu0  ;;  %v4580_v50 = vsel %vm2187_vm5, %v9802_v48, -inf }
0x1ac2   : > { %4581 = vmax.xlane.f32.xlu1 %v4580_v50  ;;  %v4577_v51 = vsel %vm2187_vm5, %v4568_v49, -inf }
0x1ac3   : > { %4578 = vmax.xlane.f32.xlu0 %v4577_v51 }
0x1ad3   : > { %4682 = vrot.lane.b32.xlu1 %v12702_v32, %s13406_s14 }
0x1ad7   : > { %4684 = vrot.lane.b32.xlu1 %v12700_v28, %s13406_s14 }
0x1b4f   : > { %v4582_v52 = vpop.xlane.xlu1 %4581 }
0x1b50   : > { %v4584_v53 = vsub.f32 %v9802_v48, %v4582_v52  ;;  %v4579_v58 = vpop.xlane.xlu0 %4578 }
0x1b51   : > { %v4583_v54 = vsub.f32 %v4568_v49, %v4579_v58 }
0x1b52   : > { %v4587_v55 = vmul.f32 1.442695, %v4584_v53 }
0x1b53   : > { %v4585_v56 = vmul.f32 1.442695, %v4583_v54  ;;  %v4683_v5 = vpop.permute.xlu1 %4682 }
0x1b54   : > { %10997 = vpow2.f32 %v4587_v55 }
0x1b55   : > { %10999 = vpow2.f32 %v4585_v56 }
0x1b57   : > { %v4685_v6 = vpop.permute.xlu1 %4684 }
0x1b5e   : > { %v10998_v57 = vpop.eup %10997 }
0x1b5f   : > { %v4592_v59 = vsel %vm2187_vm5, %v10998_v57, 0.0  ;;  %v11000_v30 = vpop.eup %10999 }
0x1b60   : > { %4593 = vadd.xlane.f32.xlu0 %v4592_v59  ;;  %v4589_v29 = vsel %vm2187_vm5, %v11000_v30, 0.0 }
0x1b64   : > { %4590 = vadd.xlane.f32.xlu0 %v4589_v29 }
0x1b7a   : > { %10844 = vrot.lane.b32.xlu0 %v12708_v47, %s13406_s14 }
0x1bed   : > { %v4594_v60 = vpop.xlane.xlu0 %4593 }
0x1bee   : > { %11001 = vrcp.f32 %v4594_v60 }
0x1bf1   : > { %v4591_v62 = vpop.xlane.xlu0 %4590 }
0x1bf2   : > { %11003 = vrcp.f32 %v4591_v62 }
0x1bf5   : > { %v10845_v0 = vpop.permute.xlu0 %10844 }
0x1bf6   : > { %v10847_v2 = vunpack.i.h.bf16 %v10845_v0  ;;  %v10846_v21 = vunpack.i.l.bf16 %v10845_v0 }
0x1bf8   : > { %v10312_v3 = vpack.c.bf16 %v10847_v2, %v10846_v21  ;;  %v11002_v61 = vpop.eup %11001 }
0x1bf9   : > { %v4598_v19 = vmul.f32 %v11002_v61, %v10998_v57 }
0x1bfa   : > { %10314 = vmatprep.subr.msk.bf16.mxu1 %vm12403_vm4, %v10312_v3 }
0x1bfc   : > { %v11004_v1 = vpop.eup %11003 }
0x1bfd   : > { %v4597_v36 = vmul.f32 %v11004_v1, %v11000_v30 }
0x1bff   : > { %9807 = vmatprep.mubr.msk.f32.mxu1 %vm2187_vm5, %v4597_v36 }
0x1c00   : > { %9808 = vmatmul.mubr.msk.f32.vlgmr.msra.gmra.mrb[28].mxu1 %vm2187_vm5, %v4598_v19 }
0x1c01   : > { %10317 = vmatpush3.bf16.xpose.msk.msra.mxu1 %vm12403_vm4, %v10312_v3  ;;  %9814 = vmatprep.mubr.msk.f32.mxu1 %vm2099_vm3, %v4683_v5 }
0x1c08   : > { %9815 = vmatmul.mubr.msk.f32.vlgmr.msra.gmra.mrb[30].mxu1 %vm2099_vm3, %v4685_v6 }
0x1cd3   : > { %v12736_v7 = vpop.f32.mrb[28].mxu1 }
0x1cd4   : > { %v12738_v8 = vpop.f32.mrb[29].mxu1 }
0x1cdb   : > { %v9816_v9 = vpop.f32.mrb[30].mxu1 }
0x1cdc   : > { %v4764_v10 = vpop.f32.mrb[31].mxu1  ;;  %v4776_v11 = vsel %vm2187_vm5, %v9816_v9, -inf }
0x1cdd   : > { %4777 = vmax.xlane.f32.xlu0 %v4776_v11  ;;  %v4773_v12 = vsel %vm2187_vm5, %v4764_v10, -inf  ;;  %v5416_v11 = vld [vmem:[%s13409_s1] sm:$0xff] }
0x1cde   : > { %4774 = vmax.xlane.f32.xlu1 %v4773_v12  ;;  %v5417_v12 = vld [vmem:[%s13409_s1 + $0x8] sm:$0xff] }
0x1cef   : > { %10849 = vrot.lane.b32.xlu1 %v12710_v4, %s13406_s14 }
0x1cf3   : > { %4894 = vrot.lane.b32.xlu1 %v12702_v32, %s13407_s26 }
0x1cf7   : > { %4896 = vrot.lane.b32.xlu1 %v12700_v28, %s13407_s26 }
0x1d6a   : > { %v4778_v13 = vpop.xlane.xlu0 %4777 }
0x1d6b   : > { %v4780_v14 = vsub.f32 %v9816_v9, %v4778_v13  ;;  %v4775_v15 = vpop.xlane.xlu1 %4774 }
0x1d6c   : > { %v4779_v16 = vsub.f32 %v4764_v10, %v4775_v15 }
0x1d6d   : > { %v4783_v17 = vmul.f32 1.442695, %v4780_v14 }
0x1d6e   : > { %v4781_v63 = vmul.f32 1.442695, %v4779_v16 }
0x1d6f   : > { %11005 = vpow2.f32 %v4783_v17  ;;  %v10850_v20 = vpop.permute.xlu1 %10849  ;;  %v5418_v17 = vld [vmem:[%s13409_s1 + $0x10] sm:$0xff] }
0x1d70   : > { %v10852_v22 = vunpack.i.h.bf16 %v10850_v20  ;;  %v10851_v37 = vunpack.i.l.bf16 %v10850_v20  ;;  %11007 = vpow2.f32 %v4781_v63  ;;  %v5419_v63 = vld [vmem:[%s13409_s1 + $0x18] sm:$0xff]  ;;  %s13411_s1 = smov 8  }
0x1d71   : > { %v10354_v20 = vpack.c.bf16 %v5419_v63, %v5418_v17  ;;  %v5594_v63 = vld [vmem:[%s13415_s4] sm:$0xff] }
0x1d72   : > { %v10318_v23 = vpack.c.bf16 %v10852_v22, %v10851_v37 }
0x1d73   : > { %v4895_v46 = vpop.permute.xlu1 %4894 }
0x1d74   : > { %10319 = vmatprep.subr.bf16.mxu0 %v10318_v23 }
0x1d75   : > { %10321 = vmatpush3.bf16.msra.mxu0 %v10318_v23 }
0x1d77   : > { %v4897_v48 = vpop.permute.xlu1 %4896 }
0x1d79   : > { %v11006_v26 = vpop.eup %11005 }
0x1d7a   : > { %v4788_v27 = vsel %vm2187_vm5, %v11006_v26, 0.0  ;;  %v11008_v31 = vpop.eup %11007 }
0x1d7b   : > { %4789 = vadd.xlane.f32.xlu0 %v4788_v27  ;;  %v4785_v34 = vsel %vm2187_vm5, %v11008_v31, 0.0 }
0x1d7f   : > { %4786 = vadd.xlane.f32.xlu0 %v4785_v34 }
0x1d95   : > { %10854 = vrot.lane.b32.xlu0 %v12708_v47, %s13407_s26 }
0x1e08   : > { %v4790_v35 = vpop.xlane.xlu0 %4789 }
0x1e09   : > { %11009 = vrcp.f32 %v4790_v35  ;;  %v12795_v35 = vld [vmem:[%s13410_s2] ss:$0 sm:$0xff]  ;;  %s13413_s2 = sld [smem:[#allocation64_spill]] }
0x1e0c   : > { %v4787_v33 = vpop.xlane.xlu0 %4786 }
0x1e0d   : > { %11011 = vrcp.f32 %v4787_v33 }
0x1e10   : > { %v10855_v38 = vpop.permute.xlu0 %10854 }
0x1e11   : > { %v10857_v39 = vunpack.i.h.bf16 %v10855_v38  ;;  %v10856_v40 = vunpack.i.l.bf16 %v10855_v38 }
0x1e13   : > { %v10322_v41 = vpack.c.bf16 %v10857_v39, %v10856_v40  ;;  %v11010_v42 = vpop.eup %11009 }
0x1e14   : > { %v4794_v45 = vmul.f32 %v11010_v42, %v11006_v26 }
0x1e15   : > { %10324 = vmatprep.subr.msk.bf16.mxu0 %vm12403_vm4, %v10322_v41 }
0x1e17   : > { %v11012_v43 = vpop.eup %11011 }
0x1e18   : > { %v4793_v44 = vmul.f32 %v11012_v43, %v11008_v31 }
0x1e1a   : > { %9821 = vmatprep.mubr.msk.f32.mxu0 %vm2187_vm5, %v4793_v44 }
0x1e1b   : > { %9822 = vmatmul.mubr.msk.f32.vlgmr.msra.gmra.mrb[28].mxu0 %vm2187_vm5, %v4794_v45 }
0x1e1c   : > { %10327 = vmatpush3.bf16.xpose.msk.msra.mxu0 %vm12403_vm4, %v10322_v41  ;;  %9828 = vmatprep.mubr.msk.f32.mxu0 %vm2099_vm3, %v4895_v46 }
0x1e23   : > { %9829 = vmatmul.mubr.msk.f32.vlgmr.msra.gmra.mrb[30].mxu0 %vm2099_vm3, %v4897_v48 }
0x1eee   : > { %v12760_v49 = vpop.f32.mrb[28].mxu0 }
0x1eef   : > { %v12762_v50 = vpop.f32.mrb[29].mxu0 }
0x1ef6   : > { %v9830_v51 = vpop.f32.mrb[30].mxu0 }
0x1ef7   : > { %v4976_v52 = vpop.f32.mrb[31].mxu0  ;;  %v4988_v53 = vsel %vm2187_vm5, %v9830_v51, -inf }
0x1ef8   : > { %4989 = vmax.xlane.f32.xlu0 %v4988_v53  ;;  %v4985_v58 = vsel %vm2187_vm5, %v4976_v52, -inf }
0x1ef9   : > { %4986 = vmax.xlane.f32.xlu1 %v4985_v58 }
0x1f0a   : > { %10859 = vrot.lane.b32.xlu1 %v12710_v4, %s13407_s26 }
0x1f0e   : > { %5104 = vrot.lane.b32.xlu1 %v12702_v32, %s13408_s18 }
0x1f12   : > { %5106 = vrot.lane.b32.xlu1 %v12700_v28, %s13408_s18 }
0x1f85   : > { %v4990_v54 = vpop.xlane.xlu0 %4989 }
0x1f86   : > { %v4992_v55 = vsub.f32 %v9830_v51, %v4990_v54  ;;  %v4987_v56 = vpop.xlane.xlu1 %4986 }
0x1f87   : > { %v4991_v57 = vsub.f32 %v4976_v52, %v4987_v56 }
0x1f88   : > { %v4995_v59 = vmul.f32 1.442695, %v4992_v55 }
0x1f89   : > { %v4993_v30 = vmul.f32 1.442695, %v4991_v57 }
0x1f8a   : > { %11013 = vpow2.f32 %v4995_v59  ;;  %v10860_v29 = vpop.permute.xlu1 %10859  ;;  %v5320_v59 = vld [vmem:[%s13413_s2] sm:$0xff] }
0x1f8b   : > { %v10862_v60 = vunpack.i.h.bf16 %v10860_v29  ;;  %v10861_v62 = vunpack.i.l.bf16 %v10860_v29  ;;  %11015 = vpow2.f32 %v4993_v30  ;;  %v5321_v30 = vld [vmem:[%s13413_s2 + $0x8] sm:$0xff] }
0x1f8c   : > { %v10342_v29 = vpack.c.bf16 %v5321_v30, %v5320_v59 }
0x1f8d   : > { %v10328_v0 = vpack.c.bf16 %v10862_v60, %v10861_v62  ;;  %v5323_v60 = vld [vmem:[%s13413_s2 + $0x18] sm:$0xff] }
0x1f8e   : > { %v5105_v16 = vpop.permute.xlu1 %5104 }
0x1f8f   : > { %10329 = vmatprep.subr.bf16.mxu1 %v10328_v0 }
0x1f90   : > { %10331 = vmatpush3.bf16.msra.mxu1 %v10328_v0 }
0x1f92   : > { %v5107_v22 = vpop.permute.xlu1 %5106 }
0x1f94   : > { %v11014_v2 = vpop.eup %11013 }
0x1f95   : > { %v5000_v21 = vsel %vm2187_vm5, %v11014_v2, 0.0  ;;  %v11016_v3 = vpop.eup %11015 }
0x1f96   : > { %5001 = vadd.xlane.f32.xlu0 %v5000_v21  ;;  %v4997_v61 = vsel %vm2187_vm5, %v11016_v3, 0.0 }
0x1f9a   : > { %4998 = vadd.xlane.f32.xlu0 %v4997_v61 }
0x1fb0   : > { %10864 = vrot.lane.b32.xlu0 %v12708_v47, %s13408_s18  ;;  %v10350_v47 = vpack.c.bf16 %v5417_v12, %v5416_v11  ;;  %v4681_v11 = vadd.f32 %v12736_v7, %v12700_v28 }
0x2023   : > { %v5002_v1 = vpop.xlane.xlu0 %5001 }
0x2024   : > { %11017 = vrcp.f32 %v5002_v1 }
0x2027   : > { %v4999_v36 = vpop.xlane.xlu0 %4998 }
0x2028   : > { %11019 = vrcp.f32 %v4999_v36 }
0x202b   : > { %v10865_v19 = vpop.permute.xlu0 %10864 }
0x202c   : > { %v10867_v5 = vunpack.i.h.bf16 %v10865_v19  ;;  %v10866_v6 = vunpack.i.l.bf16 %v10865_v19  ;;  %v4680_v19 = vadd.f32 %v12738_v8, %v12702_v32 }
0x202e   : > { %v10332_v9 = vpack.c.bf16 %v10867_v5, %v10866_v6  ;;  %v11018_v10 = vpop.eup %11017 }
0x202f   : > { %v5006_v15 = vmul.f32 %v11018_v10, %v11014_v2 }
0x2030   : > { %10334 = vmatprep.subr.msk.bf16.mxu1 %vm12403_vm4, %v10332_v9 }
0x2032   : > { %v11020_v13 = vpop.eup %11019 }
0x2033   : > { %v5005_v14 = vmul.f32 %v11020_v13, %v11016_v3 }
0x2035   : > { %9835 = vmatprep.mubr.msk.f32.mxu1 %vm2187_vm5, %v5005_v14 }
0x2036   : > { %9836 = vmatmul.mubr.msk.f32.vlgmr.msra.gmra.mrb[32].mxu1 %vm2187_vm5, %v5006_v15 }
0x2037   : > { %10337 = vmatpush3.bf16.xpose.msk.msra.mxu1 %vm12403_vm4, %v10332_v9  ;;  %9842 = vmatprep.mubr.msk.f32.mxu1 %vm2099_vm3, %v5105_v16 }
0x2038   : > { %10351 = vmatprep.subr.bf16.mxu1 %v10350_v47 }
0x203e   : > { %9843 = vmatmul.mubr.msk.f32.vlgmr.msra.gmra.mrb[34].mxu1 %vm2099_vm3, %v5107_v22  ;;  %v5595_v22 = vld [vmem:[%s13415_s4 + $0x8] sm:$0xff] }
0x203f   : > { %10353 = vmatpush3.bf16.msra.mxu1 %v10350_v47  ;;  %9871 = vmatprep.mubr.msk.f32.mxu1 %vm1837_vm2, %v12687_v24 }
0x2040   : > { %10355 = vmatprep.subr.bf16.mxu1 %v10354_v20 }
0x2043   : > { %10357 = vmatpush3.bf16.msra.mxu1 %v10354_v20 }
0x2046   : > { %9872 = vmatmul.mubr.msk.f32.vlgmr.msra.gmra.mrb[36].mxu1 %vm1837_vm2, %v12689_v25 }
0x2109   : > { %v9837_v37 = vpop.f32.mrb[32].mxu1 }
0x210a   : > { %v5085_v23 = vpop.f32.mrb[33].mxu1 }
0x2111   : > { %v9844_v26 = vpop.f32.mrb[34].mxu1 }
0x2112   : > { %v5186_v27 = vpop.f32.mrb[35].mxu1  ;;  %v5198_v31 = vsel %vm2187_vm5, %v9844_v26, -inf }
0x2113   : > { %5199 = vmax.xlane.f32.xlu0 %v5198_v31  ;;  %v5195_v34 = vsel %vm2187_vm5, %v5186_v27, -inf }
0x2114   : > { %5196 = vmax.xlane.f32.xlu1 %v5195_v34  ;;  %v5597_v34 = vld [vmem:[%s13415_s4 + $0x18] sm:$0xff] }
0x2119   : > { %v9873_v33 = vpop.f32.mrb[36].mxu1 }
0x211a   : > { %v12798_v24 = vadd.f32 %v9873_v33, %v12795_v35  ;;  %v12800_v38 = vpop.f32.mrb[37].mxu1 }
0x2125   : > { %10869 = vrot.lane.b32.xlu1 %v12710_v4, %s13408_s18 }
0x2129   : > { %4888 = vrot.lane.b32.xlu1 %v12760_v49, %s13411_s1 }
0x212d   : > { %5096 = vrot.lane.b32.xlu1 %v5085_v23, %s13412_s3 }
0x2131   : > { %5098 = vrot.lane.b32.xlu1 %v9837_v37, %s13412_s3  ;;  %v10366_v37 = vpack.c.bf16 %v5595_v22, %v5594_v63 }
0x2133   : > { %10367 = vmatprep.subr.bf16.mxu1 %v10366_v37 }
0x2134   : > { %10369 = vmatpush3.bf16.msra.mxu1 %v10366_v37 }
0x21a0   : > { %v5200_v25 = vpop.xlane.xlu0 %5199 }
0x21a1   : > { %v5202_v39 = vsub.f32 %v9844_v26, %v5200_v25  ;;  %v5197_v40 = vpop.xlane.xlu1 %5196  ;;  %v9187_v25 = vld [vmem:[%s13416_s6] ss:$0 sm:$0xff]  ;;  %s13421_s6 = sld [smem:[#allocation75_spill]] }
0x21a2   : > { %v5201_v41 = vsub.f32 %v5186_v27, %v5197_v40  ;;  %v5596_v27 = vld [vmem:[%s13415_s4 + $0x10] sm:$0xff]  ;;  %s13423_s4 = sld [smem:[#allocation73_spill]] }
0x21a3   : > { %v5205_v42 = vmul.f32 1.442695, %v5202_v39  ;;  %v10370_v33 = vpack.c.bf16 %v5597_v34, %v5596_v27 }
0x21a4   : > { %v5203_v43 = vmul.f32 1.442695, %v5201_v41 }
0x21a5   : > { %v10870_v44 = vpop.permute.xlu1 %10869  ;;  %10371 = vmatprep.subr.bf16.mxu1 %v10370_v33 }
0x21a6   : > { %11021 = vpow2.f32 %v5203_v43  ;;  %v10872_v45 = vunpack.i.h.bf16 %v10870_v44  ;;  %v10871_v46 = vunpack.i.l.bf16 %v10870_v44  ;;  %10373 = vmatpush3.bf16.msra.mxu1 %v10370_v33 }
0x21a7   : > { %11023 = vpow2.f32 %v5205_v42 }
0x21a8   : > { %v10338_v48 = vpack.c.bf16 %v10872_v45, %v10871_v46 }
0x21a9   : > { %v4889_v21 = vpop.permute.xlu1 %4888 }
0x21aa   : > { %10339 = vmatprep.subr.bf16.mxu0 %v10338_v48  ;;  %v4893_v5 = vadd.f32 %v4889_v21, %v12700_v28 }
0x21ab   : > { %10341 = vmatpush3.bf16.msra.mxu0 %v10338_v48  ;;  %v12849_v48 = vadd.f32 %v12795_v35, %v12800_v38 }
0x21ac   : > { %10343 = vmatprep.subr.bf16.mxu0 %v10342_v29  ;;  %v5315_v15 = vsel %vm2099_vm3, %v4681_v11, %v4893_v5 }
0x21ad   : > { %v5097_v3 = vpop.permute.xlu1 %5096 }
0x21ae   : > { %v5102_v12 = vadd.f32 %v5097_v3, %v12702_v32 }
0x21b0   : > { %v11022_v4 = vpop.eup %11021 }
0x21b1   : > { %v5207_v49 = vsel %vm2187_vm5, %v11022_v4, 0.0  ;;  %v11024_v51 = vpop.eup %11023  ;;  %v5099_v1 = vpop.permute.xlu1 %5098 }
0x21b2   : > { %5208 = vadd.xlane.f32.xlu0 %v5207_v49  ;;  %v5210_v52 = vsel %vm2187_vm5, %v11024_v51, 0.0  ;;  %v5103_v6 = vadd.f32 %v5099_v1, %v12700_v28  ;;  %v9196_v49 = vld [vmem:[%s13418_s9] ss:$0 sm:$0xff]  ;;  %s13419_s9 = sld [smem:[#allocation72_spill]] }
0x21b4   : > { %v5317_v16 = vsel %vm2187_vm5, %v5315_v15, %v5103_v6 }
0x21b6   : > { %5211 = vadd.xlane.f32.xlu0 %v5210_v52 }
0x21cc   : > { %4886 = vrot.lane.b32.xlu0 %v12762_v50, %s13411_s1  ;;  %v5322_v50 = vld [vmem:[%s13413_s2 + $0x10] sm:$0xff]  ;;  %s13414_s2 = sld [smem:[#allocation68_spill]] }
0x21cd   : > { %v10346_v62 = vpack.c.bf16 %v5323_v60, %v5322_v50 }
0x21d2   : > { %v5504_v23 = vld [vmem:[%s13414_s2 + $0x10] sm:$0xff]  ;;  %v5505_v26 = vld [vmem:[%s13414_s2 + $0x18] sm:$0xff] }
0x21d3   : > { %v10362_v31 = vpack.c.bf16 %v5505_v26, %v5504_v23 }
0x223f   : > { %v5209_v53 = vpop.xlane.xlu0 %5208 }
0x2240   : > { %11025 = vrcp.f32 %v5209_v53 }
0x2243   : > { %v5212_v58 = vpop.xlane.xlu0 %5211 }
0x2244   : > { %11027 = vrcp.f32 %v5212_v58 }
0x2247   : > { %v4887_v61 = vpop.permute.xlu0 %4886 }
0x2248   : > { %v4892_v36 = vadd.f32 %v4887_v61, %v12702_v32 }
0x224a   : > { %v11026_v54 = vpop.eup %11025  ;;  %v5314_v9 = vsel %vm2099_vm3, %v4680_v19, %v4892_v36 }
0x224b   : > { %v5215_v55 = vmul.f32 %v11026_v54, %v11022_v4  ;;  %v5316_v47 = vsel %vm2187_vm5, %v5314_v9, %v5102_v12  ;;  %v9193_v4 = vld [vmem:[%s13417_s8] ss:$0 sm:$0xff]  ;;  %s13420_s8 = sld [smem:[#allocation74_spill]] }
0x224d   : > { %9849 = vmatprep.mubr.msk.f32.mxu0 %vm2187_vm5, %v5215_v55 }
0x224e   : > { %v11028_v56 = vpop.eup %11027 }
0x224f   : > { %v5216_v57 = vmul.f32 %v11028_v56, %v11024_v51 }
0x2251   : > { %9850 = vmatmul.mubr.msk.f32.vlgmr.msra.gmra.mrb[32].mxu0 %vm2187_vm5, %v5216_v57 }
0x2252   : > { %10345 = vmatpush3.bf16.msra.mxu0 %v10342_v29 }
0x2253   : > { %10347 = vmatprep.subr.bf16.mxu0 %v10346_v62 }
0x2256   : > { %10349 = vmatpush3.bf16.msra.mxu0 %v10346_v62 }
0x2324   : > { %v9851_v0 = vpop.f32.mrb[32].mxu0 }
0x2325   : > { %5308 = vrot.lane.b32.xlu1 %v9851_v0, %s13399_s15  ;;  %v5295_v2 = vpop.f32.mrb[33].mxu0 }
0x2326   : > { %5306 = vrot.lane.b32.xlu0 %v5295_v2, %s13399_s15 }
0x2397   : > { %v5309_v10 = vpop.permute.xlu1 %5308 }
0x2398   : > { %v5313_v13 = vadd.f32 %v5309_v10, %v12700_v28  ;;  %v5307_v14 = vpop.permute.xlu0 %5306  ;;  %v5502_v28 = vld [vmem:[%s13414_s2] sm:$0xff] }
0x2399   : > { %v5312_v8 = vadd.f32 %v5307_v14, %v12702_v32  ;;  %v5503_v32 = vld [vmem:[%s13414_s2 + $0x8] sm:$0xff]  ;;  %s13422_s2 = sld [smem:[#allocation77_spill]] }
0x239a   : > { %v5319_v7 = vsel %vm2929_vm6, %v5317_v16, %v5313_v13  ;;  %v10358_v20 = vpack.c.bf16 %v5503_v32, %v5502_v28 }
0x239b   : > { %v5318_v17 = vsel %vm2929_vm6, %v5316_v47, %v5312_v8 }
0x239c   : > { %9860 = vmatprep.mubr.msk.f32.mxu0 %vm1837_vm2, %v5318_v17  ;;  %10359 = vmatprep.subr.bf16.mxu0 %v10358_v20 }
0x239d   : > { %9861 = vmatmul.mubr.msk.f32.vlgmr.msra.gmra.mrb[34].mxu0 %vm1837_vm2, %v5319_v7 }
0x239e   : > { %10361 = vmatpush3.bf16.msra.mxu0 %v10358_v20 }
0x239f   : > { %10363 = vmatprep.subr.bf16.mxu0 %v10362_v31 }
0x23a2   : > { %10365 = vmatpush3.bf16.msra.mxu0 %v10362_v31 }
0x2470   : > { %v9862_v39 = vpop.f32.mrb[34].mxu0 }
0x2471   : > { %v5409_v40 = vadd.f32 %v9862_v39, %v9187_v25  ;;  %v5403_v41 = vpop.f32.mrb[35].mxu0 }
0x2472   : > { %v5404_v42 = vadd.f32 %v9187_v25, %v5403_v41 }
0x2473   : > { %v5413_v43 = vmax.f32 %v5409_v40, 0.0 }
0x2474   : > { %v5412_v44 = vmax.f32 %v5404_v42, 0.0 }
0x2475   : > { %v5415_v46 = vadd.f32 %v5413_v43, %v5319_v7 }
0x2476   : > { %v5414_v45 = vadd.f32 %v5412_v44, %v5318_v17 }
0x2478   : > { %9882 = vmatprep.mubr.msk.f32.mxu0 %vm1837_vm2, %v5414_v45  ;;  %9893 = vmatprep.mubr.msk.f32.mxu1 %vm1837_vm2, %v5414_v45 }
0x2479   : > { %9883 = vmatmul.mubr.msk.f32.vlgmr.msra.gmra.mrb[36].mxu0 %vm1837_vm2, %v5415_v46  ;;  %9894 = vmatmul.mubr.msk.f32.vlgmr.msra.gmra.mrb[38].mxu1 %vm1837_vm2, %v5415_v46 }
0x247a   : > { %9900 = vmatprep.mubr.msk.f32.mxu0 %vm2099_vm3, %v12849_v48 }
0x254c   : > { %v9884_v51 = vpop.f32.mrb[36].mxu0  ;;  %v9895_v52 = vpop.f32.mrb[38].mxu1 }
0x254d   : > { %v5591_v53 = vadd.f32 %v9884_v51, %v9193_v4  ;;  %v5677_v58 = vadd.f32 %v9895_v52, %v9196_v49  ;;  %v5585_v54 = vpop.f32.mrb[37].mxu0  ;;  %v5671_v35 = vpop.f32.mrb[39].mxu1 }
0x254e   : > { %v5586_v38 = vadd.f32 %v9193_v4, %v5585_v54  ;;  %v5672_v55 = vadd.f32 %v9196_v49, %v5671_v35 }
0x2550   : > { %v10374_v56 = vpack.c.bf16 %v5591_v53, %v5586_v38  ;;  %v10380_v57 = vpack.c.bf16 %v5677_v58, %v5672_v55  ;;  %v12859_v59 = vpack.i.bf16 %v5591_v53, %v5586_v38  ;;  %v12861_v30 = vpack.i.bf16 %v5677_v58, %v5672_v55 }
0x2552   : > { %10376 = vmatprep.subr.msk.bf16.mxu0 %vm12403_vm4, %v10374_v56  ;;  %10381 = vmatprep.subr.bf16.mxu1 %v10380_v57 }
0x2553   : > { %10379 = vmatpush3.bf16.xpose.msk.msra.mxu0 %vm12403_vm4, %v10374_v56  ;;  %10383 = vmatpush3.bf16.msra.mxu1 %v10380_v57 }
0x255a   : > { %9901 = vmatmul.mubr.msk.f32.vlgmr.msra.gmra.mrb[38].mxu0 %vm2099_vm3, %v12798_v24 }
0x262d   : > { %v9902_v29 = vpop.f32.mrb[38].mxu0 }
0x262e   : > { %v5758_v50 = vpop.f32.mrb[39].mxu0  ;;  %v5770_v60 = vsel %vm2187_vm5, %v9902_v29, -inf }
0x262f   : > { %5771 = vmax.xlane.f32.xlu1 %v5770_v60  ;;  %v5767_v62 = vsel %vm2187_vm5, %v5758_v50, -inf }
0x2630   : > { %5768 = vmax.xlane.f32.xlu0 %v5767_v62 }
0x2640   : > { %5872 = vrot.lane.b32.xlu1 %v12849_v48, %s13406_s14 }
0x2644   : > { %5874 = vrot.lane.b32.xlu1 %v12798_v24, %s13406_s14 }
0x26bc   : > { %v5772_v0 = vpop.xlane.xlu1 %5771 }
0x26bd   : > { %v5774_v2 = vsub.f32 %v9902_v29, %v5772_v0  ;;  %v5769_v21 = vpop.xlane.xlu0 %5768 }
0x26be   : > { %v5773_v3 = vsub.f32 %v5758_v50, %v5769_v21 }
0x26bf   : > { %v5777_v61 = vmul.f32 1.442695, %v5774_v2 }
0x26c0   : > { %v5775_v1 = vmul.f32 1.442695, %v5773_v3  ;;  %v5873_v17 = vpop.permute.xlu1 %5872 }
0x26c1   : > { %11029 = vpow2.f32 %v5777_v61 }
0x26c2   : > { %11031 = vpow2.f32 %v5775_v1 }
0x26c4   : > { %v5875_v7 = vpop.permute.xlu1 %5874 }
0x26cb   : > { %v11030_v36 = vpop.eup %11029 }
0x26cc   : > { %v5782_v19 = vsel %vm2187_vm5, %v11030_v36, 0.0  ;;  %v11032_v5 = vpop.eup %11031 }
0x26cd   : > { %5783 = vadd.xlane.f32.xlu0 %v5782_v19  ;;  %v5779_v6 = vsel %vm2187_vm5, %v11032_v5, 0.0 }
0x26d1   : > { %5780 = vadd.xlane.f32.xlu0 %v5779_v6 }
0x26e7   : > { %10874 = vrot.lane.b32.xlu0 %v12859_v59, %s13406_s14 }
0x275a   : > { %v5784_v9 = vpop.xlane.xlu0 %5783 }
0x275b   : > { %11033 = vrcp.f32 %v5784_v9 }
0x275e   : > { %v5781_v10 = vpop.xlane.xlu0 %5780 }
0x275f   : > { %11035 = vrcp.f32 %v5781_v10 }
0x2762   : > { %v10875_v11 = vpop.permute.xlu0 %10874 }
0x2763   : > { %v10877_v12 = vunpack.i.h.bf16 %v10875_v11  ;;  %v10876_v13 = vunpack.i.l.bf16 %v10875_v11 }
0x2765   : > { %v10384_v14 = vpack.c.bf16 %v10877_v12, %v10876_v13  ;;  %v11034_v8 = vpop.eup %11033 }
0x2766   : > { %v5788_v16 = vmul.f32 %v11034_v8, %v11030_v36 }
0x2767   : > { %10386 = vmatprep.subr.msk.bf16.mxu1 %vm12403_vm4, %v10384_v14 }
0x2769   : > { %v11036_v15 = vpop.eup %11035 }
0x276a   : > { %v5787_v47 = vmul.f32 %v11036_v15, %v11032_v5 }
0x276c   : > { %9907 = vmatprep.mubr.msk.f32.mxu1 %vm2187_vm5, %v5787_v47 }
0x276d   : > { %9908 = vmatmul.mubr.msk.f32.vlgmr.msra.gmra.mrb[40].mxu1 %vm2187_vm5, %v5788_v16 }
0x276e   : > { %10389 = vmatpush3.bf16.xpose.msk.msra.mxu1 %vm12403_vm4, %v10384_v14  ;;  %9914 = vmatprep.mubr.msk.f32.mxu1 %vm2099_vm3, %v5873_v17 }
0x2775   : > { %9915 = vmatmul.mubr.msk.f32.vlgmr.msra.gmra.mrb[42].mxu1 %vm2099_vm3, %v5875_v7 }
0x2840   : > { %v12887_v28 = vpop.f32.mrb[40].mxu1 }
0x2841   : > { %v12889_v32 = vpop.f32.mrb[41].mxu1 }
0x2848   : > { %v9916_v63 = vpop.f32.mrb[42].mxu1 }
0x2849   : > { %v5954_v20 = vpop.f32.mrb[43].mxu1  ;;  %v5966_v22 = vsel %vm2187_vm5, %v9916_v63, -inf }
0x284a   : > { %5967 = vmax.xlane.f32.xlu0 %v5966_v22  ;;  %v5963_v37 = vsel %vm2187_vm5, %v5954_v20, -inf }
0x284b   : > { %5964 = vmax.xlane.f32.xlu1 %v5963_v37 }
0x285c   : > { %10879 = vrot.lane.b32.xlu1 %v12861_v30, %s13406_s14 }
0x2860   : > { %6084 = vrot.lane.b32.xlu1 %v12849_v48, %s13407_s26 }
0x2864   : > { %6086 = vrot.lane.b32.xlu1 %v12798_v24, %s13407_s26 }
0x28d7   : > { %v5968_v23 = vpop.xlane.xlu0 %5967 }
0x28d8   : > { %v5970_v26 = vsub.f32 %v9916_v63, %v5968_v23  ;;  %v5965_v27 = vpop.xlane.xlu1 %5964 }
0x28d9   : > { %v5969_v31 = vsub.f32 %v5954_v20, %v5965_v27 }
0x28da   : > { %v5973_v34 = vmul.f32 1.442695, %v5970_v26 }
0x28db   : > { %v5971_v33 = vmul.f32 1.442695, %v5969_v31 }
0x28dc   : > { %11037 = vpow2.f32 %v5973_v34  ;;  %v10880_v25 = vpop.permute.xlu1 %10879 }
0x28dd   : > { %v10882_v39 = vunpack.i.h.bf16 %v10880_v25  ;;  %v10881_v40 = vunpack.i.l.bf16 %v10880_v25  ;;  %11039 = vpow2.f32 %v5971_v33 }
0x28df   : > { %v10390_v41 = vpack.c.bf16 %v10882_v39, %v10881_v40 }
0x28e0   : > { %v6085_v55 = vpop.permute.xlu1 %6084 }
0x28e1   : > { %10391 = vmatprep.subr.bf16.mxu0 %v10390_v41 }
0x28e2   : > { %10393 = vmatpush3.bf16.msra.mxu0 %v10390_v41 }
0x28e4   : > { %v6087_v56 = vpop.permute.xlu1 %6086 }
0x28e6   : > { %v11038_v42 = vpop.eup %11037 }
0x28e7   : > { %v5978_v43 = vsel %vm2187_vm5, %v11038_v42, 0.0  ;;  %v11040_v44 = vpop.eup %11039 }
0x28e8   : > { %5979 = vadd.xlane.f32.xlu0 %v5978_v43  ;;  %v5975_v45 = vsel %vm2187_vm5, %v11040_v44, 0.0 }
0x28ec   : > { %5976 = vadd.xlane.f32.xlu0 %v5975_v45 }
0x2902   : > { %10884 = vrot.lane.b32.xlu0 %v12859_v59, %s13407_s26 }
0x2975   : > { %v5980_v46 = vpop.xlane.xlu0 %5979 }
0x2976   : > { %11041 = vrcp.f32 %v5980_v46 }
0x2979   : > { %v5977_v4 = vpop.xlane.xlu0 %5976 }
0x297a   : > { %11043 = vrcp.f32 %v5977_v4 }
0x297d   : > { %v10885_v49 = vpop.permute.xlu0 %10884 }
0x297e   : > { %v10887_v51 = vunpack.i.h.bf16 %v10885_v49  ;;  %v10886_v52 = vunpack.i.l.bf16 %v10885_v49 }
0x2980   : > { %v10394_v53 = vpack.c.bf16 %v10887_v51, %v10886_v52  ;;  %v11042_v58 = vpop.eup %11041 }
0x2981   : > { %v5984_v38 = vmul.f32 %v11042_v58, %v11038_v42 }
0x2982   : > { %10396 = vmatprep.subr.msk.bf16.mxu0 %vm12403_vm4, %v10394_v53 }
0x2984   : > { %v11044_v54 = vpop.eup %11043 }
0x2985   : > { %v5983_v35 = vmul.f32 %v11044_v54, %v11040_v44 }
0x2987   : > { %9921 = vmatprep.mubr.msk.f32.mxu0 %vm2187_vm5, %v5983_v35 }
0x2988   : > { %9922 = vmatmul.mubr.msk.f32.vlgmr.msra.gmra.mrb[40].mxu0 %vm2187_vm5, %v5984_v38 }
0x2989   : > { %10399 = vmatpush3.bf16.xpose.msk.msra.mxu0 %vm12403_vm4, %v10394_v53  ;;  %9928 = vmatprep.mubr.msk.f32.mxu0 %vm2099_vm3, %v6085_v55 }
0x2990   : > { %9929 = vmatmul.mubr.msk.f32.vlgmr.msra.gmra.mrb[42].mxu0 %vm2099_vm3, %v6087_v56  ;;  %v6510_v56 = vld [vmem:[%s13419_s9] sm:$0xff] }
0x2a5b   : > { %v9923_v57 = vpop.f32.mrb[40].mxu0 }
0x2a5c   : > { %v12911_v29 = vpop.f32.mrb[41].mxu0 }
0x2a63   : > { %v9930_v50 = vpop.f32.mrb[42].mxu0 }
0x2a64   : > { %v6166_v60 = vpop.f32.mrb[43].mxu0  ;;  %v6178_v62 = vsel %vm2187_vm5, %v9930_v50, -inf }
0x2a65   : > { %6179 = vmax.xlane.f32.xlu0 %v6178_v62  ;;  %v6175_v0 = vsel %vm2187_vm5, %v6166_v60, -inf }
0x2a66   : > { %6176 = vmax.xlane.f32.xlu1 %v6175_v0  ;;  %v6607_v0 = vld [vmem:[%s13420_s8] sm:$0xff] }
0x2a77   : > { %10889 = vrot.lane.b32.xlu1 %v12861_v30, %s13407_s26 }
0x2a7b   : > { %6294 = vrot.lane.b32.xlu1 %v12849_v48, %s13408_s18 }
0x2a7f   : > { %6296 = vrot.lane.b32.xlu1 %v12798_v24, %s13408_s18 }
0x2af2   : > { %v6180_v2 = vpop.xlane.xlu0 %6179 }
0x2af3   : > { %v6182_v21 = vsub.f32 %v9930_v50, %v6180_v2  ;;  %v6177_v3 = vpop.xlane.xlu1 %6176  ;;  %v6512_v50 = vld [vmem:[%s13419_s9 + $0x10] sm:$0xff]  ;;  %v6608_v2 = vld [vmem:[%s13420_s8 + $0x8] sm:$0xff] }
0x2af4   : > { %v6181_v61 = vsub.f32 %v6166_v60, %v6177_v3  ;;  %v6513_v60 = vld [vmem:[%s13419_s9 + $0x18] sm:$0xff]  ;;  %v11748_v3 = vmov 0.0|0.0  }
0x2af5   : > { %v6185_v1 = vmul.f32 1.442695, %v6182_v21  ;;  %v10418_v62 = vpack.c.bf16 %v6513_v60, %v6512_v50  ;;  %v6609_v21 = vld [vmem:[%s13420_s8 + $0x10] sm:$0xff] }
0x2af6   : > { %v6183_v36 = vmul.f32 1.442695, %v6181_v61  ;;  %v10423_v61 = vpack.c.bf16 %v6608_v2, %v6607_v0 }
0x2af7   : > { %11045 = vpow2.f32 %v6185_v1  ;;  %v10890_v19 = vpop.permute.xlu1 %10889  ;;  %v6610_v1 = vld [vmem:[%s13420_s8 + $0x18] sm:$0xff]  ;;  %s13424_s8 = sld [smem:[#allocation76_spill]] }
0x2af8   : > { %v10892_v5 = vunpack.i.h.bf16 %v10890_v19  ;;  %v10891_v6 = vunpack.i.l.bf16 %v10890_v19  ;;  %11047 = vpow2.f32 %v6183_v36  ;;  %v10426_v36 = vpack.c.bf16 %v6610_v1, %v6609_v21 }
0x2afa   : > { %v10400_v9 = vpack.c.bf16 %v10892_v5, %v10891_v6 }
0x2afb   : > { %v6295_v37 = vpop.permute.xlu1 %6294 }
0x2afc   : > { %10401 = vmatprep.subr.bf16.mxu1 %v10400_v9 }
0x2afd   : > { %10403 = vmatpush3.bf16.msra.mxu1 %v10400_v9 }
0x2b01   : > { %v11046_v10 = vpop.eup %11045 }
0x2b02   : > { %v6190_v11 = vsel %vm2187_vm5, %v11046_v10, 0.0  ;;  %v11048_v12 = vpop.eup %11047 }
0x2b03   : > { %6191 = vadd.xlane.f32.xlu0 %v6190_v11  ;;  %v6187_v13 = vsel %vm2187_vm5, %v11048_v12, 0.0 }
0x2b07   : > { %6188 = vadd.xlane.f32.xlu0 %v6187_v13  ;;  %v5870_v13 = vadd.f32 %v12889_v32, %v12849_v48 }
0x2b1d   : > { %10894 = vrot.lane.b32.xlu0 %v12859_v59, %s13408_s18  ;;  %v6297_v59 = vpop.permute.xlu1 %6296 }
0x2b90   : > { %v6192_v14 = vpop.xlane.xlu0 %6191 }
0x2b91   : > { %11049 = vrcp.f32 %v6192_v14 }
0x2b94   : > { %v6189_v8 = vpop.xlane.xlu0 %6188 }
0x2b95   : > { %11051 = vrcp.f32 %v6189_v8 }
0x2b98   : > { %v10895_v15 = vpop.permute.xlu0 %10894 }
0x2b99   : > { %v10897_v47 = vunpack.i.h.bf16 %v10895_v15  ;;  %v10896_v16 = vunpack.i.l.bf16 %v10895_v15 }
0x2b9b   : > { %v10404_v17 = vpack.c.bf16 %v10897_v47, %v10896_v16  ;;  %v11050_v7 = vpop.eup %11049  ;;  %v5871_v16 = vadd.f32 %v12887_v28, %v12798_v24  ;;  %v6692_v28 = vld [vmem:[%s13421_s6 + $0x8] sm:$0xff] }
0x2b9c   : > { %v6196_v22 = vmul.f32 %v11050_v7, %v11046_v10 }
0x2b9d   : > { %10406 = vmatprep.subr.msk.bf16.mxu1 %vm12403_vm4, %v10404_v17 }
0x2b9f   : > { %v11052_v63 = vpop.eup %11051 }
0x2ba0   : > { %v6195_v20 = vmul.f32 %v11052_v63, %v11048_v12 }
0x2ba2   : > { %9935 = vmatprep.mubr.msk.f32.mxu1 %vm2187_vm5, %v6195_v20 }
0x2ba3   : > { %9936 = vmatmul.mubr.msk.f32.vlgmr.msra.gmra.mrb[44].mxu1 %vm2187_vm5, %v6196_v22 }
0x2ba4   : > { %10409 = vmatpush3.bf16.xpose.msk.msra.mxu1 %vm12403_vm4, %v10404_v17  ;;  %9942 = vmatprep.mubr.msk.f32.mxu1 %vm2099_vm3, %v6295_v37 }
0x2ba5   : > { %10422 = vmatprep.subr.bf16.mxu1 %v11748_v3 }
0x2bab   : > { %9943 = vmatmul.mubr.msk.f32.vlgmr.msra.gmra.mrb[46].mxu1 %vm2099_vm3, %v6297_v59 }
0x2bac   : > { %10424 = vmatpush3.bf16.msra.mxu1 %v10423_v61 }
0x2bad   : > { %10425 = vmatprep.subr.bf16.mxu1 %v11748_v3 }
0x2bb0   : > { %10427 = vmatpush3.bf16.msra.mxu1 %v10426_v36  ;;  %v9226_v36 = vld [vmem:[#allocation16] ss:$0 sm:$0xff] }
0x2c76   : > { %v9937_v23 = vpop.f32.mrb[44].mxu1 }
0x2c77   : > { %v6275_v26 = vpop.f32.mrb[45].mxu1 }
0x2c7e   : > { %v9944_v27 = vpop.f32.mrb[46].mxu1 }
0x2c7f   : > { %v6376_v31 = vpop.f32.mrb[47].mxu1  ;;  %v6388_v34 = vsel %vm2187_vm5, %v9944_v27, -inf }
0x2c80   : > { %6389 = vmax.xlane.f32.xlu0 %v6388_v34  ;;  %v6385_v33 = vsel %vm2187_vm5, %v6376_v31, -inf  ;;  %v11750_v34 = vmov 0.0  }
0x2c81   : > { %6386 = vmax.xlane.f32.xlu1 %v6385_v33  ;;  %9971 = vmatprep.mubr.msk.f32.mxu1 %vm11749_vm7, %v11750_v34  ;;  %v6606_v33 = vld [vmem:[#allocation14] sm:$0xff] }
0x2c82   : > { %9972 = vmatmul.mubr.msk.f32.vlgmr.msra.gmra.mrb[48].mxu1 %vm1837_vm2, %v6606_v33 }
0x2c92   : > { %10899 = vrot.lane.b32.xlu1 %v12861_v30, %s13408_s18 }
0x2c96   : > { %6078 = vrot.lane.b32.xlu1 %v9923_v57, %s13411_s1  ;;  %v6511_v57 = vld [vmem:[%s13419_s9 + $0x8] sm:$0xff] }
0x2c9a   : > { %6286 = vrot.lane.b32.xlu1 %v6275_v26, %s13412_s3 }
0x2c9e   : > { %6288 = vrot.lane.b32.xlu1 %v9937_v23, %s13412_s3 }
0x2d0d   : > { %v6390_v25 = vpop.xlane.xlu0 %6389 }
0x2d0e   : > { %v6392_v39 = vsub.f32 %v9944_v27, %v6390_v25  ;;  %v6387_v40 = vpop.xlane.xlu1 %6386  ;;  %v6784_v27 = vld [vmem:[%s13422_s2 + $0x8] sm:$0xff]  ;;  %v6693_v25 = vld [vmem:[%s13421_s6 + $0x10] sm:$0xff] }
0x2d0f   : > { %v6391_v41 = vsub.f32 %v6376_v31, %v6387_v40  ;;  %v6785_v40 = vld [vmem:[%s13422_s2 + $0x10] sm:$0xff] }
0x2d10   : > { %v6395_v42 = vmul.f32 1.442695, %v6392_v39  ;;  %v6694_v39 = vld [vmem:[%s13421_s6 + $0x18] sm:$0xff] }
0x2d11   : > { %v6393_v43 = vmul.f32 1.442695, %v6391_v41  ;;  %v10432_v41 = vpack.c.bf16 %v6694_v39, %v6693_v25 }
0x2d12   : > { %v10900_v44 = vpop.permute.xlu1 %10899 }
0x2d13   : > { %11053 = vpow2.f32 %v6393_v43  ;;  %v10902_v45 = vunpack.i.h.bf16 %v10900_v44  ;;  %v10901_v46 = vunpack.i.l.bf16 %v10900_v44  ;;  %v9223_v44 = vld [vmem:[%s13423_s4] ss:$0 sm:$0xff]  ;;  %s13425_s4 = sld [smem:[#allocation79_spill]] }
0x2d14   : > { %11055 = vpow2.f32 %v6395_v42  ;;  %v6786_v42 = vld [vmem:[%s13422_s2 + $0x18] sm:$0xff] }
0x2d15   : > { %v10410_v4 = vpack.c.bf16 %v10902_v45, %v10901_v46  ;;  %v10440_v43 = vpack.c.bf16 %v6786_v42, %v6785_v40 }
0x2d16   : > { %v6079_v6 = vpop.permute.xlu1 %6078 }
0x2d17   : > { %10411 = vmatprep.subr.bf16.mxu0 %v10410_v4  ;;  %v6083_v14 = vadd.f32 %v6079_v6, %v12798_v24 }
0x2d18   : > { %10413 = vmatpush3.bf16.msra.mxu0 %v10410_v4 }
0x2d19   : > { %v6505_v20 = vsel %vm2099_vm3, %v5871_v16, %v6083_v14 }
0x2d1a   : > { %v6287_v9 = vpop.permute.xlu1 %6286 }
0x2d1b   : > { %v6292_v17 = vadd.f32 %v6287_v9, %v12849_v48 }
0x2d1d   : > { %v11054_v30 = vpop.eup %11053 }
0x2d1e   : > { %v6397_v49 = vsel %vm2187_vm5, %v11054_v30, 0.0  ;;  %v11056_v51 = vpop.eup %11055  ;;  %v6289_v11 = vpop.permute.xlu1 %6288 }
0x2d1f   : > { %6398 = vadd.xlane.f32.xlu0 %v6397_v49  ;;  %v6400_v52 = vsel %vm2187_vm5, %v11056_v51, 0.0  ;;  %v6293_v8 = vadd.f32 %v6289_v11, %v12798_v24 }
0x2d21   : > { %v6507_v37 = vsel %vm2187_vm5, %v6505_v20, %v6293_v8 }
0x2d23   : > { %6401 = vadd.xlane.f32.xlu0 %v6400_v52 }
0x2d39   : > { %6076 = vrot.lane.b32.xlu0 %v12911_v29, %s13411_s1  ;;  %v10414_v29 = vpack.c.bf16 %v6511_v57, %v6510_v56 }
0x2d3b   : > { %10415 = vmatprep.subr.bf16.mxu0 %v10414_v29 }
0x2dac   : > { %v6399_v53 = vpop.xlane.xlu0 %6398 }
0x2dad   : > { %11057 = vrcp.f32 %v6399_v53 }
0x2db0   : > { %v6402_v58 = vpop.xlane.xlu0 %6401 }
0x2db1   : > { %11059 = vrcp.f32 %v6402_v58  ;;  %v6687_v58 = vpop.f32.mrb[48].mxu1 }
0x2db4   : > { %v6077_v10 = vpop.permute.xlu0 %6076 }
0x2db5   : > { %v6082_v12 = vadd.f32 %v6077_v10, %v12849_v48 }
0x2db7   : > { %v11058_v54 = vpop.eup %11057  ;;  %v6504_v15 = vsel %vm2099_vm3, %v5870_v13, %v6082_v12 }
0x2db8   : > { %v6405_v35 = vmul.f32 %v11058_v54, %v11054_v30  ;;  %v6506_v22 = vsel %vm2187_vm5, %v6504_v15, %v6292_v17  ;;  %v9973_v54 = vpop.f32.mrb[49].mxu1 }
0x2dba   : > { %9949 = vmatprep.mubr.msk.f32.mxu0 %vm2187_vm5, %v6405_v35  ;;  %v9228_v35 = vld [vmem:[%s13424_s8] ss:$0 sm:$0xff]  ;;  %s13426_s8 = sld [smem:[#allocation80_spill]] }
0x2dbb   : > { %v11060_v38 = vpop.eup %11059 }
0x2dbc   : > { %v6406_v55 = vmul.f32 %v11060_v38, %v11056_v51  ;;  %v9231_v38 = vld [vmem:[#allocation17] ss:$0 sm:$0xff] }
0x2dbe   : > { %9950 = vmatmul.mubr.msk.f32.vlgmr.msra.gmra.mrb[44].mxu0 %vm2187_vm5, %v6406_v55 }
0x2dbf   : > { %10417 = vmatpush3.bf16.msra.mxu0 %v10414_v29 }
0x2dc0   : > { %10419 = vmatprep.subr.bf16.mxu0 %v10418_v62 }
0x2dc3   : > { %10421 = vmatpush3.bf16.msra.mxu0 %v10418_v62 }
0x2e91   : > { %v9951_v19 = vpop.f32.mrb[44].mxu0 }
0x2e92   : > { %6498 = vrot.lane.b32.xlu1 %v9951_v19, %s13399_s15  ;;  %v6485_v5 = vpop.f32.mrb[45].mxu0  ;;  %v13007_v19 = vadd.f32 %v9226_v36, %v6687_v58 }
0x2e93   : > { %6496 = vrot.lane.b32.xlu0 %v6485_v5, %s13399_s15 }
0x2f04   : > { %v6499_v47 = vpop.permute.xlu1 %6498 }
0x2f05   : > { %v6503_v7 = vadd.f32 %v6499_v47, %v12798_v24  ;;  %v6497_v63 = vpop.permute.xlu0 %6496  ;;  %v6691_v24 = vld [vmem:[%s13421_s6] sm:$0xff]  ;;  %s13429_s6 = sld [smem:[#allocation82_spill]] }
0x2f06   : > { %v6502_v32 = vadd.f32 %v6497_v63, %v12849_v48  ;;  %v6783_v48 = vld [vmem:[%s13422_s2] sm:$0xff]  ;;  %v10428_v26 = vpack.c.bf16 %v6692_v28, %v6691_v24  ;;  %s13427_s2 = sld [smem:[#allocation81_spill]] }
0x2f07   : > { %v6509_v23 = vsel %vm2929_vm6, %v6507_v37, %v6503_v7  ;;  %v10436_v31 = vpack.c.bf16 %v6784_v27, %v6783_v48 }
0x2f08   : > { %v6508_v59 = vsel %vm2929_vm6, %v6506_v22, %v6502_v32  ;;  %10429 = vmatprep.subr.bf16.mxu0 %v10428_v26 }
0x2f09   : > { %9960 = vmatprep.mubr.msk.f32.mxu0 %vm1837_vm2, %v6508_v59  ;;  %10437 = vmatprep.subr.bf16.mxu1 %v10436_v31 }
0x2f0a   : > { %9961 = vmatmul.mubr.msk.f32.vlgmr.msra.gmra.mrb[46].mxu0 %vm1837_vm2, %v6509_v23  ;;  %10439 = vmatpush3.bf16.msra.mxu1 %v10436_v31 }
0x2f0b   : > { %10431 = vmatpush3.bf16.msra.mxu0 %v10428_v26  ;;  %10441 = vmatprep.subr.bf16.mxu1 %v10440_v43 }
0x2f0c   : > { %10433 = vmatprep.subr.bf16.mxu0 %v10432_v41 }
0x2f0e   : > { %10443 = vmatpush3.bf16.msra.mxu1 %v10440_v43 }
0x2f0f   : > { %10435 = vmatpush3.bf16.msra.mxu0 %v10432_v41  ;;  %10448 = vmatprep.subr.bf16.mxu1 %v11748_v3 }
0x2f10   : > { %10444 = vmatprep.subr.bf16.mxu0 %v11748_v3 }
0x2fdd   : > { %v9962_v45 = vpop.f32.mrb[46].mxu0 }
0x2fde   : > { %v6599_v46 = vadd.f32 %v9962_v45, %v9223_v44  ;;  %v6593_v4 = vpop.f32.mrb[47].mxu0 }
0x2fdf   : > { %v6594_v30 = vadd.f32 %v9223_v44, %v6593_v4 }
0x2fe0   : > { %v6603_v49 = vmax.f32 %v6599_v46, 0.0 }
0x2fe1   : > { %v6602_v51 = vmax.f32 %v6594_v30, 0.0 }
0x2fe2   : > { %v6605_v53 = vadd.f32 %v6603_v49, %v6509_v23 }
0x2fe3   : > { %v6604_v52 = vadd.f32 %v6602_v51, %v6508_v59 }
0x2fe5   : > { %9982 = vmatprep.mubr.msk.f32.mxu0 %vm1837_vm2, %v6604_v52  ;;  %9993 = vmatprep.mubr.msk.f32.mxu1 %vm1837_vm2, %v6604_v52 }
0x2fe6   : > { %9983 = vmatmul.mubr.msk.f32.vlgmr.msra.gmra.mrb[48].mxu0 %vm1837_vm2, %v6605_v53  ;;  %9994 = vmatmul.mubr.msk.f32.vlgmr.msra.gmra.mrb[50].mxu1 %vm1837_vm2, %v6605_v53 }
0x2fe7   : > { %10000 = vmatprep.mubr.msk.f32.mxu0 %vm11749_vm7, %v11750_v34  ;;  %10007 = vmatprep.mubr.msk.f32.mxu1 %vm11749_vm7, %v11750_v34 }
0x30b9   : > { %v9984_v55 = vpop.f32.mrb[48].mxu0  ;;  %v9995_v56 = vpop.f32.mrb[50].mxu1 }
0x30ba   : > { %v6780_v57 = vadd.f32 %v9984_v55, %v9228_v35  ;;  %v6866_v29 = vadd.f32 %v9995_v56, %v9231_v38  ;;  %v6774_v50 = vpop.f32.mrb[49].mxu0  ;;  %v6860_v60 = vpop.f32.mrb[51].mxu1 }
0x30bb   : > { %v6775_v62 = vadd.f32 %v9228_v35, %v6774_v50  ;;  %v6861_v0 = vadd.f32 %v9231_v38, %v6860_v60 }
0x30bd   : > { %v10445_v2 = vpack.c.bf16 %v6780_v57, %v6775_v62  ;;  %v10449_v21 = vpack.c.bf16 %v6866_v29, %v6861_v0  ;;  %v12999_v61 = vpack.i.bf16 %v6780_v57, %v6775_v62  ;;  %v13001_v1 = vpack.i.bf16 %v6866_v29, %v6861_v0 }
0x30bf   : > { %10447 = vmatpush3.bf16.xpose.msk.msra.mxu0 %vm12403_vm4, %v10445_v2  ;;  %10450 = vmatpush3.bf16.msra.mxu1 %v10449_v21 }
0x30c0   : > { %10451 = vmatprep.subr.bf16.mxu1 %v11748_v3  ;;  %10455 = vmatprep.subr.bf16.mxu0 %v11748_v3 }
0x30c6   : > { %10001 = vmatmul.mubr.msk.f32.vlgmr.msra.gmra.mrb[50].mxu0 %vm2099_vm3, %v13007_v19 }
0x30c7   : > { %10021 = vmatprep.mubr.msk.f32.mxu0 %vm11749_vm7, %v11750_v34 }
0x3199   : > { %v6944_v5 = vpop.f32.mrb[50].mxu0 }
0x319a   : > { %v10002_v6 = vpop.f32.mrb[51].mxu0  ;;  %v6948_v9 = vsel %vm2187_vm5, %v6944_v5, -inf }
0x319b   : > { %6949 = vmax.xlane.f32.xlu0 %v6948_v9 }
0x31b1   : > { %10904 = vrot.lane.b32.xlu0 %v12999_v61, %s13406_s14 }
0x3228   : > { %v6950_v10 = vpop.xlane.xlu0 %6949 }
0x3229   : > { %v6951_v11 = vsub.f32 %v6944_v5, %v6950_v10 }
0x322b   : > { %v6952_v12 = vmul.f32 1.442695, %v6951_v11 }
0x322c   : > { %v10905_v15 = vpop.permute.xlu0 %10904 }
0x322d   : > { %11061 = vpow2.f32 %v6952_v12  ;;  %v10907_v47 = vunpack.i.h.bf16 %v10905_v15  ;;  %v10906_v16 = vunpack.i.l.bf16 %v10905_v15 }
0x322f   : > { %v10452_v63 = vpack.c.bf16 %v10907_v47, %v10906_v16 }
0x3237   : > { %v11062_v13 = vpop.eup %11061 }
0x3238   : > { %v6954_v14 = vsel %vm2187_vm5, %v11062_v13, 0.0 }
0x3239   : > { %6955 = vadd.xlane.f32.xlu1 %v6954_v14 }
0x324a   : > { %7033 = vrot.lane.b32.xlu1 %v13007_v19, %s13406_s14 }
0x32c6   : > { %v6956_v8 = vpop.xlane.xlu1 %6955 }
0x32c7   : > { %11063 = vrcp.f32 %v6956_v8 }
0x32ca   : > { %v7034_v32 = vpop.permute.xlu1 %7033 }
0x32d1   : > { %v11064_v17 = vpop.eup %11063 }
0x32d2   : > { %v6958_v7 = vmul.f32 %v11064_v17, %v11062_v13 }
0x32d4   : > { %10008 = vmatmul.mubr.msk.f32.vlgmr.msra.gmra.mrb[52].mxu1 %vm2187_vm5, %v6958_v7 }
0x32d5   : > { %10454 = vmatpush3.bf16.xpose.msk.msra.mxu1 %vm12403_vm4, %v10452_v63  ;;  %10014 = vmatprep.mubr.msk.f32.mxu1 %vm11749_vm7, %v11750_v34 }
0x32d6   : > { %10462 = vmatprep.subr.bf16.mxu1 %v11748_v3 }
0x32dc   : > { %10015 = vmatmul.mubr.msk.f32.vlgmr.msra.gmra.mrb[54].mxu1 %vm2099_vm3, %v7034_v32 }
0x32dd   : > { %10035 = vmatprep.mubr.msk.f32.mxu1 %vm11749_vm7, %v11750_v34 }
0x33a7   : > { %v13028_v20 = vpop.f32.mrb[52].mxu1 }
0x33a8   : > { %v10009_v22 = vpop.f32.mrb[53].mxu1 }
0x33a9   : > { %v7569_v22 = vld [vmem:[%s13425_s4] sm:$0xff] }
0x33af   : > { %v7111_v37 = vpop.f32.mrb[54].mxu1 }
0x33b0   : > { %v10016_v59 = vpop.f32.mrb[55].mxu1  ;;  %v7115_v23 = vsel %vm2187_vm5, %v7111_v37, -inf }
0x33b1   : > { %7116 = vmax.xlane.f32.xlu0 %v7115_v23  ;;  %v7571_v23 = vld [vmem:[%s13425_s4 + $0x10] sm:$0xff] }
0x33c7   : > { %10909 = vrot.lane.b32.xlu0 %v13001_v1, %s13406_s14 }
0x33cb   : > { %7212 = vrot.lane.b32.xlu0 %v13007_v19, %s13407_s26 }
0x343e   : > { %v7117_v24 = vpop.xlane.xlu0 %7116 }
0x343f   : > { %v7118_v28 = vsub.f32 %v7111_v37, %v7117_v24  ;;  %v7570_v37 = vld [vmem:[%s13425_s4 + $0x8] sm:$0xff]  ;;  %v7572_v24 = vld [vmem:[%s13425_s4 + $0x18] sm:$0xff]  ;;  %s13428_s4 = sld [smem:[#allocation83_spill]] }
0x3440   : > { %v10473_v59 = vpack.c.bf16 %v7570_v37, %v7569_v22 }
0x3441   : > { %v7119_v48 = vmul.f32 1.442695, %v7118_v28  ;;  %v10476_v28 = vpack.c.bf16 %v7572_v24, %v7571_v23 }
0x3442   : > { %v10910_v26 = vpop.permute.xlu0 %10909 }
0x3443   : > { %11065 = vpow2.f32 %v7119_v48  ;;  %v10912_v27 = vunpack.i.h.bf16 %v10910_v26  ;;  %v10911_v31 = vunpack.i.l.bf16 %v10910_v26  ;;  %v7655_v48 = vld [vmem:[%s13426_s8] sm:$0xff]  ;;  %v7656_v26 = vld [vmem:[%s13426_s8 + $0x8] sm:$0xff] }
0x3445   : > { %v10456_v33 = vpack.c.bf16 %v10912_v27, %v10911_v31  ;;  %v10479_v27 = vpack.c.bf16 %v7656_v26, %v7655_v48 }
0x3446   : > { %v7213_v4 = vpop.permute.xlu0 %7212 }
0x3447   : > { %10457 = vmatpush3.bf16.msra.mxu0 %v10456_v33 }
0x3448   : > { %10458 = vmatprep.subr.bf16.mxu0 %v11748_v3 }
0x344d   : > { %v11066_v25 = vpop.eup %11065 }
0x344e   : > { %v7121_v39 = vsel %vm2187_vm5, %v11066_v25, 0.0 }
0x344f   : > { %7122 = vadd.xlane.f32.xlu1 %v7121_v39 }
0x3460   : > { %10914 = vrot.lane.b32.xlu1 %v12999_v61, %s13407_s26 }
0x34dc   : > { %v7123_v40 = vpop.xlane.xlu1 %7122 }
0x34dd   : > { %11067 = vrcp.f32 %v7123_v40  ;;  %v7032_v40 = vadd.f32 %v13028_v20, %v13007_v19  ;;  %v7739_v20 = vld [vmem:[%s13427_s2] sm:$0xff] }
0x34e0   : > { %v10915_v41 = vpop.permute.xlu1 %10914 }
0x34e1   : > { %v10917_v42 = vunpack.i.h.bf16 %v10915_v41  ;;  %v10916_v43 = vunpack.i.l.bf16 %v10915_v41 }
0x34e3   : > { %v10459_v46 = vpack.c.bf16 %v10917_v42, %v10916_v43 }
0x34e7   : > { %v11068_v44 = vpop.eup %11067 }
0x34e8   : > { %v7125_v45 = vmul.f32 %v11068_v44, %v11066_v25 }
0x34ea   : > { %10022 = vmatmul.mubr.msk.f32.vlgmr.msra.gmra.mrb[52].mxu0 %vm2187_vm5, %v7125_v45 }
0x34eb   : > { %10461 = vmatpush3.bf16.xpose.msk.msra.mxu0 %vm12403_vm4, %v10459_v46  ;;  %10028 = vmatprep.mubr.msk.f32.mxu0 %vm11749_vm7, %v11750_v34 }
0x34ec   : > { %10469 = vmatprep.subr.bf16.mxu0 %v11748_v3 }
0x34f2   : > { %10029 = vmatmul.mubr.msk.f32.vlgmr.msra.gmra.mrb[54].mxu0 %vm2099_vm3, %v7213_v4 }
0x34f3   : > { %10049 = vmatprep.mubr.msk.f32.mxu0 %vm11749_vm7, %v11750_v34 }
0x35bd   : > { %v7203_v30 = vpop.f32.mrb[52].mxu0 }
0x35be   : > { %v10023_v49 = vpop.f32.mrb[53].mxu0 }
0x35c5   : > { %v7290_v51 = vpop.f32.mrb[54].mxu0 }
0x35c6   : > { %v10030_v52 = vpop.f32.mrb[55].mxu0  ;;  %v7294_v53 = vsel %vm2187_vm5, %v7290_v51, -inf }
0x35c7   : > { %7295 = vmax.xlane.f32.xlu1 %v7294_v53  ;;  %v7658_v52 = vld [vmem:[%s13426_s8 + $0x18] sm:$0xff] }
0x35d8   : > { %10924 = vrot.lane.b32.xlu1 %v12999_v61, %s13408_s18 }
0x35dc   : > { %7389 = vrot.lane.b32.xlu1 %v13007_v19, %s13408_s18 }
0x3654   : > { %v7296_v58 = vpop.xlane.xlu1 %7295 }
0x3655   : > { %v7297_v54 = vsub.f32 %v7290_v51, %v7296_v58  ;;  %v7657_v51 = vld [vmem:[%s13426_s8 + $0x10] sm:$0xff]  ;;  %v7742_v58 = vld [vmem:[%s13427_s2 + $0x18] sm:$0xff] }
0x3656   : > { %v10482_v53 = vpack.c.bf16 %v7658_v52, %v7657_v51 }
0x3657   : > { %v7298_v35 = vmul.f32 1.442695, %v7297_v54 }
0x3658   : > { %v10925_v62 = vpop.permute.xlu1 %10924 }
0x3659   : > { %11069 = vpow2.f32 %v7298_v35  ;;  %v10927_v2 = vunpack.i.h.bf16 %v10925_v62  ;;  %v10926_v21 = vunpack.i.l.bf16 %v10925_v62  ;;  %v9250_v35 = vld [vmem:[#allocation19] ss:$0 sm:$0xff] }
0x365b   : > { %v10466_v36 = vpack.c.bf16 %v10927_v2, %v10926_v21  ;;  %v7823_v2 = vld [vmem:[%s13428_s4 + $0x18] sm:$0xff] }
0x365c   : > { %v7390_v5 = vpop.permute.xlu1 %7389 }
0x3663   : > { %v11070_v38 = vpop.eup %11069 }
0x3664   : > { %v7300_v55 = vsel %vm2187_vm5, %v11070_v38, 0.0 }
0x3665   : > { %7301 = vadd.xlane.f32.xlu0 %v7300_v55 }
0x367b   : > { %10919 = vrot.lane.b32.xlu0 %v13001_v1, %s13407_s26 }
0x36f2   : > { %v7302_v56 = vpop.xlane.xlu0 %7301 }
0x36f3   : > { %11071 = vrcp.f32 %v7302_v56 }
0x36f6   : > { %v10920_v57 = vpop.permute.xlu0 %10919 }
0x36f7   : > { %v10922_v29 = vunpack.i.h.bf16 %v10920_v57  ;;  %v10921_v50 = vunpack.i.l.bf16 %v10920_v57  ;;  %v7820_v57 = vld [vmem:[%s13428_s4] sm:$0xff] }
0x36f9   : > { %v10463_v60 = vpack.c.bf16 %v10922_v29, %v10921_v50  ;;  %v7821_v29 = vld [vmem:[%s13428_s4 + $0x8] sm:$0xff] }
0x36fb   : > { %10464 = vmatpush3.bf16.msra.mxu1 %v10463_v60  ;;  %v10491_v60 = vpack.c.bf16 %v7821_v29, %v7820_v57 }
0x36fc   : > { %10465 = vmatprep.subr.bf16.mxu1 %v11748_v3 }
0x36fd   : > { %v11072_v0 = vpop.eup %11071 }
0x36fe   : > { %v7304_v61 = vmul.f32 %v11072_v0, %v11070_v38  ;;  %v7822_v0 = vld [vmem:[%s13428_s4 + $0x10] sm:$0xff] }
0x36ff   : > { %v10494_v21 = vpack.c.bf16 %v7823_v2, %v7822_v0 }
0x3700   : > { %10036 = vmatmul.mubr.msk.f32.vlgmr.msra.gmra.mrb[56].mxu1 %vm2187_vm5, %v7304_v61  ;;  %v9252_v61 = vld [vmem:[#allocation20] ss:$0 sm:$0xff] }
0x3701   : > { %10042 = vmatprep.mubr.msk.f32.mxu1 %vm11749_vm7, %v11750_v34 }
0x3704   : > { %10468 = vmatpush3.bf16.xpose.msk.msra.mxu1 %vm12403_vm4, %v10466_v36  ;;  %v9254_v36 = vld [vmem:[%s13429_s6] ss:$0 sm:$0xff] }
0x3705   : > { %10478 = vmatprep.subr.bf16.mxu1 %v11748_v3 }
0x370b   : > { %10043 = vmatmul.mubr.msk.f32.vlgmr.msra.gmra.mrb[58].mxu1 %vm2099_vm3, %v7390_v5 }
0x370c   : > { %10071 = vmatprep.mubr.msk.f32.mxu1 %vm11749_vm7, %v11750_v34  ;;  %10480 = vmatpush3.bf16.msra.mxu1 %v10479_v27 }
0x370d   : > { %10481 = vmatprep.subr.bf16.mxu1 %v11748_v3 }
0x3710   : > { %10483 = vmatpush3.bf16.msra.mxu1 %v10482_v53 }
0x3711   : > { %10490 = vmatprep.subr.bf16.mxu1 %v11748_v3 }
0x37d3   : > { %v7380_v6 = vpop.f32.mrb[56].mxu1 }
0x37d4   : > { %v10037_v9 = vpop.f32.mrb[57].mxu1 }
0x37de   : > { %v7467_v10 = vpop.f32.mrb[58].mxu1 }
0x37df   : > { %v10044_v11 = vpop.f32.mrb[59].mxu1  ;;  %v7471_v12 = vsel %vm2187_vm5, %v7467_v10, -inf }
0x37e0   : > { %7472 = vmax.xlane.f32.xlu0 %v7471_v12 }
0x37f6   : > { %10929 = vrot.lane.b32.xlu0 %v13001_v1, %s13408_s18 }
0x37fa   : > { %7385 = vrot.lane.b32.xlu0 %v7380_v6, %s13412_s3 }
0x386d   : > { %v7473_v18 = vpop.xlane.xlu0 %7472 }
0x386e   : > { %v7474_v13 = vsub.f32 %v7467_v10, %v7473_v18  ;;  %v9256_v18 = vld [vmem:[#allocation22] ss:$0 sm:$0xff] }
0x3870   : > { %v7475_v14 = vmul.f32 1.442695, %v7474_v13 }
0x3871   : > { %v10930_v8 = vpop.permute.xlu0 %10929 }
0x3872   : > { %11073 = vpow2.f32 %v7475_v14  ;;  %v10932_v15 = vunpack.i.h.bf16 %v10930_v8  ;;  %v10931_v47 = vunpack.i.l.bf16 %v10930_v8 }
0x3874   : > { %v10470_v16 = vpack.c.bf16 %v10932_v15, %v10931_v47 }
0x3875   : > { %v7386_v41 = vpop.permute.xlu0 %7385 }
0x3876   : > { %10471 = vmatpush3.bf16.msra.mxu0 %v10470_v16  ;;  %v7388_v43 = vadd.f32 %v7386_v41, %v13007_v19 }
0x3877   : > { %10472 = vmatprep.subr.bf16.mxu0 %v11748_v3 }
0x387c   : > { %v11074_v17 = vpop.eup %11073 }
0x387d   : > { %v7477_v1 = vsel %vm2187_vm5, %v11074_v17, 0.0 }
0x387e   : > { %7478 = vadd.xlane.f32.xlu1 %v7477_v1 }
0x388f   : > { %7208 = vrot.lane.b32.xlu1 %v7203_v30, %s13411_s1  ;;  %v7740_v30 = vld [vmem:[%s13427_s2 + $0x8] sm:$0xff] }
0x3890   : > { %v10485_v49 = vpack.c.bf16 %v7740_v30, %v7739_v20 }
0x390b   : > { %v7479_v7 = vpop.xlane.xlu1 %7478 }
0x390c   : > { %11075 = vrcp.f32 %v7479_v7 }
0x390f   : > { %v7209_v25 = vpop.permute.xlu1 %7208 }
0x3910   : > { %v7211_v39 = vadd.f32 %v7209_v25, %v13007_v19 }
0x3912   : > { %v7566_v42 = vsel %vm2099_vm3, %v7032_v40, %v7211_v39 }
0x3913   : > { %v7567_v46 = vsel %vm2187_vm5, %v7566_v42, %v7388_v43 }
0x3916   : > { %v11076_v63 = vpop.eup %11075 }
0x3917   : > { %v7481_v32 = vmul.f32 %v11076_v63, %v11074_v17 }
0x3919   : > { %10050 = vmatmul.mubr.msk.f32.vlgmr.msra.gmra.mrb[56].mxu0 %vm2187_vm5, %v7481_v32 }
0x391a   : > { %10060 = vmatprep.mubr.msk.f32.mxu0 %vm11749_vm7, %v11750_v34  ;;  %10474 = vmatpush3.bf16.msra.mxu0 %v10473_v59 }
0x391b   : > { %10475 = vmatprep.subr.bf16.mxu0 %v11748_v3 }
0x391e   : > { %10477 = vmatpush3.bf16.msra.mxu0 %v10476_v28 }
0x391f   : > { %10484 = vmatprep.subr.bf16.mxu0 %v11748_v3 }
0x39ec   : > { %v7557_v31 = vpop.f32.mrb[56].mxu0 }
0x39ed   : > { %7562 = vrot.lane.b32.xlu1 %v7557_v31, %s13399_s15  ;;  %v10051_v33 = vpop.f32.mrb[57].mxu0 }
0x3a5f   : > { %v7563_v44 = vpop.permute.xlu1 %7562 }
0x3a60   : > { %v7565_v45 = vadd.f32 %v7563_v44, %v13007_v19  ;;  %v7741_v19 = vld [vmem:[%s13427_s2 + $0x10] sm:$0xff] }
0x3a61   : > { %v10488_v54 = vpack.c.bf16 %v7742_v58, %v7741_v19 }
0x3a62   : > { %v7568_v4 = vsel %vm2929_vm6, %v7567_v46, %v7565_v45 }
0x3a63   : > { %10061 = vmatmul.mubr.msk.f32.vlgmr.msra.gmra.mrb[58].mxu0 %vm1837_vm2, %v7568_v4 }
0x3a64   : > { %10082 = vmatprep.mubr.msk.f32.mxu0 %vm11749_vm7, %v11750_v34  ;;  %10486 = vmatpush3.bf16.msra.mxu0 %v10485_v49 }
0x3a65   : > { %10487 = vmatprep.subr.bf16.mxu0 %v11748_v3 }
0x3a68   : > { %10489 = vmatpush3.bf16.msra.mxu0 %v10488_v54 }
0x3a69   : > { %10096 = vmatprep.subr.mxu0 %v11750_v34 }
0x3b36   : > { %v7649_v38 = vpop.f32.mrb[58].mxu0 }
0x3b37   : > { %v7650_v55 = vadd.f32 %v9250_v35, %v7649_v38  ;;  %v10062_v56 = vpop.f32.mrb[59].mxu0 }
0x3b39   : > { %v7653_v50 = vmax.f32 %v7650_v55, 0.0 }
0x3b3b   : > { %v7654_v62 = vadd.f32 %v7653_v50, %v7568_v4 }
0x3b3d   : > { %10072 = vmatmul.mubr.msk.f32.vlgmr.msra.gmra.mrb[60].mxu1 %vm1837_vm2, %v7654_v62  ;;  %10083 = vmatmul.mubr.msk.f32.vlgmr.msra.gmra.mrb[60].mxu0 %vm1837_vm2, %v7654_v62 }
0x3b3e   : > { %10492 = vmatpush3.bf16.msra.mxu1 %v10491_v60  ;;  %10093 = vmatprep.mubr.msk.f32.mxu1 %vm11749_vm7, %v11750_v34 }
0x3b3f   : > { %10493 = vmatprep.subr.bf16.mxu1 %v11748_v3  ;;  %10098 = vmatprep.mubr.msk.f32.mxu0 %vm11749_vm7, %v11750_v34 }
0x3b42   : > { %10495 = vmatpush3.bf16.msra.mxu1 %v10494_v21 }
0x3b43   : > { %10101 = vmatprep.subr.mxu1 %v11750_v34 }
0x3b45   : > { %10094 = vmatmul.mubr.msk.f32.vlgmr.msra.gmra.mrb[62].mxu1 %vm1837_vm2, %v7654_v62 }
0x3b46   : > { %10103 = vmatprep.mubr.msk.f32.mxu1 %vm11749_vm7, %v11750_v34 }
0x3c10   : > { %v7735_v5 = vpop.f32.mrb[60].mxu1  ;;  %v7816_v6 = vpop.f32.mrb[60].mxu0 }
0x3c11   : > { %v13122_v9 = vadd.f32 %v9252_v61, %v7735_v5  ;;  %v7817_v10 = vadd.f32 %v9254_v36, %v7816_v6  ;;  %v10073_v11 = vpop.f32.mrb[61].mxu1  ;;  %v10084_v12 = vpop.f32.mrb[61].mxu0 }
0x3c12   : > { %v8576_v11 = vld [vmem:[#allocation23] sm:$0xff]  ;;  %v8577_v12 = vld [vmem:[#allocation23 + $0x8] sm:$0xff] }
0x3c13   : > { %8062 = vrot.lane.b32.xlu1 %v13122_v9, %s13406_s14  ;;  %8064 = vrot.lane.b32.xlu0 %v7817_v10, %s13406_s14 }
0x3c14   : > { %10097 = vmatpush3.xpose.msk.msra.mxu0 %vm2099_vm3, %v7817_v10 }
0x3c15   : > { %10106 = vmatprep.subr.mxu0 %v11750_v34 }
0x3c17   : > { %10099 = vmatmul.mubr.msk.f32.vlgmr.msra.gmra.mrb[62].mxu0 %vm2099_vm3, %v13122_v9  ;;  %8233 = vrot.lane.b32.xlu1 %v13122_v9, %s13407_s26 }
0x3c18   : > { %v7897_v13 = vpop.f32.mrb[62].mxu1  ;;  %8235 = vrot.lane.b32.xlu0 %v7817_v10, %s13407_s26  ;;  %10108 = vmatprep.mubr.msk.f32.mxu0 %vm11749_vm7, %v11750_v34 }
0x3c19   : > { %v13136_v14 = vadd.f32 %v9256_v18, %v7897_v13  ;;  %v10095_v8 = vpop.f32.mrb[63].mxu1  ;;  %v10497_v18 = vpack.c.bf16 %v8577_v12, %v8576_v11 }
0x3c1b   : > { %10102 = vmatpush3.msra.mxu1 %v13136_v14  ;;  %8403 = vrot.lane.b32.xlu1 %v13122_v9, %s13408_s18 }
0x3c1c   : > { %8405 = vrot.lane.b32.xlu0 %v7817_v10, %s13408_s18  ;;  %10111 = vmatprep.subr.mxu1 %v11750_v34 }
0x3c85   : > { %v8063_v15 = vpop.permute.xlu1 %8062  ;;  %v8065_v47 = vpop.permute.xlu0 %8064 }
0x3c86   : > { %10107 = vmatpush3.xpose.msk.msra.mxu0 %vm2099_vm3, %v8065_v47  ;;  %v8578_v47 = vld [vmem:[#allocation23 + $0x10] sm:$0xff] }
0x3c87   : > { %10116 = vmatprep.subr.mxu0 %v11750_v34 }
0x3c89   : > { %10109 = vmatmul.mubr.msk.f32.vlgmr.msra.gmra.mrb[64].mxu0 %vm2099_vm3, %v8063_v15  ;;  %v8234_v17 = vpop.permute.xlu1 %8233 }
0x3c8a   : > { %v8236_v16 = vpop.permute.xlu0 %8235  ;;  %10118 = vmatprep.mubr.msk.f32.mxu0 %vm11749_vm7, %v11750_v34 }
0x3c8b   : > { %10117 = vmatpush3.xpose.msk.msra.mxu0 %vm2099_vm3, %v8236_v16  ;;  %v8579_v16 = vld [vmem:[#allocation23 + $0x18] sm:$0xff] }
0x3c8c   : > { %10126 = vmatprep.subr.mxu0 %v11750_v34 }
0x3c8d   : > { %v8404_v7 = vpop.permute.xlu1 %8403 }
0x3c8e   : > { %v8406_v1 = vpop.permute.xlu0 %8405  ;;  %10119 = vmatmul.mubr.msk.f32.vlgmr.msra.gmra.mrb[66].mxu0 %vm2099_vm3, %v8234_v17  ;;  %v10500_v17 = vpack.c.bf16 %v8579_v16, %v8578_v47 }
0x3c8f   : > { %10127 = vmatpush3.xpose.msk.msra.mxu0 %vm2099_vm3, %v8406_v1  ;;  %10128 = vmatprep.mubr.msk.f32.mxu0 %vm11749_vm7, %v11750_v34 }
0x3c90   : > { %10496 = vmatprep.subr.bf16.mxu0 %v11748_v3 }
0x3c92   : > { %10129 = vmatmul.mubr.msk.f32.vlgmr.msra.gmra.mrb[68].mxu0 %vm2099_vm3, %v8404_v7 }
0x3c93   : > { %10144 = vmatprep.mubr.msk.f32.mxu0 %vm11749_vm7, %v11750_v34  ;;  %10498 = vmatpush3.bf16.msra.mxu0 %v10497_v18 }
0x3c94   : > { %10499 = vmatprep.subr.bf16.mxu0 %v11748_v3 }
0x3c97   : > { %10501 = vmatpush3.bf16.msra.mxu0 %v10500_v17 }
0x3cea   : > { %v7973_v63 = vpop.f32.mrb[62].mxu0 }
0x3ceb   : > { %v10100_v32 = vpop.f32.mrb[63].mxu0  ;;  %v7977_v22 = vsel %vm2099_vm3, %v7973_v63, -inf }
0x3cec   : > { %7978 = vmax.xlane.f32.xlu0 %v7977_v22 }
0x3d5c   : > { %v8136_v37 = vpop.f32.mrb[64].mxu0 }
0x3d5d   : > { %v10110_v59 = vpop.f32.mrb[65].mxu0  ;;  %v8140_v23 = vsel %vm2099_vm3, %v8136_v37, -inf }
0x3d5e   : > { %8141 = vmax.xlane.f32.xlu1 %v8140_v23 }
0x3d61   : > { %v8307_v24 = vpop.f32.mrb[66].mxu0 }
0x3d62   : > { %v10120_v28 = vpop.f32.mrb[67].mxu0  ;;  %v8311_v48 = vsel %vm2099_vm3, %v8307_v24, -inf }
0x3d63   : > { %8312 = vmax.xlane.f32.xlu0 %v8311_v48 }
0x3d65   : > { %v8477_v26 = vpop.f32.mrb[68].mxu0 }
0x3d66   : > { %v10130_v27 = vpop.f32.mrb[69].mxu0  ;;  %v8481_v31 = vsel %vm2099_vm3, %v8477_v26, -inf }
0x3d67   : > { %8482 = vmax.xlane.f32.xlu0 %v8481_v31  ;;  %v8663_v27 = vld [vmem:[#allocation26 + $0x8] sm:$0xff] }
0x3d79   : > { %v7979_v33 = vpop.xlane.xlu0 %7978 }
0x3d7a   : > { %v7980_v25 = vsub.f32 %v7973_v63, %v7979_v33  ;;  %v8664_v33 = vld [vmem:[#allocation26 + $0x10] sm:$0xff] }
0x3d7c   : > { %v7981_v39 = vmul.f32 1.442695, %v7980_v25  ;;  %v8665_v25 = vld [vmem:[#allocation26 + $0x18] sm:$0xff] }
0x3d7e   : > { %11077 = vpow2.f32 %v7981_v39  ;;  %v10506_v39 = vpack.c.bf16 %v8665_v25, %v8664_v33 }
0x3d88   : > { %v11078_v40 = vpop.eup %11077 }
0x3d89   : > { %v7983_v41 = vsel %vm2099_vm3, %v11078_v40, 0.0 }
0x3d8a   : > { %7984 = vadd.xlane.f32.xlu0 %v7983_v41 }
0x3deb   : > { %v8142_v42 = vpop.xlane.xlu1 %8141 }
0x3dec   : > { %v8143_v43 = vsub.f32 %v8136_v37, %v8142_v42 }
0x3dee   : > { %v8144_v44 = vmul.f32 1.442695, %v8143_v43 }
0x3df0   : > { %11079 = vpow2.f32 %v8144_v44  ;;  %v8313_v45 = vpop.xlane.xlu0 %8312 }
0x3df1   : > { %v8314_v46 = vsub.f32 %v8307_v24, %v8313_v45  ;;  %v9272_v45 = vld [vmem:[#allocation28] ss:$0 sm:$0xff] }
0x3df3   : > { %v8315_v4 = vmul.f32 1.442695, %v8314_v46 }
0x3df4   : > { %v8483_v52 = vpop.xlane.xlu0 %8482 }
0x3df5   : > { %11081 = vpow2.f32 %v8315_v4  ;;  %v8484_v19 = vsub.f32 %v8477_v26, %v8483_v52  ;;  %v8662_v26 = vld [vmem:[#allocation26] sm:$0xff] }
0x3df6   : > { %v10503_v31 = vpack.c.bf16 %v8663_v27, %v8662_v26 }
0x3df7   : > { %v8485_v58 = vmul.f32 1.442695, %v8484_v19 }
0x3dfa   : > { %v11080_v20 = vpop.eup %11079 }
0x3dfb   : > { %v8146_v30 = vsel %vm2099_vm3, %v11080_v20, 0.0 }
0x3dfc   : > { %8147 = vadd.xlane.f32.xlu1 %v8146_v30 }
0x3dff   : > { %v11082_v49 = vpop.eup %11081 }
0x3e00   : > { %v8317_v51 = vsel %vm2099_vm3, %v11082_v49, 0.0 }
0x3e01   : > { %8318 = vadd.xlane.f32.xlu0 %v8317_v51 }
0x3e0d   : > { %8322 = vrot.lane.b32.xlu1 %v13136_v14, %s13407_s26 }
0x3e17   : > { %8152 = vrot.lane.b32.xlu0 %v13136_v14, %s13406_s14  ;;  %v7985_v53 = vpop.xlane.xlu0 %7984 }
0x3e18   : > { %11083 = vrcp.f32 %v7985_v53 }
0x3e19   : > { %11085 = vpow2.f32 %v8485_v58 }
0x3e22   : > { %v11084_v54 = vpop.eup %11083 }
0x3e23   : > { %v7987_v35 = vmul.f32 %v11084_v54, %v11078_v40  ;;  %v11086_v38 = vpop.eup %11085  ;;  %v9270_v40 = vld [vmem:[#allocation25] ss:$0 sm:$0xff] }
0x3e24   : > { %v8487_v55 = vsel %vm2099_vm3, %v11086_v38, 0.0 }
0x3e25   : > { %10104 = vmatmul.mubr.msk.f32.vlgmr.msra.gmra.mrb[64].mxu1 %vm2099_vm3, %v7987_v35 }
0x3e26   : > { %10113 = vmatprep.mubr.msk.f32.mxu1 %vm11749_vm7, %v11750_v34 }
0x3e31   : > { %8488 = vadd.xlane.f32.xlu1 %v8487_v55 }
0x3e42   : > { %8492 = vrot.lane.b32.xlu1 %v13136_v14, %s13408_s18 }
0x3e89   : > { %v8148_v56 = vpop.xlane.xlu1 %8147 }
0x3e8a   : > { %11087 = vrcp.f32 %v8148_v56 }
0x3e8d   : > { %v8323_v62 = vpop.permute.xlu1 %8322 }
0x3e8e   : > { %v8319_v57 = vpop.xlane.xlu0 %8318 }
0x3e8f   : > { %11089 = vrcp.f32 %v8319_v57 }
0x3e92   : > { %v8153_v29 = vpop.permute.xlu0 %8152 }
0x3e93   : > { %10112 = vmatpush3.msra.mxu1 %v8153_v29 }
0x3e94   : > { %v11088_v50 = vpop.eup %11087  ;;  %10121 = vmatprep.subr.mxu1 %v11750_v34 }
0x3e95   : > { %v8150_v60 = vmul.f32 %v11088_v50, %v11080_v20 }
0x3e97   : > { %10114 = vmatmul.mubr.msk.f32.vlgmr.msra.gmra.mrb[66].mxu1 %vm2099_vm3, %v8150_v60 }
0x3e98   : > { %10122 = vmatpush3.msra.mxu1 %v8323_v62  ;;  %10123 = vmatprep.mubr.msk.f32.mxu1 %vm11749_vm7, %v11750_v34 }
0x3e99   : > { %v11090_v0 = vpop.eup %11089  ;;  %10131 = vmatprep.subr.mxu1 %v11750_v34 }
0x3e9a   : > { %v8321_v2 = vmul.f32 %v11090_v0, %v11082_v49 }
0x3e9c   : > { %10124 = vmatmul.mubr.msk.f32.vlgmr.msra.gmra.mrb[68].mxu1 %vm2099_vm3, %v8321_v2 }
0x3e9d   : > { %10133 = vmatprep.mubr.msk.f32.mxu1 %vm11749_vm7, %v11750_v34 }
0x3ebe   : > { %v8489_v21 = vpop.xlane.xlu1 %8488 }
0x3ebf   : > { %11091 = vrcp.f32 %v8489_v21 }
0x3ec2   : > { %v8493_v61 = vpop.permute.xlu1 %8492 }
0x3ec3   : > { %10132 = vmatpush3.msra.mxu1 %v8493_v61 }
0x3ec4   : > { %10502 = vmatprep.subr.bf16.mxu1 %v11748_v3 }
0x3ec9   : > { %v11092_v36 = vpop.eup %11091 }
0x3eca   : > { %v8491_v5 = vmul.f32 %v11092_v36, %v11086_v38 }
0x3ecc   : > { %10134 = vmatmul.mubr.msk.f32.vlgmr.msra.gmra.mrb[70].mxu1 %vm2099_vm3, %v8491_v5 }
0x3ecd   : > { %10155 = vmatprep.mubr.msk.f32.mxu1 %vm11749_vm7, %v11750_v34  ;;  %10504 = vmatpush3.bf16.msra.mxu1 %v10503_v31 }
0x3ece   : > { %10505 = vmatprep.subr.bf16.mxu1 %v11748_v3 }
0x3ed1   : > { %10507 = vmatpush3.bf16.msra.mxu1 %v10506_v39 }
0x3ef8   : > { %v8057_v6 = vpop.f32.mrb[64].mxu1 }
0x3ef9   : > { %v10105_v10 = vpop.f32.mrb[65].mxu1  ;;  %v8061_v37 = vadd.f32 %v8057_v6, %v13122_v9 }
0x3f6a   : > { %v8224_v13 = vpop.f32.mrb[66].mxu1 }
0x3f6b   : > { %8229 = vrot.lane.b32.xlu1 %v8224_v13, %s13411_s1  ;;  %v10115_v14 = vpop.f32.mrb[67].mxu1 }
0x3f6f   : > { %v8394_v8 = vpop.f32.mrb[68].mxu1 }
0x3f70   : > { %8399 = vrot.lane.b32.xlu0 %v8394_v8, %s13412_s3  ;;  %v10125_v15 = vpop.f32.mrb[69].mxu1  ;;  %s1814_s3 = sand.u32 1, %s11659_s16  }
0x3f71   : > { %s9076_s1 = sshll.u32 %s1814_s3, 3  ;;  %s8748_s6 = scalar_lea.sflag [#allocation4], %s1814_s3 }
0x3f72   : > { %s1816_s14 = scalar_lea.vmem [#allocation29], %s9076_s1 }
0x3f73   : > { %s8761_s26 = sshll.u32 %s1816_s14, 4  ;;  %s13206_s26 = int_to_ptr.vmem [resolvable:$true] %s8761_s26 }
0x3f74   : > { %s11569_s2 = scalar_lea.vmem %s13206_s26, 128 }
0x3f75   : > { %p11570_p12 = scmp.ne.s32.totalorder %s13206_s26, %s11569_s2 }
0x3f77   : > { %p11571_p6 = pnand %p11570_p12, %p13430_p5 }
0x3f79   : > { %p11572_p9 = pneg %p11571_p6 }
0x3f9f   : > { %v8564_v34 = vpop.f32.mrb[70].mxu1 }
0x3fa0   : > { %8569 = vrot.lane.b32.xlu1 %v8564_v34, %s13399_s15  ;;  %v10135_v1 = vpop.f32.mrb[71].mxu1  ;;  %s9275_s15 = sshll.u32 %s12053_s0, 7  ;;  %s11751_s0 = smov [#allocation29]  }
0x3fa1   : > { %s13204_s18 = scalar_lea.hbm %s12030_s5, %s9275_s15  ;;  %s11573_s1 = sshll.u32 %s11751_s0, 4  ;;  %s11574_s1 = int_to_ptr.vmem [resolvable:$false] %s11573_s1 }
0x3fa2   : > { %s11575_s4 = scalar_lea.vmem %s11574_s1, 256  ;;  %p11576_p10 = scmp.lt.s32.totalorder %s13206_s26, %s11574_s1 }
0x3fa3   : > { %p11577_p7 = scmp.lt.s32.totalorder %s11575_s4, %s11569_s2 }
0x3fa5   : > { %p11578_p8 = por %p11577_p7, %p11576_p10 }
0x3fa7   : > { %p11579_p11 = pnand %p11578_p8, %p11572_p9 }
0x3fdd   : > { %v8230_v7 = vpop.permute.xlu1 %8229 }
0x3fde   : > { %v8232_v32 = vadd.f32 %v8230_v7, %v13122_v9 }
0x3fe0   : > { %v8573_v23 = vsel %vm2099_vm3, %v8061_v37, %v8232_v32 }
0x3fe2   : > { %v8400_v63 = vpop.permute.xlu0 %8399 }
0x3fe3   : > { %v8402_v22 = vadd.f32 %v8400_v63, %v13122_v9 }
0x3fe5   : > { %v8574_v28 = vsel %vm2187_vm5, %v8573_v23, %v8402_v22 }
0x4012   : > { %v8570_v59 = vpop.permute.xlu1 %8569 }
0x4013   : > { %v8572_v24 = vadd.f32 %v8570_v59, %v13122_v9 }
0x4015   : > { %v8575_v48 = vsel %vm2929_vm6, %v8574_v28, %v8572_v24 }
0x4016   : > { %10145 = vmatmul.mubr.msk.f32.vlgmr.msra.gmra.mrb[70].mxu0 %vm1837_vm2, %v8575_v48 }
0x40e9   : > { %v8656_v9 = vpop.f32.mrb[70].mxu0 }
0x40ea   : > { %v8657_v41 = vadd.f32 %v9270_v40, %v8656_v9  ;;  %v10146_v42 = vpop.f32.mrb[71].mxu0 }
0x40ec   : > { %v8660_v43 = vmax.f32 %v8657_v41, 0.0 }
0x40ee   : > { %v8661_v44 = vadd.f32 %v8660_v43, %v8575_v48 }
0x40f0   : > { %10156 = vmatmul.mubr.msk.f32.vlgmr.msra.gmra.mrb[72].mxu1 %vm1837_vm2, %v8661_v44 }
0x41c3   : > { %v8742_v3 = vpop.f32.mrb[72].mxu1 }
0x41c4   : > { %v8743_v46 = vadd.f32 %v9272_v45, %v8742_v3  ;;  %v10157_v4 = vpop.f32.mrb[73].mxu1 }
0x41c6   : > { %8746 = vst.msk [vmem:[%s1816_s14] sm:$0xff] %vm1837_vm2, %v8743_v46 }
0x41c7   : > { %11582 = shalt.err (!%p11579_p11)
}
0x41c8   : > { %s11583_s3 = scalar_lea.hbm %s13204_s18, 128  ;;  %s11587_s15 = scalar_lea.hbm %s12030_s5, 256 }
0x41c9   : > { %p11584_p13 = scmp.ne.s32.totalorder %s13204_s18, %s11583_s3  ;;  %p11588_p0 = scmp.lt.u32.totalorder %s13204_s18, %s12030_s5 }
0x41ca   : > { %p11589_p3 = scmp.lt.u32.totalorder %s11587_s15, %s11583_s3  ;;  %p11591_p12 = scmp.lt.u32.totalorder %s11583_s3, %s13204_s18 }
0x41cb   : > { %p11585_p1 = pnand %p11584_p13, %p13430_p5 }
0x41cc   : > { %p11590_p4 = por %p11589_p3, %p11588_p0 }
0x41cd   : > { %p11586_p2 = pneg %p11585_p1 }
0x41ce   : > { %p11592_p6 = por %p11591_p12, %p11590_p4 }
0x41d0   : > { %p11593_p9 = pnand %p11592_p6, %p11586_p2 }
0x41d2   : > { %11596 = shalt.err (!%p11593_p9)
}
0x41d3   : > { %10576 = dma.vmem_to_hbm [thread:$0]  (%p13430_p5), %s13206_s26, 128, %s13204_s18, %s8748_s6  }
0x41d4 PF: > { %s13431_s2 = sld [smem:[#allocation84_spill]]  ;;  %s13432_s4 = sld [smem:[#allocation88_spill]] }
0x41d5   : > { %p10668_p10 = scmp.ge.s32.totalorder %s11667_s22, 2 }
0x41da   : > { %s8773_s14 = sand.u32 1, %s13431_s2   ;;  %p13433_p7 = scmp.ne.s32.totalorder %s13432_s4, 0 }
0x41db   : > { %s8774_s0 = scalar_lea.sflag [#allocation4], %s8773_s14 }
0x41dc   : > { %p10631_p8 = pnand %p10668_p10, %p13433_p7 }
0x41de   : > { %11650 = dma.done.wait (!%p10631_p8), %s8774_s0, 128  }
0x41df   : > { %11652 = vsyncadd (!%p10631_p8), %s8774_s0, 4294967168  ;;  %s13434_s22 = sld [smem:[#allocation86_spill]]  ;;  %s13435_s1 = sld [smem:[#allocation85_spill]] }
0x41e0   : > { %s13436_s18 = sld [smem:[#allocation87_spill]]  ;;  %s13437_s15 = smov %s11659_s16 }
0x41e5   : > { %p128_p11 = scmp.ge.s32.totalorder %s13434_s22, 4   ;;  %s13438_s16 = smov %s13435_s1 }
0x41e7   :  { %130 = sbr.rel (!%p128_p11) target bundleno = 120 (0x78), region = 394 }
0x41ee   :  { %8779 = vsyncpa [#allocation3], 1 }
0x41ef   :  { %8781 = vsyncpa [#allocation3 + $0x1], 1 }
0x41f0   :  { %8782 = vsyncpa [#allocation6], 1 }
0x41f1   :  { %8783 = vsyncpa [#allocation9], 1 }
0x41f2   :  { %8784 = vsyncpa [#allocation12], 1 }
0x41f3   :  { %8785 = vsyncpa [#allocation15], 1 }
0x41f4   :  { %8786 = vsyncpa [#allocation18], 1 }
0x41f5   :  { %8787 = vsyncpa [#allocation21], 1 }
0x41f6   :  { %8788 = vsyncpa [#allocation24], 1 }
0x41f7   :  { %8789 = vsyncpa [#allocation27], 1 }
0x41f8   :  { %8790 = vsyncpa [#allocation4], 1 }
0x41f9   :  { %8792 = vsyncpa [#allocation4 + $0x1], 1 }

</bundles_post_ra>
